<compile_context>
chip_gen: v7x
topology: tpu7x:2x2x1
jax: 0.10.0
libtpu: 0.0.40
codegen_flags: <defaults>
</compile_context>

<pallas_src>
import functools

import jax
import jax.numpy as jnp
from jax.experimental import pallas as pl
from jax.experimental.pallas import tpu as pltpu


# ----------------------------------------------------------------------------
# Fused decoder kernel factory.
# PyTorch GRU gate order (r, z, n):
#   r = sigmoid(x Wir + bir + h Whr + bhr)
#   z = sigmoid(x Wiz + biz + h Whz + bhz)
#   n = tanh   (x Win + bin + r * (h Whn + bhn))
#   h' = (1 - z) * n + z * h
# ----------------------------------------------------------------------------
def make_decoder_kernel(num_layers, T, Bp, HP):
    def kernel(*refs):
        # ---- unpack refs: inputs, outputs, scratch -------------------------
        x_ref, h0_ref = refs[0], refs[1]
        pos = 2
        layer_refs = []
        for _ in range(num_layers):
            layer_refs.append(refs[pos:pos + 4])   # (wih, whh, bih, bhh)
            pos += 4
        whead_ref, bhead_ref = refs[pos], refs[pos + 1]
        pos += 2
        out_ref, hT_ref = refs[pos], refs[pos + 1]
        act_scr = refs[pos + 2]                    # VMEM (T*Bp, HP)

        cur_in = x_ref[...]                        # (T*Bp, Din) layer-0 input
        for l in range(num_layers):
            wih_ref, whh_ref, bih_ref, bhh_ref = layer_refs[l]

            # Input-side gates for ALL timesteps in one matmul (hoisted).
            gi_all = (jnp.dot(cur_in, wih_ref[...],
                              preferred_element_type=jnp.float32)
                      + bih_ref[...])              # (T*Bp, 3*HP)

            # Hoist the loop-invariant bias broadcast (JAX does not CSE it).
            bhh_b = jnp.broadcast_to(bhh_ref[...], (Bp, 3 * HP))

            h = h0_ref[l]                          # (Bp, HP), padded lanes are 0

            # Statically unrolled time recurrence.
            for t in range(T):
                gi = gi_all[t * Bp:(t + 1) * Bp, :]                 # aligned rows
                gh = (jnp.dot(h, whh_ref[...],
                              preferred_element_type=jnp.float32) + bhh_b)
                r = jax.nn.sigmoid(gi[:, 0:HP] + gh[:, 0:HP])        # vreg-aligned
                z = jax.nn.sigmoid(gi[:, HP:2 * HP] + gh[:, HP:2 * HP])
                n = jnp.tanh(gi[:, 2 * HP:3 * HP] + r * gh[:, 2 * HP:3 * HP])
                h = (1.0 - z) * n + z * h
                # Full (Bp, HP) = (8,128) aligned tile store, t-major.
                act_scr[pl.ds(t * Bp, Bp), :] = h

            hT_ref[l] = h                          # final hidden for this layer
            cur_in = act_scr[...]                  # next layer's input

        # Fused output heads: one (T*Bp, HP) @ (HP, Nn+Nd) matmul.
        out_ref[...] = (jnp.dot(act_scr[...], whead_ref[...],
                                preferred_element_type=jnp.float32)
                        + bhead_ref[...])

    return kernel


# ----------------------------------------------------------------------------
# Parameter init (logical / PyTorch-like layout) and packing for the kernel.
# ----------------------------------------------------------------------------
def init_decoder_params(key, input_size_notes, input_size_durs,
                        note_emb_size, dur_emb_size, layer_dim, hidden_size):
    ks = iter(jax.random.split(key, 2 + 4 * layer_dim + 4))
    s = 1.0 / (hidden_size ** 0.5)
    u = lambda k, shape: jax.random.uniform(k, shape, jnp.float32, -s, s)

    params = {
        "note_emb": jax.random.normal(next(ks), (input_size_notes, note_emb_size),
                                      jnp.float32),
        "dur_emb": jax.random.normal(next(ks), (input_size_durs, dur_emb_size),
                                     jnp.float32),
        "gru": [],
    }
    in_dim = note_emb_size + dur_emb_size
    for l in range(layer_dim):
        d = in_dim if l == 0 else hidden_size
        params["gru"].append({
            "wih_t": u(next(ks), (d, 3 * hidden_size)),           # (in, 3H)
            "whh_t": u(next(ks), (hidden_size, 3 * hidden_size)),  # (H, 3H)
            "bih": u(next(ks), (1, 3 * hidden_size)),
            "bhh": u(next(ks), (1, 3 * hidden_size)),
        })
    params["fc_notes_w_t"] = u(next(ks), (hidden_size, input_size_notes))
    params["fc_notes_b"] = u(next(ks), (1, input_size_notes))
    params["fc_durs_w_t"] = u(next(ks), (hidden_size, input_size_durs))
    params["fc_durs_b"] = u(next(ks), (1, input_size_durs))
    return params


def pack_decoder_params(params):
    """Pad each gate block to 128 lanes and pad hidden width to HP; fuse heads."""
    gru = params["gru"]
    H = gru[0]["whh_t"].shape[0]
    HP = ((H + 127) // 128) * 128
    Nn = params["fc_notes_w_t"].shape[1]
    Nd = params["fc_durs_w_t"].shape[1]

    layers = []
    for l, lay in enumerate(gru):
        d = lay["wih_t"].shape[0]
        rows = d if l == 0 else HP                 # layer>0 input is HP-padded
        wih = jnp.zeros((rows, 3 * HP), jnp.float32)
        whh = jnp.zeros((HP, 3 * HP), jnp.float32)
        bih = jnp.zeros((1, 3 * HP), jnp.float32)
        bhh = jnp.zeros((1, 3 * HP), jnp.float32)
        for g in range(3):
            wih = wih.at[:d, g * HP:g * HP + H].set(lay["wih_t"][:, g * H:(g + 1) * H])
            whh = whh.at[:H, g * HP:g * HP + H].set(lay["whh_t"][:, g * H:(g + 1) * H])
            bih = bih.at[:, g * HP:g * HP + H].set(lay["bih"][:, g * H:(g + 1) * H])
            bhh = bhh.at[:, g * HP:g * HP + H].set(lay["bhh"][:, g * H:(g + 1) * H])
        layers.append({"wih": wih, "whh": whh, "bih": bih, "bhh": bhh})

    whead = jnp.zeros((HP, Nn + Nd), jnp.float32)
    whead = whead.at[:H, :Nn].set(params["fc_notes_w_t"])
    whead = whead.at[:H, Nn:].set(params["fc_durs_w_t"])
    bhead = jnp.concatenate([params["fc_notes_b"], params["fc_durs_b"]], axis=1)

    return {
        "note_emb": params["note_emb"],
        "dur_emb": params["dur_emb"],
        "layers": layers,
        "whead": whead,
        "bhead": bhead,
    }


# ----------------------------------------------------------------------------
# Forward pass: embedding gather + layout prep in JAX glue, everything else in
# one fused Pallas kernel.
# ----------------------------------------------------------------------------
@jax.jit
def decoder_forward(packed, hn, note, dur):
    # Embedding lookups (gather) kept in plain JAX glue.
    # TODO(synk): in-kernel embedding gather not implemented (tables are tiny).
    note_e = jnp.take(packed["note_emb"], note, axis=0)      # (B, T, En)
    dur_e = jnp.take(packed["dur_emb"], dur, axis=0)         # (B, T, Ed)
    x = jnp.concatenate([note_e, dur_e], axis=2)             # (B, T, Din)

    B, T, Din = x.shape
    L, _, H = hn.shape
    HP = packed["whead"].shape[0]
    Nn = packed["note_emb"].shape[0]
    Nd = packed["dur_emb"].shape[0]
    Nout = Nn + Nd
    Bp = ((B + 7) // 8) * 8                                  # pad batch to sublanes

    # t-major layout: row index = t*Bp + b (aligned 8-row tile per timestep).
    x_p = jnp.pad(x, ((0, Bp - B), (0, 0), (0, 0)))
    x2d = x_p.transpose(1, 0, 2).reshape(T * Bp, Din)
    h0 = jnp.pad(hn.astype(jnp.float32), ((0, 0), (0, Bp - B), (0, HP - H)))

    args = [x2d, h0]
    for lay in packed["layers"]:
        args += [lay["wih"], lay["whh"], lay["bih"], lay["bhh"]]
    args += [packed["whead"], packed["bhead"]]

    vmem = lambda: pl.BlockSpec(memory_space=pltpu.MemorySpace.VMEM)
    head_out, hT = pl.pallas_call(
        make_decoder_kernel(len(packed["layers"]), T, Bp, HP),
        out_shape=(jax.ShapeDtypeStruct((T * Bp, Nout), jnp.float32),
                   jax.ShapeDtypeStruct((L, Bp, HP), jnp.float32)),
        in_specs=[vmem() for _ in args],
        out_specs=(vmem(), vmem()),
        scratch_shapes=[pltpu.VMEM((T * Bp, HP), jnp.float32)],
    )(*args)

    out = head_out.reshape(T, Bp, Nout).transpose(1, 0, 2)[:B]   # (B, T, Nn+Nd)
    note_pred = out[:, :, :Nn]
    dur_pred = out[:, :, Nn:]
    hidden = hT[:, :B, :H]
    return note_pred, dur_pred, hidden


# ----------------------------------------------------------------------------
# Pure-JAX reference (same math, logical params) for a sanity check.
# ----------------------------------------------------------------------------
def decoder_forward_ref(params, hn, note, dur):
    note_e = jnp.take(params["note_emb"], note, axis=0)
    dur_e = jnp.take(params["dur_emb"], dur, axis=0)
    x = jnp.concatenate([note_e, dur_e], axis=2)
    H = hn.shape[2]
    h_finals = []
    for l, layer in enumerate(params["gru"]):
        def step(h, x_t, layer=layer, H=H):
            gi = x_t @ layer["wih_t"] + layer["bih"]
            gh = h @ layer["whh_t"] + layer["bhh"]
            r = jax.nn.sigmoid(gi[:, :H] + gh[:, :H])
            z = jax.nn.sigmoid(gi[:, H:2 * H] + gh[:, H:2 * H])
            n = jnp.tanh(gi[:, 2 * H:] + r * gh[:, 2 * H:])
            h_new = (1 - z) * n + z * h
            return h_new, h_new

        hT, ys = jax.lax.scan(step, hn[l], jnp.swapaxes(x, 0, 1))
        x = jnp.swapaxes(ys, 0, 1)
        h_finals.append(hT)
    hidden = jnp.stack(h_finals, axis=0)
    note_pred = x @ params["fc_notes_w_t"] + params["fc_notes_b"]
    dur_pred = x @ params["fc_durs_w_t"] + params["fc_durs_b"]
    return note_pred, dur_pred, hidden


if __name__ == "__main__":
    INPUT_SIZE_NOTES = 48
    INPUT_SIZE_DURS = 16
    NOTE_EMB = 16
    DUR_EMB = 16
    LAYER_DIM = 2
    HIDDEN = 32
    B, T = 2, 8

    key = jax.random.PRNGKey(0)
    kp, kn, kd, kh = jax.random.split(key, 4)

    params = init_decoder_params(kp, INPUT_SIZE_NOTES, INPUT_SIZE_DURS,
                                 NOTE_EMB, DUR_EMB, LAYER_DIM, HIDDEN)
    packed = pack_decoder_params(params)

    note = jax.random.randint(kn, (B, T), 0, INPUT_SIZE_NOTES, dtype=jnp.int32)
    dur = jax.random.randint(kd, (B, T), 0, INPUT_SIZE_DURS, dtype=jnp.int32)
    hn = jax.random.normal(kh, (LAYER_DIM, B, HIDDEN), jnp.float32)

    note_pred, dur_pred, hidden = decoder_forward(packed, hn, note, dur)
    jax.block_until_ready((note_pred, dur_pred, hidden))

    # sanity check vs pure-JAX reference
    ref_np, ref_dp, ref_h = decoder_forward_ref(params, hn, note, dur)
    assert note_pred.shape == (B, T, INPUT_SIZE_NOTES)
    assert dur_pred.shape == (B, T, INPUT_SIZE_DURS)
    assert hidden.shape == (LAYER_DIM, B, HIDDEN)
    assert jnp.allclose(note_pred, ref_np, atol=2e-3, rtol=2e-3)
    assert jnp.allclose(dur_pred, ref_dp, atol=2e-3, rtol=2e-3)
    assert jnp.allclose(hidden, ref_h, atol=2e-3, rtol=2e-3)

    print("KERNEL_OK")
</pallas_src>

<mosaic_0001>
module attributes {stable_mosaic.version = 11 : i64} {
  func.func @kernel(%arg0: memref<64x32xf32, #tpu.memory_space<vmem>>, %arg1: memref<2x8x128xf32, #tpu.memory_space<vmem>>, %arg2: memref<32x384xf32, #tpu.memory_space<vmem>>, %arg3: memref<128x384xf32, #tpu.memory_space<vmem>>, %arg4: memref<1x384xf32, #tpu.memory_space<vmem>>, %arg5: memref<1x384xf32, #tpu.memory_space<vmem>>, %arg6: memref<128x384xf32, #tpu.memory_space<vmem>>, %arg7: memref<128x384xf32, #tpu.memory_space<vmem>>, %arg8: memref<1x384xf32, #tpu.memory_space<vmem>>, %arg9: memref<1x384xf32, #tpu.memory_space<vmem>>, %arg10: memref<128x64xf32, #tpu.memory_space<vmem>>, %arg11: memref<1x64xf32, #tpu.memory_space<vmem>>, %arg12: memref<64x64xf32, #tpu.memory_space<vmem>>, %arg13: memref<2x8x128xf32, #tpu.memory_space<vmem>>, %arg14: memref<64x128xf32, #tpu.memory_space<vmem>>) attributes {dimension_semantics = [], scalar_prefetch = 0 : i64, scratch_operands = 1 : i64, tpu.core_type = #tpu.core_type<tc>} {
    %c0 = arith.constant 0 : index
    %c0_0 = arith.constant 0 : index
    %0 = vector.load %arg0[%c0, %c0_0] : memref<64x32xf32, #tpu.memory_space<vmem>>, vector<64x32xf32>
    %c0_1 = arith.constant 0 : index
    %c0_2 = arith.constant 0 : index
    %1 = vector.load %arg2[%c0_1, %c0_2] : memref<32x384xf32, #tpu.memory_space<vmem>>, vector<32x384xf32>
    %cst = arith.constant dense<0.000000e+00> : vector<64x384xf32>
    %2 = tpu.matmul %0, %1, %cst {dimension_numbers = #tpu.dot_dimension_numbers<[1], [0], [0], [1], [0, 0, 1, 1], [], []>} : vector<64x32xf32>, vector<32x384xf32>, vector<64x384xf32> -> vector<64x384xf32>
    %c0_3 = arith.constant 0 : index
    %c0_4 = arith.constant 0 : index
    %3 = vector.load %arg4[%c0_3, %c0_4] : memref<1x384xf32, #tpu.memory_space<vmem>>, vector<1x384xf32>
    %4 = vector.broadcast %3 : vector<1x384xf32> to vector<64x384xf32>
    %5 = arith.addf %2, %4 : vector<64x384xf32>
    %c0_5 = arith.constant 0 : index
    %c0_6 = arith.constant 0 : index
    %6 = vector.load %arg5[%c0_5, %c0_6] : memref<1x384xf32, #tpu.memory_space<vmem>>, vector<1x384xf32>
    %7 = vector.shape_cast %6 : vector<1x384xf32> to vector<1x384xf32>
    %8 = vector.broadcast %7 : vector<1x384xf32> to vector<8x384xf32>
    %c0_7 = arith.constant 0 : index
    %c0_8 = arith.constant 0 : index
    %c0_9 = arith.constant 0 : index
    %9 = vector.load %arg1[%c0_7, %c0_8, %c0_9] : memref<2x8x128xf32, #tpu.memory_space<vmem>>, vector<1x8x128xf32>
    %10 = vector.shape_cast %9 : vector<1x8x128xf32> to vector<8x128xf32>
    %11 = vector.extract_strided_slice %5 {offsets = [0, 0], sizes = [8, 384], strides = [1, 1]} : vector<64x384xf32> to vector<8x384xf32>
    %c0_10 = arith.constant 0 : index
    %c0_11 = arith.constant 0 : index
    %12 = vector.load %arg3[%c0_10, %c0_11] : memref<128x384xf32, #tpu.memory_space<vmem>>, vector<128x384xf32>
    %cst_12 = arith.constant dense<0.000000e+00> : vector<8x384xf32>
    %13 = tpu.matmul %10, %12, %cst_12 {dimension_numbers = #tpu.dot_dimension_numbers<[1], [0], [0], [1], [0, 0, 1, 1], [], []>} : vector<8x128xf32>, vector<128x384xf32>, vector<8x384xf32> -> vector<8x384xf32>
    %14 = arith.addf %13, %8 : vector<8x384xf32>
    %15 = vector.extract_strided_slice %11 {offsets = [0, 0], sizes = [8, 128], strides = [1, 1]} : vector<8x384xf32> to vector<8x128xf32>
    %16 = vector.extract_strided_slice %14 {offsets = [0, 0], sizes = [8, 128], strides = [1, 1]} : vector<8x384xf32> to vector<8x128xf32>
    %17 = arith.addf %15, %16 : vector<8x128xf32>
    %18 = arith.negf %17 : vector<8x128xf32>
    %19 = math.exp %18 : vector<8x128xf32>
    %cst_13 = arith.constant 1.000000e+00 : f32
    %20 = vector.broadcast %cst_13 : f32 to vector<8x128xf32>
    %21 = arith.addf %20, %19 : vector<8x128xf32>
    %22 = arith.divf %20, %21 : vector<8x128xf32>
    %23 = vector.extract_strided_slice %11 {offsets = [0, 128], sizes = [8, 128], strides = [1, 1]} : vector<8x384xf32> to vector<8x128xf32>
    %24 = vector.extract_strided_slice %14 {offsets = [0, 128], sizes = [8, 128], strides = [1, 1]} : vector<8x384xf32> to vector<8x128xf32>
    %25 = arith.addf %23, %24 : vector<8x128xf32>
    %26 = arith.negf %25 : vector<8x128xf32>
    %27 = math.exp %26 : vector<8x128xf32>
    %cst_14 = arith.constant 1.000000e+00 : f32
    %28 = vector.broadcast %cst_14 : f32 to vector<8x128xf32>
    %29 = arith.addf %28, %27 : vector<8x128xf32>
    %30 = arith.divf %28, %29 : vector<8x128xf32>
    %31 = vector.extract_strided_slice %11 {offsets = [0, 256], sizes = [8, 128], strides = [1, 1]} : vector<8x384xf32> to vector<8x128xf32>
    %32 = vector.extract_strided_slice %14 {offsets = [0, 256], sizes = [8, 128], strides = [1, 1]} : vector<8x384xf32> to vector<8x128xf32>
    %33 = arith.mulf %22, %32 : vector<8x128xf32>
    %34 = arith.addf %31, %33 : vector<8x128xf32>
    %35 = math.tanh %34 : vector<8x128xf32>
    %cst_15 = arith.constant 1.000000e+00 : f32
    %36 = vector.broadcast %cst_15 : f32 to vector<8x128xf32>
    %37 = arith.subf %36, %30 : vector<8x128xf32>
    %38 = arith.mulf %37, %35 : vector<8x128xf32>
    %39 = arith.mulf %30, %10 : vector<8x128xf32>
    %40 = arith.addf %38, %39 : vector<8x128xf32>
    %c0_16 = arith.constant 0 : index
    %c0_17 = arith.constant 0 : index
    %41 = vector.load %arg14[%c0_16, %c0_17] : memref<64x128xf32, #tpu.memory_space<vmem>>, vector<8x128xf32>
    tpu.vector_store %arg14[%c0_16, %c0_17], %40 {strides = array<i32>} : memref<64x128xf32, #tpu.memory_space<vmem>>, vector<8x128xf32>,
    %42 = vector.extract_strided_slice %5 {offsets = [8, 0], sizes = [8, 384], strides = [1, 1]} : vector<64x384xf32> to vector<8x384xf32>
    %c0_18 = arith.constant 0 : index
    %c0_19 = arith.constant 0 : index
    %43 = vector.load %arg3[%c0_18, %c0_19] : memref<128x384xf32, #tpu.memory_space<vmem>>, vector<128x384xf32>
    %cst_20 = arith.constant dense<0.000000e+00> : vector<8x384xf32>
    %44 = tpu.matmul %40, %43, %cst_20 {dimension_numbers = #tpu.dot_dimension_numbers<[1], [0], [0], [1], [0, 0, 1, 1], [], []>} : vector<8x128xf32>, vector<128x384xf32>, vector<8x384xf32> -> vector<8x384xf32>
    %45 = arith.addf %44, %8 : vector<8x384xf32>
    %46 = vector.extract_strided_slice %42 {offsets = [0, 0], sizes = [8, 128], strides = [1, 1]} : vector<8x384xf32> to vector<8x128xf32>
    %47 = vector.extract_strided_slice %45 {offsets = [0, 0], sizes = [8, 128], strides = [1, 1]} : vector<8x384xf32> to vector<8x128xf32>
    %48 = arith.addf %46, %47 : vector<8x128xf32>
    %49 = arith.negf %48 : vector<8x128xf32>
    %50 = math.exp %49 : vector<8x128xf32>
    %cst_21 = arith.constant 1.000000e+00 : f32
    %51 = vector.broadcast %cst_21 : f32 to vector<8x128xf32>
    %52 = arith.addf %51, %50 : vector<8x128xf32>
    %53 = arith.divf %51, %52 : vector<8x128xf32>
    %54 = vector.extract_strided_slice %42 {offsets = [0, 128], sizes = [8, 128], strides = [1, 1]} : vector<8x384xf32> to vector<8x128xf32>
    %55 = vector.extract_strided_slice %45 {offsets = [0, 128], sizes = [8, 128], strides = [1, 1]} : vector<8x384xf32> to vector<8x128xf32>
    %56 = arith.addf %54, %55 : vector<8x128xf32>
    %57 = arith.negf %56 : vector<8x128xf32>
    %58 = math.exp %57 : vector<8x128xf32>
    %cst_22 = arith.constant 1.000000e+00 : f32
    %59 = vector.broadcast %cst_22 : f32 to vector<8x128xf32>
    %60 = arith.addf %59, %58 : vector<8x128xf32>
    %61 = arith.divf %59, %60 : vector<8x128xf32>
    %62 = vector.extract_strided_slice %42 {offsets = [0, 256], sizes = [8, 128], strides = [1, 1]} : vector<8x384xf32> to vector<8x128xf32>
    %63 = vector.extract_strided_slice %45 {offsets = [0, 256], sizes = [8, 128], strides = [1, 1]} : vector<8x384xf32> to vector<8x128xf32>
    %64 = arith.mulf %53, %63 : vector<8x128xf32>
    %65 = arith.addf %62, %64 : vector<8x128xf32>
    %66 = math.tanh %65 : vector<8x128xf32>
    %cst_23 = arith.constant 1.000000e+00 : f32
    %67 = vector.broadcast %cst_23 : f32 to vector<8x128xf32>
    %68 = arith.subf %67, %61 : vector<8x128xf32>
    %69 = arith.mulf %68, %66 : vector<8x128xf32>
    %70 = arith.mulf %61, %40 : vector<8x128xf32>
    %71 = arith.addf %69, %70 : vector<8x128xf32>
    %c8 = arith.constant 8 : index
    %c0_24 = arith.constant 0 : index
    %72 = vector.load %arg14[%c8, %c0_24] : memref<64x128xf32, #tpu.memory_space<vmem>>, vector<8x128xf32>
    tpu.vector_store %arg14[%c8, %c0_24], %71 {strides = array<i32>} : memref<64x128xf32, #tpu.memory_space<vmem>>, vector<8x128xf32>,
    %73 = vector.extract_strided_slice %5 {offsets = [16, 0], sizes = [8, 384], strides = [1, 1]} : vector<64x384xf32> to vector<8x384xf32>
    %c0_25 = arith.constant 0 : index
    %c0_26 = arith.constant 0 : index
    %74 = vector.load %arg3[%c0_25, %c0_26] : memref<128x384xf32, #tpu.memory_space<vmem>>, vector<128x384xf32>
    %cst_27 = arith.constant dense<0.000000e+00> : vector<8x384xf32>
    %75 = tpu.matmul %71, %74, %cst_27 {dimension_numbers = #tpu.dot_dimension_numbers<[1], [0], [0], [1], [0, 0, 1, 1], [], []>} : vector<8x128xf32>, vector<128x384xf32>, vector<8x384xf32> -> vector<8x384xf32>
    %76 = arith.addf %75, %8 : vector<8x384xf32>
    %77 = vector.extract_strided_slice %73 {offsets = [0, 0], sizes = [8, 128], strides = [1, 1]} : vector<8x384xf32> to vector<8x128xf32>
    %78 = vector.extract_strided_slice %76 {offsets = [0, 0], sizes = [8, 128], strides = [1, 1]} : vector<8x384xf32> to vector<8x128xf32>
    %79 = arith.addf %77, %78 : vector<8x128xf32>
    %80 = arith.negf %79 : vector<8x128xf32>
    %81 = math.exp %80 : vector<8x128xf32>
    %cst_28 = arith.constant 1.000000e+00 : f32
    %82 = vector.broadcast %cst_28 : f32 to vector<8x128xf32>
    %83 = arith.addf %82, %81 : vector<8x128xf32>
    %84 = arith.divf %82, %83 : vector<8x128xf32>
    %85 = vector.extract_strided_slice %73 {offsets = [0, 128], sizes = [8, 128], strides = [1, 1]} : vector<8x384xf32> to vector<8x128xf32>
    %86 = vector.extract_strided_slice %76 {offsets = [0, 128], sizes = [8, 128], strides = [1, 1]} : vector<8x384xf32> to vector<8x128xf32>
    %87 = arith.addf %85, %86 : vector<8x128xf32>
    %88 = arith.negf %87 : vector<8x128xf32>
    %89 = math.exp %88 : vector<8x128xf32>
    %cst_29 = arith.constant 1.000000e+00 : f32
    %90 = vector.broadcast %cst_29 : f32 to vector<8x128xf32>
    %91 = arith.addf %90, %89 : vector<8x128xf32>
    %92 = arith.divf %90, %91 : vector<8x128xf32>
    %93 = vector.extract_strided_slice %73 {offsets = [0, 256], sizes = [8, 128], strides = [1, 1]} : vector<8x384xf32> to vector<8x128xf32>
    %94 = vector.extract_strided_slice %76 {offsets = [0, 256], sizes = [8, 128], strides = [1, 1]} : vector<8x384xf32> to vector<8x128xf32>
    %95 = arith.mulf %84, %94 : vector<8x128xf32>
    %96 = arith.addf %93, %95 : vector<8x128xf32>
    %97 = math.tanh %96 : vector<8x128xf32>
    %cst_30 = arith.constant 1.000000e+00 : f32
    %98 = vector.broadcast %cst_30 : f32 to vector<8x128xf32>
    %99 = arith.subf %98, %92 : vector<8x128xf32>
    %100 = arith.mulf %99, %97 : vector<8x128xf32>
    %101 = arith.mulf %92, %71 : vector<8x128xf32>
    %102 = arith.addf %100, %101 : vector<8x128xf32>
    %c16 = arith.constant 16 : index
    %c0_31 = arith.constant 0 : index
    %103 = vector.load %arg14[%c16, %c0_31] : memref<64x128xf32, #tpu.memory_space<vmem>>, vector<8x128xf32>
    tpu.vector_store %arg14[%c16, %c0_31], %102 {strides = array<i32>} : memref<64x128xf32, #tpu.memory_space<vmem>>, vector<8x128xf32>,
    %104 = vector.extract_strided_slice %5 {offsets = [24, 0], sizes = [8, 384], strides = [1, 1]} : vector<64x384xf32> to vector<8x384xf32>
    %c0_32 = arith.constant 0 : index
    %c0_33 = arith.constant 0 : index
    %105 = vector.load %arg3[%c0_32, %c0_33] : memref<128x384xf32, #tpu.memory_space<vmem>>, vector<128x384xf32>
    %cst_34 = arith.constant dense<0.000000e+00> : vector<8x384xf32>
    %106 = tpu.matmul %102, %105, %cst_34 {dimension_numbers = #tpu.dot_dimension_numbers<[1], [0], [0], [1], [0, 0, 1, 1], [], []>} : vector<8x128xf32>, vector<128x384xf32>, vector<8x384xf32> -> vector<8x384xf32>
    %107 = arith.addf %106, %8 : vector<8x384xf32>
    %108 = vector.extract_strided_slice %104 {offsets = [0, 0], sizes = [8, 128], strides = [1, 1]} : vector<8x384xf32> to vector<8x128xf32>
    %109 = vector.extract_strided_slice %107 {offsets = [0, 0], sizes = [8, 128], strides = [1, 1]} : vector<8x384xf32> to vector<8x128xf32>
    %110 = arith.addf %108, %109 : vector<8x128xf32>
    %111 = arith.negf %110 : vector<8x128xf32>
    %112 = math.exp %111 : vector<8x128xf32>
    %cst_35 = arith.constant 1.000000e+00 : f32
    %113 = vector.broadcast %cst_35 : f32 to vector<8x128xf32>
    %114 = arith.addf %113, %112 : vector<8x128xf32>
    %115 = arith.divf %113, %114 : vector<8x128xf32>
    %116 = vector.extract_strided_slice %104 {offsets = [0, 128], sizes = [8, 128], strides = [1, 1]} : vector<8x384xf32> to vector<8x128xf32>
    %117 = vector.extract_strided_slice %107 {offsets = [0, 128], sizes = [8, 128], strides = [1, 1]} : vector<8x384xf32> to vector<8x128xf32>
    %118 = arith.addf %116, %117 : vector<8x128xf32>
    %119 = arith.negf %118 : vector<8x128xf32>
    %120 = math.exp %119 : vector<8x128xf32>
    %cst_36 = arith.constant 1.000000e+00 : f32
    %121 = vector.broadcast %cst_36 : f32 to vector<8x128xf32>
    %122 = arith.addf %121, %120 : vector<8x128xf32>
    %123 = arith.divf %121, %122 : vector<8x128xf32>
    %124 = vector.extract_strided_slice %104 {offsets = [0, 256], sizes = [8, 128], strides = [1, 1]} : vector<8x384xf32> to vector<8x128xf32>
    %125 = vector.extract_strided_slice %107 {offsets = [0, 256], sizes = [8, 128], strides = [1, 1]} : vector<8x384xf32> to vector<8x128xf32>
    %126 = arith.mulf %115, %125 : vector<8x128xf32>
    %127 = arith.addf %124, %126 : vector<8x128xf32>
    %128 = math.tanh %127 : vector<8x128xf32>
    %cst_37 = arith.constant 1.000000e+00 : f32
    %129 = vector.broadcast %cst_37 : f32 to vector<8x128xf32>
    %130 = arith.subf %129, %123 : vector<8x128xf32>
    %131 = arith.mulf %130, %128 : vector<8x128xf32>
    %132 = arith.mulf %123, %102 : vector<8x128xf32>
    %133 = arith.addf %131, %132 : vector<8x128xf32>
    %c24 = arith.constant 24 : index
    %c0_38 = arith.constant 0 : index
    %134 = vector.load %arg14[%c24, %c0_38] : memref<64x128xf32, #tpu.memory_space<vmem>>, vector<8x128xf32>
    tpu.vector_store %arg14[%c24, %c0_38], %133 {strides = array<i32>} : memref<64x128xf32, #tpu.memory_space<vmem>>, vector<8x128xf32>,
    %135 = vector.extract_strided_slice %5 {offsets = [32, 0], sizes = [8, 384], strides = [1, 1]} : vector<64x384xf32> to vector<8x384xf32>
    %c0_39 = arith.constant 0 : index
    %c0_40 = arith.constant 0 : index
    %136 = vector.load %arg3[%c0_39, %c0_40] : memref<128x384xf32, #tpu.memory_space<vmem>>, vector<128x384xf32>
    %cst_41 = arith.constant dense<0.000000e+00> : vector<8x384xf32>
    %137 = tpu.matmul %133, %136, %cst_41 {dimension_numbers = #tpu.dot_dimension_numbers<[1], [0], [0], [1], [0, 0, 1, 1], [], []>} : vector<8x128xf32>, vector<128x384xf32>, vector<8x384xf32> -> vector<8x384xf32>
    %138 = arith.addf %137, %8 : vector<8x384xf32>
    %139 = vector.extract_strided_slice %135 {offsets = [0, 0], sizes = [8, 128], strides = [1, 1]} : vector<8x384xf32> to vector<8x128xf32>
    %140 = vector.extract_strided_slice %138 {offsets = [0, 0], sizes = [8, 128], strides = [1, 1]} : vector<8x384xf32> to vector<8x128xf32>
    %141 = arith.addf %139, %140 : vector<8x128xf32>
    %142 = arith.negf %141 : vector<8x128xf32>
    %143 = math.exp %142 : vector<8x128xf32>
    %cst_42 = arith.constant 1.000000e+00 : f32
    %144 = vector.broadcast %cst_42 : f32 to vector<8x128xf32>
    %145 = arith.addf %144, %143 : vector<8x128xf32>
    %146 = arith.divf %144, %145 : vector<8x128xf32>
    %147 = vector.extract_strided_slice %135 {offsets = [0, 128], sizes = [8, 128], strides = [1, 1]} : vector<8x384xf32> to vector<8x128xf32>
    %148 = vector.extract_strided_slice %138 {offsets = [0, 128], sizes = [8, 128], strides = [1, 1]} : vector<8x384xf32> to vector<8x128xf32>
    %149 = arith.addf %147, %148 : vector<8x128xf32>
    %150 = arith.negf %149 : vector<8x128xf32>
    %151 = math.exp %150 : vector<8x128xf32>
    %cst_43 = arith.constant 1.000000e+00 : f32
    %152 = vector.broadcast %cst_43 : f32 to vector<8x128xf32>
    %153 = arith.addf %152, %151 : vector<8x128xf32>
    %154 = arith.divf %152, %153 : vector<8x128xf32>
    %155 = vector.extract_strided_slice %135 {offsets = [0, 256], sizes = [8, 128], strides = [1, 1]} : vector<8x384xf32> to vector<8x128xf32>
    %156 = vector.extract_strided_slice %138 {offsets = [0, 256], sizes = [8, 128], strides = [1, 1]} : vector<8x384xf32> to vector<8x128xf32>
    %157 = arith.mulf %146, %156 : vector<8x128xf32>
    %158 = arith.addf %155, %157 : vector<8x128xf32>
    %159 = math.tanh %158 : vector<8x128xf32>
    %cst_44 = arith.constant 1.000000e+00 : f32
    %160 = vector.broadcast %cst_44 : f32 to vector<8x128xf32>
    %161 = arith.subf %160, %154 : vector<8x128xf32>
    %162 = arith.mulf %161, %159 : vector<8x128xf32>
    %163 = arith.mulf %154, %133 : vector<8x128xf32>
    %164 = arith.addf %162, %163 : vector<8x128xf32>
    %c32 = arith.constant 32 : index
    %c0_45 = arith.constant 0 : index
    %165 = vector.load %arg14[%c32, %c0_45] : memref<64x128xf32, #tpu.memory_space<vmem>>, vector<8x128xf32>
    tpu.vector_store %arg14[%c32, %c0_45], %164 {strides = array<i32>} : memref<64x128xf32, #tpu.memory_space<vmem>>, vector<8x128xf32>,
    %166 = vector.extract_strided_slice %5 {offsets = [40, 0], sizes = [8, 384], strides = [1, 1]} : vector<64x384xf32> to vector<8x384xf32>
    %c0_46 = arith.constant 0 : index
    %c0_47 = arith.constant 0 : index
    %167 = vector.load %arg3[%c0_46, %c0_47] : memref<128x384xf32, #tpu.memory_space<vmem>>, vector<128x384xf32>
    %cst_48 = arith.constant dense<0.000000e+00> : vector<8x384xf32>
    %168 = tpu.matmul %164, %167, %cst_48 {dimension_numbers = #tpu.dot_dimension_numbers<[1], [0], [0], [1], [0, 0, 1, 1], [], []>} : vector<8x128xf32>, vector<128x384xf32>, vector<8x384xf32> -> vector<8x384xf32>
    %169 = arith.addf %168, %8 : vector<8x384xf32>
    %170 = vector.extract_strided_slice %166 {offsets = [0, 0], sizes = [8, 128], strides = [1, 1]} : vector<8x384xf32> to vector<8x128xf32>
    %171 = vector.extract_strided_slice %169 {offsets = [0, 0], sizes = [8, 128], strides = [1, 1]} : vector<8x384xf32> to vector<8x128xf32>
    %172 = arith.addf %170, %171 : vector<8x128xf32>
    %173 = arith.negf %172 : vector<8x128xf32>
    %174 = math.exp %173 : vector<8x128xf32>
    %cst_49 = arith.constant 1.000000e+00 : f32
    %175 = vector.broadcast %cst_49 : f32 to vector<8x128xf32>
    %176 = arith.addf %175, %174 : vector<8x128xf32>
    %177 = arith.divf %175, %176 : vector<8x128xf32>
    %178 = vector.extract_strided_slice %166 {offsets = [0, 128], sizes = [8, 128], strides = [1, 1]} : vector<8x384xf32> to vector<8x128xf32>
    %179 = vector.extract_strided_slice %169 {offsets = [0, 128], sizes = [8, 128], strides = [1, 1]} : vector<8x384xf32> to vector<8x128xf32>
    %180 = arith.addf %178, %179 : vector<8x128xf32>
    %181 = arith.negf %180 : vector<8x128xf32>
    %182 = math.exp %181 : vector<8x128xf32>
    %cst_50 = arith.constant 1.000000e+00 : f32
    %183 = vector.broadcast %cst_50 : f32 to vector<8x128xf32>
    %184 = arith.addf %183, %182 : vector<8x128xf32>
    %185 = arith.divf %183, %184 : vector<8x128xf32>
    %186 = vector.extract_strided_slice %166 {offsets = [0, 256], sizes = [8, 128], strides = [1, 1]} : vector<8x384xf32> to vector<8x128xf32>
    %187 = vector.extract_strided_slice %169 {offsets = [0, 256], sizes = [8, 128], strides = [1, 1]} : vector<8x384xf32> to vector<8x128xf32>
    %188 = arith.mulf %177, %187 : vector<8x128xf32>
    %189 = arith.addf %186, %188 : vector<8x128xf32>
    %190 = math.tanh %189 : vector<8x128xf32>
    %cst_51 = arith.constant 1.000000e+00 : f32
    %191 = vector.broadcast %cst_51 : f32 to vector<8x128xf32>
    %192 = arith.subf %191, %185 : vector<8x128xf32>
    %193 = arith.mulf %192, %190 : vector<8x128xf32>
    %194 = arith.mulf %185, %164 : vector<8x128xf32>
    %195 = arith.addf %193, %194 : vector<8x128xf32>
    %c40 = arith.constant 40 : index
    %c0_52 = arith.constant 0 : index
    %196 = vector.load %arg14[%c40, %c0_52] : memref<64x128xf32, #tpu.memory_space<vmem>>, vector<8x128xf32>
    tpu.vector_store %arg14[%c40, %c0_52], %195 {strides = array<i32>} : memref<64x128xf32, #tpu.memory_space<vmem>>, vector<8x128xf32>,
    %197 = vector.extract_strided_slice %5 {offsets = [48, 0], sizes = [8, 384], strides = [1, 1]} : vector<64x384xf32> to vector<8x384xf32>
    %c0_53 = arith.constant 0 : index
    %c0_54 = arith.constant 0 : index
    %198 = vector.load %arg3[%c0_53, %c0_54] : memref<128x384xf32, #tpu.memory_space<vmem>>, vector<128x384xf32>
    %cst_55 = arith.constant dense<0.000000e+00> : vector<8x384xf32>
    %199 = tpu.matmul %195, %198, %cst_55 {dimension_numbers = #tpu.dot_dimension_numbers<[1], [0], [0], [1], [0, 0, 1, 1], [], []>} : vector<8x128xf32>, vector<128x384xf32>, vector<8x384xf32> -> vector<8x384xf32>
    %200 = arith.addf %199, %8 : vector<8x384xf32>
    %201 = vector.extract_strided_slice %197 {offsets = [0, 0], sizes = [8, 128], strides = [1, 1]} : vector<8x384xf32> to vector<8x128xf32>
    %202 = vector.extract_strided_slice %200 {offsets = [0, 0], sizes = [8, 128], strides = [1, 1]} : vector<8x384xf32> to vector<8x128xf32>
    %203 = arith.addf %201, %202 : vector<8x128xf32>
    %204 = arith.negf %203 : vector<8x128xf32>
    %205 = math.exp %204 : vector<8x128xf32>
    %cst_56 = arith.constant 1.000000e+00 : f32
    %206 = vector.broadcast %cst_56 : f32 to vector<8x128xf32>
    %207 = arith.addf %206, %205 : vector<8x128xf32>
    %208 = arith.divf %206, %207 : vector<8x128xf32>
    %209 = vector.extract_strided_slice %197 {offsets = [0, 128], sizes = [8, 128], strides = [1, 1]} : vector<8x384xf32> to vector<8x128xf32>
    %210 = vector.extract_strided_slice %200 {offsets = [0, 128], sizes = [8, 128], strides = [1, 1]} : vector<8x384xf32> to vector<8x128xf32>
    %211 = arith.addf %209, %210 : vector<8x128xf32>
    %212 = arith.negf %211 : vector<8x128xf32>
    %213 = math.exp %212 : vector<8x128xf32>
    %cst_57 = arith.constant 1.000000e+00 : f32
    %214 = vector.broadcast %cst_57 : f32 to vector<8x128xf32>
    %215 = arith.addf %214, %213 : vector<8x128xf32>
    %216 = arith.divf %214, %215 : vector<8x128xf32>
    %217 = vector.extract_strided_slice %197 {offsets = [0, 256], sizes = [8, 128], strides = [1, 1]} : vector<8x384xf32> to vector<8x128xf32>
    %218 = vector.extract_strided_slice %200 {offsets = [0, 256], sizes = [8, 128], strides = [1, 1]} : vector<8x384xf32> to vector<8x128xf32>
    %219 = arith.mulf %208, %218 : vector<8x128xf32>
    %220 = arith.addf %217, %219 : vector<8x128xf32>
    %221 = math.tanh %220 : vector<8x128xf32>
    %cst_58 = arith.constant 1.000000e+00 : f32
    %222 = vector.broadcast %cst_58 : f32 to vector<8x128xf32>
    %223 = arith.subf %222, %216 : vector<8x128xf32>
    %224 = arith.mulf %223, %221 : vector<8x128xf32>
    %225 = arith.mulf %216, %195 : vector<8x128xf32>
    %226 = arith.addf %224, %225 : vector<8x128xf32>
    %c48 = arith.constant 48 : index
    %c0_59 = arith.constant 0 : index
    %227 = vector.load %arg14[%c48, %c0_59] : memref<64x128xf32, #tpu.memory_space<vmem>>, vector<8x128xf32>
    tpu.vector_store %arg14[%c48, %c0_59], %226 {strides = array<i32>} : memref<64x128xf32, #tpu.memory_space<vmem>>, vector<8x128xf32>,
    %228 = vector.extract_strided_slice %5 {offsets = [56, 0], sizes = [8, 384], strides = [1, 1]} : vector<64x384xf32> to vector<8x384xf32>
    %c0_60 = arith.constant 0 : index
    %c0_61 = arith.constant 0 : index
    %229 = vector.load %arg3[%c0_60, %c0_61] : memref<128x384xf32, #tpu.memory_space<vmem>>, vector<128x384xf32>
    %cst_62 = arith.constant dense<0.000000e+00> : vector<8x384xf32>
    %230 = tpu.matmul %226, %229, %cst_62 {dimension_numbers = #tpu.dot_dimension_numbers<[1], [0], [0], [1], [0, 0, 1, 1], [], []>} : vector<8x128xf32>, vector<128x384xf32>, vector<8x384xf32> -> vector<8x384xf32>
    %231 = arith.addf %230, %8 : vector<8x384xf32>
    %232 = vector.extract_strided_slice %228 {offsets = [0, 0], sizes = [8, 128], strides = [1, 1]} : vector<8x384xf32> to vector<8x128xf32>
    %233 = vector.extract_strided_slice %231 {offsets = [0, 0], sizes = [8, 128], strides = [1, 1]} : vector<8x384xf32> to vector<8x128xf32>
    %234 = arith.addf %232, %233 : vector<8x128xf32>
    %235 = arith.negf %234 : vector<8x128xf32>
    %236 = math.exp %235 : vector<8x128xf32>
    %cst_63 = arith.constant 1.000000e+00 : f32
    %237 = vector.broadcast %cst_63 : f32 to vector<8x128xf32>
    %238 = arith.addf %237, %236 : vector<8x128xf32>
    %239 = arith.divf %237, %238 : vector<8x128xf32>
    %240 = vector.extract_strided_slice %228 {offsets = [0, 128], sizes = [8, 128], strides = [1, 1]} : vector<8x384xf32> to vector<8x128xf32>
    %241 = vector.extract_strided_slice %231 {offsets = [0, 128], sizes = [8, 128], strides = [1, 1]} : vector<8x384xf32> to vector<8x128xf32>
    %242 = arith.addf %240, %241 : vector<8x128xf32>
    %243 = arith.negf %242 : vector<8x128xf32>
    %244 = math.exp %243 : vector<8x128xf32>
    %cst_64 = arith.constant 1.000000e+00 : f32
    %245 = vector.broadcast %cst_64 : f32 to vector<8x128xf32>
    %246 = arith.addf %245, %244 : vector<8x128xf32>
    %247 = arith.divf %245, %246 : vector<8x128xf32>
    %248 = vector.extract_strided_slice %228 {offsets = [0, 256], sizes = [8, 128], strides = [1, 1]} : vector<8x384xf32> to vector<8x128xf32>
    %249 = vector.extract_strided_slice %231 {offsets = [0, 256], sizes = [8, 128], strides = [1, 1]} : vector<8x384xf32> to vector<8x128xf32>
    %250 = arith.mulf %239, %249 : vector<8x128xf32>
    %251 = arith.addf %248, %250 : vector<8x128xf32>
    %252 = math.tanh %251 : vector<8x128xf32>
    %cst_65 = arith.constant 1.000000e+00 : f32
    %253 = vector.broadcast %cst_65 : f32 to vector<8x128xf32>
    %254 = arith.subf %253, %247 : vector<8x128xf32>
    %255 = arith.mulf %254, %252 : vector<8x128xf32>
    %256 = arith.mulf %247, %226 : vector<8x128xf32>
    %257 = arith.addf %255, %256 : vector<8x128xf32>
    %c56 = arith.constant 56 : index
    %c0_66 = arith.constant 0 : index
    %258 = vector.load %arg14[%c56, %c0_66] : memref<64x128xf32, #tpu.memory_space<vmem>>, vector<8x128xf32>
    tpu.vector_store %arg14[%c56, %c0_66], %257 {strides = array<i32>} : memref<64x128xf32, #tpu.memory_space<vmem>>, vector<8x128xf32>,
    %c0_67 = arith.constant 0 : index
    %c0_68 = arith.constant 0 : index
    %c0_69 = arith.constant 0 : index
    %259 = vector.load %arg13[%c0_67, %c0_68, %c0_69] : memref<2x8x128xf32, #tpu.memory_space<vmem>>, vector<1x8x128xf32>
    %260 = vector.shape_cast %259 : vector<1x8x128xf32> to vector<8x128xf32>
    %261 = vector.shape_cast %257 : vector<8x128xf32> to vector<1x8x128xf32>
    tpu.vector_store %arg13[%c0_67, %c0_68, %c0_69], %261 {strides = array<i32>} : memref<2x8x128xf32, #tpu.memory_space<vmem>>, vector<1x8x128xf32>,
    %c0_70 = arith.constant 0 : index
    %c0_71 = arith.constant 0 : index
    %262 = vector.load %arg14[%c0_70, %c0_71] : memref<64x128xf32, #tpu.memory_space<vmem>>, vector<64x128xf32>
    %c0_72 = arith.constant 0 : index
    %c0_73 = arith.constant 0 : index
    %263 = vector.load %arg6[%c0_72, %c0_73] : memref<128x384xf32, #tpu.memory_space<vmem>>, vector<128x384xf32>
    %cst_74 = arith.constant dense<0.000000e+00> : vector<64x384xf32>
    %264 = tpu.matmul %262, %263, %cst_74 {dimension_numbers = #tpu.dot_dimension_numbers<[1], [0], [0], [1], [0, 0, 1, 1], [], []>} : vector<64x128xf32>, vector<128x384xf32>, vector<64x384xf32> -> vector<64x384xf32>
    %c0_75 = arith.constant 0 : index
    %c0_76 = arith.constant 0 : index
    %265 = vector.load %arg8[%c0_75, %c0_76] : memref<1x384xf32, #tpu.memory_space<vmem>>, vector<1x384xf32>
    %266 = vector.broadcast %265 : vector<1x384xf32> to vector<64x384xf32>
    %267 = arith.addf %264, %266 : vector<64x384xf32>
    %c0_77 = arith.constant 0 : index
    %c0_78 = arith.constant 0 : index
    %268 = vector.load %arg9[%c0_77, %c0_78] : memref<1x384xf32, #tpu.memory_space<vmem>>, vector<1x384xf32>
    %269 = vector.shape_cast %268 : vector<1x384xf32> to vector<1x384xf32>
    %270 = vector.broadcast %269 : vector<1x384xf32> to vector<8x384xf32>
    %c1 = arith.constant 1 : index
    %c0_79 = arith.constant 0 : index
    %c0_80 = arith.constant 0 : index
    %271 = vector.load %arg1[%c1, %c0_79, %c0_80] : memref<2x8x128xf32, #tpu.memory_space<vmem>>, vector<1x8x128xf32>
    %272 = vector.shape_cast %271 : vector<1x8x128xf32> to vector<8x128xf32>
    %273 = vector.extract_strided_slice %267 {offsets = [0, 0], sizes = [8, 384], strides = [1, 1]} : vector<64x384xf32> to vector<8x384xf32>
    %c0_81 = arith.constant 0 : index
    %c0_82 = arith.constant 0 : index
    %274 = vector.load %arg7[%c0_81, %c0_82] : memref<128x384xf32, #tpu.memory_space<vmem>>, vector<128x384xf32>
    %cst_83 = arith.constant dense<0.000000e+00> : vector<8x384xf32>
    %275 = tpu.matmul %272, %274, %cst_83 {dimension_numbers = #tpu.dot_dimension_numbers<[1], [0], [0], [1], [0, 0, 1, 1], [], []>} : vector<8x128xf32>, vector<128x384xf32>, vector<8x384xf32> -> vector<8x384xf32>
    %276 = arith.addf %275, %270 : vector<8x384xf32>
    %277 = vector.extract_strided_slice %273 {offsets = [0, 0], sizes = [8, 128], strides = [1, 1]} : vector<8x384xf32> to vector<8x128xf32>
    %278 = vector.extract_strided_slice %276 {offsets = [0, 0], sizes = [8, 128], strides = [1, 1]} : vector<8x384xf32> to vector<8x128xf32>
    %279 = arith.addf %277, %278 : vector<8x128xf32>
    %280 = arith.negf %279 : vector<8x128xf32>
    %281 = math.exp %280 : vector<8x128xf32>
    %cst_84 = arith.constant 1.000000e+00 : f32
    %282 = vector.broadcast %cst_84 : f32 to vector<8x128xf32>
    %283 = arith.addf %282, %281 : vector<8x128xf32>
    %284 = arith.divf %282, %283 : vector<8x128xf32>
    %285 = vector.extract_strided_slice %273 {offsets = [0, 128], sizes = [8, 128], strides = [1, 1]} : vector<8x384xf32> to vector<8x128xf32>
    %286 = vector.extract_strided_slice %276 {offsets = [0, 128], sizes = [8, 128], strides = [1, 1]} : vector<8x384xf32> to vector<8x128xf32>
    %287 = arith.addf %285, %286 : vector<8x128xf32>
    %288 = arith.negf %287 : vector<8x128xf32>
    %289 = math.exp %288 : vector<8x128xf32>
    %cst_85 = arith.constant 1.000000e+00 : f32
    %290 = vector.broadcast %cst_85 : f32 to vector<8x128xf32>
    %291 = arith.addf %290, %289 : vector<8x128xf32>
    %292 = arith.divf %290, %291 : vector<8x128xf32>
    %293 = vector.extract_strided_slice %273 {offsets = [0, 256], sizes = [8, 128], strides = [1, 1]} : vector<8x384xf32> to vector<8x128xf32>
    %294 = vector.extract_strided_slice %276 {offsets = [0, 256], sizes = [8, 128], strides = [1, 1]} : vector<8x384xf32> to vector<8x128xf32>
    %295 = arith.mulf %284, %294 : vector<8x128xf32>
    %296 = arith.addf %293, %295 : vector<8x128xf32>
    %297 = math.tanh %296 : vector<8x128xf32>
    %cst_86 = arith.constant 1.000000e+00 : f32
    %298 = vector.broadcast %cst_86 : f32 to vector<8x128xf32>
    %299 = arith.subf %298, %292 : vector<8x128xf32>
    %300 = arith.mulf %299, %297 : vector<8x128xf32>
    %301 = arith.mulf %292, %272 : vector<8x128xf32>
    %302 = arith.addf %300, %301 : vector<8x128xf32>
    %c0_87 = arith.constant 0 : index
    %c0_88 = arith.constant 0 : index
    %303 = vector.load %arg14[%c0_87, %c0_88] : memref<64x128xf32, #tpu.memory_space<vmem>>, vector<8x128xf32>
    tpu.vector_store %arg14[%c0_87, %c0_88], %302 {strides = array<i32>} : memref<64x128xf32, #tpu.memory_space<vmem>>, vector<8x128xf32>,
    %304 = vector.extract_strided_slice %267 {offsets = [8, 0], sizes = [8, 384], strides = [1, 1]} : vector<64x384xf32> to vector<8x384xf32>
    %c0_89 = arith.constant 0 : index
    %c0_90 = arith.constant 0 : index
    %305 = vector.load %arg7[%c0_89, %c0_90] : memref<128x384xf32, #tpu.memory_space<vmem>>, vector<128x384xf32>
    %cst_91 = arith.constant dense<0.000000e+00> : vector<8x384xf32>
    %306 = tpu.matmul %302, %305, %cst_91 {dimension_numbers = #tpu.dot_dimension_numbers<[1], [0], [0], [1], [0, 0, 1, 1], [], []>} : vector<8x128xf32>, vector<128x384xf32>, vector<8x384xf32> -> vector<8x384xf32>
    %307 = arith.addf %306, %270 : vector<8x384xf32>
    %308 = vector.extract_strided_slice %304 {offsets = [0, 0], sizes = [8, 128], strides = [1, 1]} : vector<8x384xf32> to vector<8x128xf32>
    %309 = vector.extract_strided_slice %307 {offsets = [0, 0], sizes = [8, 128], strides = [1, 1]} : vector<8x384xf32> to vector<8x128xf32>
    %310 = arith.addf %308, %309 : vector<8x128xf32>
    %311 = arith.negf %310 : vector<8x128xf32>
    %312 = math.exp %311 : vector<8x128xf32>
    %cst_92 = arith.constant 1.000000e+00 : f32
    %313 = vector.broadcast %cst_92 : f32 to vector<8x128xf32>
    %314 = arith.addf %313, %312 : vector<8x128xf32>
    %315 = arith.divf %313, %314 : vector<8x128xf32>
    %316 = vector.extract_strided_slice %304 {offsets = [0, 128], sizes = [8, 128], strides = [1, 1]} : vector<8x384xf32> to vector<8x128xf32>
    %317 = vector.extract_strided_slice %307 {offsets = [0, 128], sizes = [8, 128], strides = [1, 1]} : vector<8x384xf32> to vector<8x128xf32>
    %318 = arith.addf %316, %317 : vector<8x128xf32>
    %319 = arith.negf %318 : vector<8x128xf32>
    %320 = math.exp %319 : vector<8x128xf32>
    %cst_93 = arith.constant 1.000000e+00 : f32
    %321 = vector.broadcast %cst_93 : f32 to vector<8x128xf32>
    %322 = arith.addf %321, %320 : vector<8x128xf32>
    %323 = arith.divf %321, %322 : vector<8x128xf32>
    %324 = vector.extract_strided_slice %304 {offsets = [0, 256], sizes = [8, 128], strides = [1, 1]} : vector<8x384xf32> to vector<8x128xf32>
    %325 = vector.extract_strided_slice %307 {offsets = [0, 256], sizes = [8, 128], strides = [1, 1]} : vector<8x384xf32> to vector<8x128xf32>
    %326 = arith.mulf %315, %325 : vector<8x128xf32>
    %327 = arith.addf %324, %326 : vector<8x128xf32>
    %328 = math.tanh %327 : vector<8x128xf32>
    %cst_94 = arith.constant 1.000000e+00 : f32
    %329 = vector.broadcast %cst_94 : f32 to vector<8x128xf32>
    %330 = arith.subf %329, %323 : vector<8x128xf32>
    %331 = arith.mulf %330, %328 : vector<8x128xf32>
    %332 = arith.mulf %323, %302 : vector<8x128xf32>
    %333 = arith.addf %331, %332 : vector<8x128xf32>
    %c8_95 = arith.constant 8 : index
    %c0_96 = arith.constant 0 : index
    %334 = vector.load %arg14[%c8_95, %c0_96] : memref<64x128xf32, #tpu.memory_space<vmem>>, vector<8x128xf32>
    tpu.vector_store %arg14[%c8_95, %c0_96], %333 {strides = array<i32>} : memref<64x128xf32, #tpu.memory_space<vmem>>, vector<8x128xf32>,
    %335 = vector.extract_strided_slice %267 {offsets = [16, 0], sizes = [8, 384], strides = [1, 1]} : vector<64x384xf32> to vector<8x384xf32>
    %c0_97 = arith.constant 0 : index
    %c0_98 = arith.constant 0 : index
    %336 = vector.load %arg7[%c0_97, %c0_98] : memref<128x384xf32, #tpu.memory_space<vmem>>, vector<128x384xf32>
    %cst_99 = arith.constant dense<0.000000e+00> : vector<8x384xf32>
    %337 = tpu.matmul %333, %336, %cst_99 {dimension_numbers = #tpu.dot_dimension_numbers<[1], [0], [0], [1], [0, 0, 1, 1], [], []>} : vector<8x128xf32>, vector<128x384xf32>, vector<8x384xf32> -> vector<8x384xf32>
    %338 = arith.addf %337, %270 : vector<8x384xf32>
    %339 = vector.extract_strided_slice %335 {offsets = [0, 0], sizes = [8, 128], strides = [1, 1]} : vector<8x384xf32> to vector<8x128xf32>
    %340 = vector.extract_strided_slice %338 {offsets = [0, 0], sizes = [8, 128], strides = [1, 1]} : vector<8x384xf32> to vector<8x128xf32>
    %341 = arith.addf %339, %340 : vector<8x128xf32>
    %342 = arith.negf %341 : vector<8x128xf32>
    %343 = math.exp %342 : vector<8x128xf32>
    %cst_100 = arith.constant 1.000000e+00 : f32
    %344 = vector.broadcast %cst_100 : f32 to vector<8x128xf32>
    %345 = arith.addf %344, %343 : vector<8x128xf32>
    %346 = arith.divf %344, %345 : vector<8x128xf32>
    %347 = vector.extract_strided_slice %335 {offsets = [0, 128], sizes = [8, 128], strides = [1, 1]} : vector<8x384xf32> to vector<8x128xf32>
    %348 = vector.extract_strided_slice %338 {offsets = [0, 128], sizes = [8, 128], strides = [1, 1]} : vector<8x384xf32> to vector<8x128xf32>
    %349 = arith.addf %347, %348 : vector<8x128xf32>
    %350 = arith.negf %349 : vector<8x128xf32>
    %351 = math.exp %350 : vector<8x128xf32>
    %cst_101 = arith.constant 1.000000e+00 : f32
    %352 = vector.broadcast %cst_101 : f32 to vector<8x128xf32>
    %353 = arith.addf %352, %351 : vector<8x128xf32>
    %354 = arith.divf %352, %353 : vector<8x128xf32>
    %355 = vector.extract_strided_slice %335 {offsets = [0, 256], sizes = [8, 128], strides = [1, 1]} : vector<8x384xf32> to vector<8x128xf32>
    %356 = vector.extract_strided_slice %338 {offsets = [0, 256], sizes = [8, 128], strides = [1, 1]} : vector<8x384xf32> to vector<8x128xf32>
    %357 = arith.mulf %346, %356 : vector<8x128xf32>
    %358 = arith.addf %355, %357 : vector<8x128xf32>
    %359 = math.tanh %358 : vector<8x128xf32>
    %cst_102 = arith.constant 1.000000e+00 : f32
    %360 = vector.broadcast %cst_102 : f32 to vector<8x128xf32>
    %361 = arith.subf %360, %354 : vector<8x128xf32>
    %362 = arith.mulf %361, %359 : vector<8x128xf32>
    %363 = arith.mulf %354, %333 : vector<8x128xf32>
    %364 = arith.addf %362, %363 : vector<8x128xf32>
    %c16_103 = arith.constant 16 : index
    %c0_104 = arith.constant 0 : index
    %365 = vector.load %arg14[%c16_103, %c0_104] : memref<64x128xf32, #tpu.memory_space<vmem>>, vector<8x128xf32>
    tpu.vector_store %arg14[%c16_103, %c0_104], %364 {strides = array<i32>} : memref<64x128xf32, #tpu.memory_space<vmem>>, vector<8x128xf32>,
    %366 = vector.extract_strided_slice %267 {offsets = [24, 0], sizes = [8, 384], strides = [1, 1]} : vector<64x384xf32> to vector<8x384xf32>
    %c0_105 = arith.constant 0 : index
    %c0_106 = arith.constant 0 : index
    %367 = vector.load %arg7[%c0_105, %c0_106] : memref<128x384xf32, #tpu.memory_space<vmem>>, vector<128x384xf32>
    %cst_107 = arith.constant dense<0.000000e+00> : vector<8x384xf32>
    %368 = tpu.matmul %364, %367, %cst_107 {dimension_numbers = #tpu.dot_dimension_numbers<[1], [0], [0], [1], [0, 0, 1, 1], [], []>} : vector<8x128xf32>, vector<128x384xf32>, vector<8x384xf32> -> vector<8x384xf32>
    %369 = arith.addf %368, %270 : vector<8x384xf32>
    %370 = vector.extract_strided_slice %366 {offsets = [0, 0], sizes = [8, 128], strides = [1, 1]} : vector<8x384xf32> to vector<8x128xf32>
    %371 = vector.extract_strided_slice %369 {offsets = [0, 0], sizes = [8, 128], strides = [1, 1]} : vector<8x384xf32> to vector<8x128xf32>
    %372 = arith.addf %370, %371 : vector<8x128xf32>
    %373 = arith.negf %372 : vector<8x128xf32>
    %374 = math.exp %373 : vector<8x128xf32>
    %cst_108 = arith.constant 1.000000e+00 : f32
    %375 = vector.broadcast %cst_108 : f32 to vector<8x128xf32>
    %376 = arith.addf %375, %374 : vector<8x128xf32>
    %377 = arith.divf %375, %376 : vector<8x128xf32>
    %378 = vector.extract_strided_slice %366 {offsets = [0, 128], sizes = [8, 128], strides = [1, 1]} : vector<8x384xf32> to vector<8x128xf32>
    %379 = vector.extract_strided_slice %369 {offsets = [0, 128], sizes = [8, 128], strides = [1, 1]} : vector<8x384xf32> to vector<8x128xf32>
    %380 = arith.addf %378, %379 : vector<8x128xf32>
    %381 = arith.negf %380 : vector<8x128xf32>
    %382 = math.exp %381 : vector<8x128xf32>
    %cst_109 = arith.constant 1.000000e+00 : f32
    %383 = vector.broadcast %cst_109 : f32 to vector<8x128xf32>
    %384 = arith.addf %383, %382 : vector<8x128xf32>
    %385 = arith.divf %383, %384 : vector<8x128xf32>
    %386 = vector.extract_strided_slice %366 {offsets = [0, 256], sizes = [8, 128], strides = [1, 1]} : vector<8x384xf32> to vector<8x128xf32>
    %387 = vector.extract_strided_slice %369 {offsets = [0, 256], sizes = [8, 128], strides = [1, 1]} : vector<8x384xf32> to vector<8x128xf32>
    %388 = arith.mulf %377, %387 : vector<8x128xf32>
    %389 = arith.addf %386, %388 : vector<8x128xf32>
    %390 = math.tanh %389 : vector<8x128xf32>
    %cst_110 = arith.constant 1.000000e+00 : f32
    %391 = vector.broadcast %cst_110 : f32 to vector<8x128xf32>
    %392 = arith.subf %391, %385 : vector<8x128xf32>
    %393 = arith.mulf %392, %390 : vector<8x128xf32>
    %394 = arith.mulf %385, %364 : vector<8x128xf32>
    %395 = arith.addf %393, %394 : vector<8x128xf32>
    %c24_111 = arith.constant 24 : index
    %c0_112 = arith.constant 0 : index
    %396 = vector.load %arg14[%c24_111, %c0_112] : memref<64x128xf32, #tpu.memory_space<vmem>>, vector<8x128xf32>
    tpu.vector_store %arg14[%c24_111, %c0_112], %395 {strides = array<i32>} : memref<64x128xf32, #tpu.memory_space<vmem>>, vector<8x128xf32>,
    %397 = vector.extract_strided_slice %267 {offsets = [32, 0], sizes = [8, 384], strides = [1, 1]} : vector<64x384xf32> to vector<8x384xf32>
    %c0_113 = arith.constant 0 : index
    %c0_114 = arith.constant 0 : index
    %398 = vector.load %arg7[%c0_113, %c0_114] : memref<128x384xf32, #tpu.memory_space<vmem>>, vector<128x384xf32>
    %cst_115 = arith.constant dense<0.000000e+00> : vector<8x384xf32>
    %399 = tpu.matmul %395, %398, %cst_115 {dimension_numbers = #tpu.dot_dimension_numbers<[1], [0], [0], [1], [0, 0, 1, 1], [], []>} : vector<8x128xf32>, vector<128x384xf32>, vector<8x384xf32> -> vector<8x384xf32>
    %400 = arith.addf %399, %270 : vector<8x384xf32>
    %401 = vector.extract_strided_slice %397 {offsets = [0, 0], sizes = [8, 128], strides = [1, 1]} : vector<8x384xf32> to vector<8x128xf32>
    %402 = vector.extract_strided_slice %400 {offsets = [0, 0], sizes = [8, 128], strides = [1, 1]} : vector<8x384xf32> to vector<8x128xf32>
    %403 = arith.addf %401, %402 : vector<8x128xf32>
    %404 = arith.negf %403 : vector<8x128xf32>
    %405 = math.exp %404 : vector<8x128xf32>
    %cst_116 = arith.constant 1.000000e+00 : f32
    %406 = vector.broadcast %cst_116 : f32 to vector<8x128xf32>
    %407 = arith.addf %406, %405 : vector<8x128xf32>
    %408 = arith.divf %406, %407 : vector<8x128xf32>
    %409 = vector.extract_strided_slice %397 {offsets = [0, 128], sizes = [8, 128], strides = [1, 1]} : vector<8x384xf32> to vector<8x128xf32>
    %410 = vector.extract_strided_slice %400 {offsets = [0, 128], sizes = [8, 128], strides = [1, 1]} : vector<8x384xf32> to vector<8x128xf32>
    %411 = arith.addf %409, %410 : vector<8x128xf32>
    %412 = arith.negf %411 : vector<8x128xf32>
    %413 = math.exp %412 : vector<8x128xf32>
    %cst_117 = arith.constant 1.000000e+00 : f32
    %414 = vector.broadcast %cst_117 : f32 to vector<8x128xf32>
    %415 = arith.addf %414, %413 : vector<8x128xf32>
    %416 = arith.divf %414, %415 : vector<8x128xf32>
    %417 = vector.extract_strided_slice %397 {offsets = [0, 256], sizes = [8, 128], strides = [1, 1]} : vector<8x384xf32> to vector<8x128xf32>
    %418 = vector.extract_strided_slice %400 {offsets = [0, 256], sizes = [8, 128], strides = [1, 1]} : vector<8x384xf32> to vector<8x128xf32>
    %419 = arith.mulf %408, %418 : vector<8x128xf32>
    %420 = arith.addf %417, %419 : vector<8x128xf32>
    %421 = math.tanh %420 : vector<8x128xf32>
    %cst_118 = arith.constant 1.000000e+00 : f32
    %422 = vector.broadcast %cst_118 : f32 to vector<8x128xf32>
    %423 = arith.subf %422, %416 : vector<8x128xf32>
    %424 = arith.mulf %423, %421 : vector<8x128xf32>
    %425 = arith.mulf %416, %395 : vector<8x128xf32>
    %426 = arith.addf %424, %425 : vector<8x128xf32>
    %c32_119 = arith.constant 32 : index
    %c0_120 = arith.constant 0 : index
    %427 = vector.load %arg14[%c32_119, %c0_120] : memref<64x128xf32, #tpu.memory_space<vmem>>, vector<8x128xf32>
    tpu.vector_store %arg14[%c32_119, %c0_120], %426 {strides = array<i32>} : memref<64x128xf32, #tpu.memory_space<vmem>>, vector<8x128xf32>,
    %428 = vector.extract_strided_slice %267 {offsets = [40, 0], sizes = [8, 384], strides = [1, 1]} : vector<64x384xf32> to vector<8x384xf32>
    %c0_121 = arith.constant 0 : index
    %c0_122 = arith.constant 0 : index
    %429 = vector.load %arg7[%c0_121, %c0_122] : memref<128x384xf32, #tpu.memory_space<vmem>>, vector<128x384xf32>
    %cst_123 = arith.constant dense<0.000000e+00> : vector<8x384xf32>
    %430 = tpu.matmul %426, %429, %cst_123 {dimension_numbers = #tpu.dot_dimension_numbers<[1], [0], [0], [1], [0, 0, 1, 1], [], []>} : vector<8x128xf32>, vector<128x384xf32>, vector<8x384xf32> -> vector<8x384xf32>
    %431 = arith.addf %430, %270 : vector<8x384xf32>
    %432 = vector.extract_strided_slice %428 {offsets = [0, 0], sizes = [8, 128], strides = [1, 1]} : vector<8x384xf32> to vector<8x128xf32>
    %433 = vector.extract_strided_slice %431 {offsets = [0, 0], sizes = [8, 128], strides = [1, 1]} : vector<8x384xf32> to vector<8x128xf32>
    %434 = arith.addf %432, %433 : vector<8x128xf32>
    %435 = arith.negf %434 : vector<8x128xf32>
    %436 = math.exp %435 : vector<8x128xf32>
    %cst_124 = arith.constant 1.000000e+00 : f32
    %437 = vector.broadcast %cst_124 : f32 to vector<8x128xf32>
    %438 = arith.addf %437, %436 : vector<8x128xf32>
    %439 = arith.divf %437, %438 : vector<8x128xf32>
    %440 = vector.extract_strided_slice %428 {offsets = [0, 128], sizes = [8, 128], strides = [1, 1]} : vector<8x384xf32> to vector<8x128xf32>
    %441 = vector.extract_strided_slice %431 {offsets = [0, 128], sizes = [8, 128], strides = [1, 1]} : vector<8x384xf32> to vector<8x128xf32>
    %442 = arith.addf %440, %441 : vector<8x128xf32>
    %443 = arith.negf %442 : vector<8x128xf32>
    %444 = math.exp %443 : vector<8x128xf32>
    %cst_125 = arith.constant 1.000000e+00 : f32
    %445 = vector.broadcast %cst_125 : f32 to vector<8x128xf32>
    %446 = arith.addf %445, %444 : vector<8x128xf32>
    %447 = arith.divf %445, %446 : vector<8x128xf32>
    %448 = vector.extract_strided_slice %428 {offsets = [0, 256], sizes = [8, 128], strides = [1, 1]} : vector<8x384xf32> to vector<8x128xf32>
    %449 = vector.extract_strided_slice %431 {offsets = [0, 256], sizes = [8, 128], strides = [1, 1]} : vector<8x384xf32> to vector<8x128xf32>
    %450 = arith.mulf %439, %449 : vector<8x128xf32>
    %451 = arith.addf %448, %450 : vector<8x128xf32>
    %452 = math.tanh %451 : vector<8x128xf32>
    %cst_126 = arith.constant 1.000000e+00 : f32
    %453 = vector.broadcast %cst_126 : f32 to vector<8x128xf32>
    %454 = arith.subf %453, %447 : vector<8x128xf32>
    %455 = arith.mulf %454, %452 : vector<8x128xf32>
    %456 = arith.mulf %447, %426 : vector<8x128xf32>
    %457 = arith.addf %455, %456 : vector<8x128xf32>
    %c40_127 = arith.constant 40 : index
    %c0_128 = arith.constant 0 : index
    %458 = vector.load %arg14[%c40_127, %c0_128] : memref<64x128xf32, #tpu.memory_space<vmem>>, vector<8x128xf32>
    tpu.vector_store %arg14[%c40_127, %c0_128], %457 {strides = array<i32>} : memref<64x128xf32, #tpu.memory_space<vmem>>, vector<8x128xf32>,
    %459 = vector.extract_strided_slice %267 {offsets = [48, 0], sizes = [8, 384], strides = [1, 1]} : vector<64x384xf32> to vector<8x384xf32>
    %c0_129 = arith.constant 0 : index
    %c0_130 = arith.constant 0 : index
    %460 = vector.load %arg7[%c0_129, %c0_130] : memref<128x384xf32, #tpu.memory_space<vmem>>, vector<128x384xf32>
    %cst_131 = arith.constant dense<0.000000e+00> : vector<8x384xf32>
    %461 = tpu.matmul %457, %460, %cst_131 {dimension_numbers = #tpu.dot_dimension_numbers<[1], [0], [0], [1], [0, 0, 1, 1], [], []>} : vector<8x128xf32>, vector<128x384xf32>, vector<8x384xf32> -> vector<8x384xf32>
    %462 = arith.addf %461, %270 : vector<8x384xf32>
    %463 = vector.extract_strided_slice %459 {offsets = [0, 0], sizes = [8, 128], strides = [1, 1]} : vector<8x384xf32> to vector<8x128xf32>
    %464 = vector.extract_strided_slice %462 {offsets = [0, 0], sizes = [8, 128], strides = [1, 1]} : vector<8x384xf32> to vector<8x128xf32>
    %465 = arith.addf %463, %464 : vector<8x128xf32>
    %466 = arith.negf %465 : vector<8x128xf32>
    %467 = math.exp %466 : vector<8x128xf32>
    %cst_132 = arith.constant 1.000000e+00 : f32
    %468 = vector.broadcast %cst_132 : f32 to vector<8x128xf32>
    %469 = arith.addf %468, %467 : vector<8x128xf32>
    %470 = arith.divf %468, %469 : vector<8x128xf32>
    %471 = vector.extract_strided_slice %459 {offsets = [0, 128], sizes = [8, 128], strides = [1, 1]} : vector<8x384xf32> to vector<8x128xf32>
    %472 = vector.extract_strided_slice %462 {offsets = [0, 128], sizes = [8, 128], strides = [1, 1]} : vector<8x384xf32> to vector<8x128xf32>
    %473 = arith.addf %471, %472 : vector<8x128xf32>
    %474 = arith.negf %473 : vector<8x128xf32>
    %475 = math.exp %474 : vector<8x128xf32>
    %cst_133 = arith.constant 1.000000e+00 : f32
    %476 = vector.broadcast %cst_133 : f32 to vector<8x128xf32>
    %477 = arith.addf %476, %475 : vector<8x128xf32>
    %478 = arith.divf %476, %477 : vector<8x128xf32>
    %479 = vector.extract_strided_slice %459 {offsets = [0, 256], sizes = [8, 128], strides = [1, 1]} : vector<8x384xf32> to vector<8x128xf32>
    %480 = vector.extract_strided_slice %462 {offsets = [0, 256], sizes = [8, 128], strides = [1, 1]} : vector<8x384xf32> to vector<8x128xf32>
    %481 = arith.mulf %470, %480 : vector<8x128xf32>
    %482 = arith.addf %479, %481 : vector<8x128xf32>
    %483 = math.tanh %482 : vector<8x128xf32>
    %cst_134 = arith.constant 1.000000e+00 : f32
    %484 = vector.broadcast %cst_134 : f32 to vector<8x128xf32>
    %485 = arith.subf %484, %478 : vector<8x128xf32>
    %486 = arith.mulf %485, %483 : vector<8x128xf32>
    %487 = arith.mulf %478, %457 : vector<8x128xf32>
    %488 = arith.addf %486, %487 : vector<8x128xf32>
    %c48_135 = arith.constant 48 : index
    %c0_136 = arith.constant 0 : index
    %489 = vector.load %arg14[%c48_135, %c0_136] : memref<64x128xf32, #tpu.memory_space<vmem>>, vector<8x128xf32>
    tpu.vector_store %arg14[%c48_135, %c0_136], %488 {strides = array<i32>} : memref<64x128xf32, #tpu.memory_space<vmem>>, vector<8x128xf32>,
    %490 = vector.extract_strided_slice %267 {offsets = [56, 0], sizes = [8, 384], strides = [1, 1]} : vector<64x384xf32> to vector<8x384xf32>
    %c0_137 = arith.constant 0 : index
    %c0_138 = arith.constant 0 : index
    %491 = vector.load %arg7[%c0_137, %c0_138] : memref<128x384xf32, #tpu.memory_space<vmem>>, vector<128x384xf32>
    %cst_139 = arith.constant dense<0.000000e+00> : vector<8x384xf32>
    %492 = tpu.matmul %488, %491, %cst_139 {dimension_numbers = #tpu.dot_dimension_numbers<[1], [0], [0], [1], [0, 0, 1, 1], [], []>} : vector<8x128xf32>, vector<128x384xf32>, vector<8x384xf32> -> vector<8x384xf32>
    %493 = arith.addf %492, %270 : vector<8x384xf32>
    %494 = vector.extract_strided_slice %490 {offsets = [0, 0], sizes = [8, 128], strides = [1, 1]} : vector<8x384xf32> to vector<8x128xf32>
    %495 = vector.extract_strided_slice %493 {offsets = [0, 0], sizes = [8, 128], strides = [1, 1]} : vector<8x384xf32> to vector<8x128xf32>
    %496 = arith.addf %494, %495 : vector<8x128xf32>
    %497 = arith.negf %496 : vector<8x128xf32>
    %498 = math.exp %497 : vector<8x128xf32>
    %cst_140 = arith.constant 1.000000e+00 : f32
    %499 = vector.broadcast %cst_140 : f32 to vector<8x128xf32>
    %500 = arith.addf %499, %498 : vector<8x128xf32>
    %501 = arith.divf %499, %500 : vector<8x128xf32>
    %502 = vector.extract_strided_slice %490 {offsets = [0, 128], sizes = [8, 128], strides = [1, 1]} : vector<8x384xf32> to vector<8x128xf32>
    %503 = vector.extract_strided_slice %493 {offsets = [0, 128], sizes = [8, 128], strides = [1, 1]} : vector<8x384xf32> to vector<8x128xf32>
    %504 = arith.addf %502, %503 : vector<8x128xf32>
    %505 = arith.negf %504 : vector<8x128xf32>
    %506 = math.exp %505 : vector<8x128xf32>
    %cst_141 = arith.constant 1.000000e+00 : f32
    %507 = vector.broadcast %cst_141 : f32 to vector<8x128xf32>
    %508 = arith.addf %507, %506 : vector<8x128xf32>
    %509 = arith.divf %507, %508 : vector<8x128xf32>
    %510 = vector.extract_strided_slice %490 {offsets = [0, 256], sizes = [8, 128], strides = [1, 1]} : vector<8x384xf32> to vector<8x128xf32>
    %511 = vector.extract_strided_slice %493 {offsets = [0, 256], sizes = [8, 128], strides = [1, 1]} : vector<8x384xf32> to vector<8x128xf32>
    %512 = arith.mulf %501, %511 : vector<8x128xf32>
    %513 = arith.addf %510, %512 : vector<8x128xf32>
    %514 = math.tanh %513 : vector<8x128xf32>
    %cst_142 = arith.constant 1.000000e+00 : f32
    %515 = vector.broadcast %cst_142 : f32 to vector<8x128xf32>
    %516 = arith.subf %515, %509 : vector<8x128xf32>
    %517 = arith.mulf %516, %514 : vector<8x128xf32>
    %518 = arith.mulf %509, %488 : vector<8x128xf32>
    %519 = arith.addf %517, %518 : vector<8x128xf32>
    %c56_143 = arith.constant 56 : index
    %c0_144 = arith.constant 0 : index
    %520 = vector.load %arg14[%c56_143, %c0_144] : memref<64x128xf32, #tpu.memory_space<vmem>>, vector<8x128xf32>
    tpu.vector_store %arg14[%c56_143, %c0_144], %519 {strides = array<i32>} : memref<64x128xf32, #tpu.memory_space<vmem>>, vector<8x128xf32>,
    %c1_145 = arith.constant 1 : index
    %c0_146 = arith.constant 0 : index
    %c0_147 = arith.constant 0 : index
    %521 = vector.load %arg13[%c1_145, %c0_146, %c0_147] : memref<2x8x128xf32, #tpu.memory_space<vmem>>, vector<1x8x128xf32>
    %522 = vector.shape_cast %521 : vector<1x8x128xf32> to vector<8x128xf32>
    %523 = vector.shape_cast %519 : vector<8x128xf32> to vector<1x8x128xf32>
    tpu.vector_store %arg13[%c1_145, %c0_146, %c0_147], %523 {strides = array<i32>} : memref<2x8x128xf32, #tpu.memory_space<vmem>>, vector<1x8x128xf32>,
    %c0_148 = arith.constant 0 : index
    %c0_149 = arith.constant 0 : index
    %524 = vector.load %arg14[%c0_148, %c0_149] : memref<64x128xf32, #tpu.memory_space<vmem>>, vector<64x128xf32>
    %c0_150 = arith.constant 0 : index
    %c0_151 = arith.constant 0 : index
    %525 = vector.load %arg10[%c0_150, %c0_151] : memref<128x64xf32, #tpu.memory_space<vmem>>, vector<128x64xf32>
    %cst_152 = arith.constant dense<0.000000e+00> : vector<64x64xf32>
    %526 = tpu.matmul %524, %525, %cst_152 {dimension_numbers = #tpu.dot_dimension_numbers<[1], [0], [0], [1], [0, 0, 1, 1], [], []>} : vector<64x128xf32>, vector<128x64xf32>, vector<64x64xf32> -> vector<64x64xf32>
    %c0_153 = arith.constant 0 : index
    %c0_154 = arith.constant 0 : index
    %527 = vector.load %arg11[%c0_153, %c0_154] : memref<1x64xf32, #tpu.memory_space<vmem>>, vector<1x64xf32>
    %528 = vector.broadcast %527 : vector<1x64xf32> to vector<64x64xf32>
    %529 = arith.addf %526, %528 : vector<64x64xf32>
    %c0_155 = arith.constant 0 : index
    %c0_156 = arith.constant 0 : index
    %530 = vector.load %arg12[%c0_155, %c0_156] : memref<64x64xf32, #tpu.memory_space<vmem>>, vector<64x64xf32>
    tpu.vector_store %arg12[%c0_155, %c0_156], %529 {strides = array<i32>} : memref<64x64xf32, #tpu.memory_space<vmem>>, vector<64x64xf32>,
    return
  }
}

</mosaic_0001>

<bundles_post_ra>
// kernel: decoder_forward.1
= control target key start
LH: loop header
LB: loop body
LE: loop exit
PB: predicated region body
PF: predicated region fallthrough
CT: control target
= control target key end

     0   :  { %19 = vsyncpa [#allocation4], 0  ;;  %s8545_s0 = inlined_call_operand.vmem [shape: f32[64,32], index: 0, kind: input, shape index: {}]   ;;  %s8546_s1 = inlined_call_operand.vmem [shape: f32[2,8,128], index: 1, kind: input, shape index: {}]   ;;  %s8547_s2 = inlined_call_operand.hbm [shape: f32[32,384], index: 2, kind: input, shape index: {}]   ;;  %s8548_s3 = inlined_call_operand.vmem [shape: f32[128,384], index: 3, kind: input, shape index: {}]   ;;  %s8549_s4 = inlined_call_operand.hbm [shape: f32[1,384], index: 4, kind: input, shape index: {}]   ;;  %s8550_s5 = inlined_call_operand.hbm [shape: f32[1,384], index: 5, kind: input, shape index: {}]   ;;  %s8551_s6 = inlined_call_operand.vmem [shape: f32[128,384], index: 6, kind: input, shape index: {}]   ;;  %s8552_s7 = inlined_call_operand.hbm [shape: f32[128,384], index: 7, kind: input, shape index: {}]   ;;  %s8553_s8 = inlined_call_operand.hbm [shape: f32[1,384], index: 8, kind: input, shape index: {}]   ;;  %s8554_s9 = inlined_call_operand.hbm [shape: f32[1,384], index: 9, kind: input, shape index: {}]   ;;  %s8555_s10 = inlined_call_operand.vmem [shape: f32[128,64], index: 10, kind: input, shape index: {}]   ;;  %s8556_s11 = inlined_call_operand.hbm [shape: f32[1,64], index: 11, kind: input, shape index: {}]   ;;  %s8557_s12 = inlined_call_operand.vmem [shape: f32[64,64], index: 12, kind: output, shape index: {0}]   ;;  %s8558_s13 = inlined_call_operand.vmem [shape: f32[2,8,128], index: 13, kind: output, shape index: {1}]  }
   0x1   :  { %20 = vsyncpa [#allocation6], 0 }
   0x2   :  { %21 = vsyncpa [#allocation9], 0 }
   0x3   :  { %22 = vsyncpa [#allocation12], 0  ;;  %s6761_s25 = smov [#allocation5]   ;;  %s6599_s29 = scalar_lea.hbm %s8549_s4, 48 }
   0x4   :  { %s47_s26 = sshll.u32 %s6761_s25, 4  ;;  %p6600_p0 = scmp.ne.s32.totalorder %s8549_s4, %s6599_s29  ;;  %s48_s26 = int_to_ptr.vmem [resolvable:$true] %s47_s26 }
   0x5   :  { %p6603_p1 = scmp.lt.u32.totalorder %s6599_s29, %s8549_s4 }
   0x7   :  { %p6605_p2 = pnand %p6603_p1, %p6600_p0 }
   0x9   :  { %6608 = shalt.err (!%p6605_p2)
}
   0xa   :  { %s6609_s17 = scalar_lea.vmem %s48_s26, 48  ;;  %s6613_s18 = scalar_lea.vmem %s48_s26, 64 }
   0xb   :  { %p6610_p3 = scmp.ne.s32.totalorder %s48_s26, %s6609_s17  ;;  %p6614_p4 = scmp.lt.s32.totalorder %s48_s26, %s48_s26 }
   0xc   :  { %p6615_p5 = scmp.lt.s32.totalorder %s6613_s18, %s6609_s17 }
   0xe   :  { %p6616_p6 = por %p6615_p5, %p6614_p4 }
  0x10   :  { %p6617_p7 = pnand %p6616_p6, %p6610_p3 }
  0x12   :  { %6620 = shalt.err (!%p6617_p7)
}
  0x13   :  { %50 = dma.hbm_to_vmem [thread:$0]  %s8549_s4, 48, %s48_s26, [#allocation6]  }
  0x14   :  { %s6762_s21 = smov [#allocation8]   ;;  %s6763_s23 = smov [#allocation11]  }
  0x15   :  { %s68_s22 = sshll.u32 %s6762_s21, 4  ;;  %s91_s24 = sshll.u32 %s6763_s23, 4  ;;  %s69_s22 = int_to_ptr.vmem [resolvable:$true] %s68_s22  ;;  %s92_s24 = int_to_ptr.vmem [resolvable:$true] %s91_s24 }
  0x16   :  { %s6621_s28 = scalar_lea.hbm %s8552_s7, 6144 }
  0x17   :  { %p6622_p8 = scmp.ne.s32.totalorder %s8552_s7, %s6621_s28  ;;  %p6625_p9 = scmp.lt.u32.totalorder %s6621_s28, %s8552_s7 }
  0x19   :  { %p6627_p10 = pnand %p6625_p9, %p6622_p8 }
  0x1b   :  { %6630 = shalt.err (!%p6627_p10)
}
  0x1c   :  { %s6631_s4 = scalar_lea.vmem %s69_s22, 6144  ;;  %p6636_p12 = scmp.lt.s32.totalorder %s69_s22, %s69_s22 }
  0x1d   :  { %p6632_p11 = scmp.ne.s32.totalorder %s69_s22, %s6631_s4  ;;  %p6637_p13 = scmp.lt.s32.totalorder %s6631_s4, %s6631_s4 }
  0x1f   :  { %p6638_p0 = por %p6637_p13, %p6636_p12 }
  0x21   :  { %p6639_p1 = pnand %p6638_p0, %p6632_p11 }
  0x23   :  { %6642 = shalt.err (!%p6639_p1)
}
  0x24   :  { %s6764_s26 = smov 384   ;;  %s6765_s16 = smov 24  }
  0x25   :  { %74 = dma.hbm_to_vmem [thread:$0]  %s8552_s7, 6144, %s69_s22, [#allocation9], %s6764_s26, %s6764_s26, %s6765_s16  }
  0x26   :  { %s6643_s21 = scalar_lea.hbm %s8554_s9, 48 }
  0x27   :  { %p6644_p2 = scmp.ne.s32.totalorder %s8554_s9, %s6643_s21  ;;  %p6647_p3 = scmp.lt.u32.totalorder %s6643_s21, %s8554_s9 }
  0x29   :  { %p6649_p4 = pnand %p6647_p3, %p6644_p2 }
  0x2b   :  { %6652 = shalt.err (!%p6649_p4)
}
  0x2c   :  { %s6653_s29 = scalar_lea.vmem %s92_s24, 48  ;;  %s6657_s30 = scalar_lea.vmem %s92_s24, 64 }
  0x2d   :  { %p6654_p5 = scmp.ne.s32.totalorder %s92_s24, %s6653_s29  ;;  %p6658_p6 = scmp.lt.s32.totalorder %s92_s24, %s92_s24 }
  0x2e   :  { %p6659_p7 = scmp.lt.s32.totalorder %s6657_s30, %s6653_s29 }
  0x30   :  { %p6660_p8 = por %p6659_p7, %p6658_p6 }
  0x32   :  { %p6661_p9 = pnand %p6660_p8, %p6654_p5 }
  0x34   :  { %6664 = shalt.err (!%p6661_p9)
}
  0x35   :  { %94 = dma.hbm_to_vmem [thread:$0]  %s8554_s9, 48, %s92_s24, [#allocation12]  }
  0x36   :  { %s6766_s14 = smov [#allocation3]   ;;  %s6767_s4 = smov [#allocation7]  }
  0x37   :  { %s32_s15 = sshll.u32 %s6766_s14, 4  ;;  %s57_s17 = sshll.u32 %s6767_s4, 4  ;;  %s33_s15 = int_to_ptr.vmem [resolvable:$true] %s32_s15  ;;  %s58_s17 = int_to_ptr.vmem [resolvable:$true] %s57_s17 }
  0x38   :  { %s6665_s20 = scalar_lea.hbm %s8547_s2, 1536 }
  0x39   :  { %p6666_p10 = scmp.ne.s32.totalorder %s8547_s2, %s6665_s20  ;;  %p6669_p11 = scmp.lt.u32.totalorder %s6665_s20, %s8547_s2 }
  0x3b   :  { %p6671_p12 = pnand %p6669_p11, %p6666_p10 }
  0x3d   :  { %6674 = shalt.err (!%p6671_p12)
}
  0x3e   :  { %s6675_s9 = scalar_lea.vmem %s33_s15, 1536  ;;  %p6680_p0 = scmp.lt.s32.totalorder %s33_s15, %s33_s15 }
  0x3f   :  { %p6676_p13 = scmp.ne.s32.totalorder %s33_s15, %s6675_s9  ;;  %p6681_p1 = scmp.lt.s32.totalorder %s6675_s9, %s6675_s9 }
  0x41   :  { %p6682_p2 = por %p6681_p1, %p6680_p0 }
  0x43   :  { %p6683_p3 = pnand %p6682_p2, %p6676_p13 }
  0x45   :  { %6686 = shalt.err (!%p6683_p3)
}
  0x46   :  { %38 = dma.hbm_to_vmem [thread:$0]  %s8547_s2, 1536, %s33_s15, [#allocation4], %s6764_s26, %s6764_s26, %s6765_s16  }
  0x47   :  { %s6687_s7 = scalar_lea.hbm %s8550_s5, 48 }
  0x48   :  { %p6688_p4 = scmp.ne.s32.totalorder %s8550_s5, %s6687_s7  ;;  %p6691_p5 = scmp.lt.u32.totalorder %s6687_s7, %s8550_s5 }
  0x4a   :  { %p6693_p6 = pnand %p6691_p5, %p6688_p4 }
  0x4c   :  { %6696 = shalt.err (!%p6693_p6)
}
  0x4d   :  { %s6697_s19 = scalar_lea.vmem %s58_s17, 48  ;;  %s6701_s20 = scalar_lea.vmem %s58_s17, 64 }
  0x4e   :  { %p6698_p7 = scmp.ne.s32.totalorder %s58_s17, %s6697_s19  ;;  %p6702_p8 = scmp.lt.s32.totalorder %s58_s17, %s58_s17 }
  0x4f   :  { %p6703_p9 = scmp.lt.s32.totalorder %s6701_s20, %s6697_s19 }
  0x51   :  { %p6704_p10 = por %p6703_p9, %p6702_p8 }
  0x53   :  { %p6705_p11 = pnand %p6704_p10, %p6698_p7 }
  0x55   :  { %6708 = shalt.err (!%p6705_p11)
}
  0x56   :  { %60 = dma.hbm_to_vmem [thread:$0]  %s8550_s5, 48, %s58_s17, [#allocation6]  }
  0x57   :  { %s6768_s16 = smov [#allocation10]   ;;  %s6769_s21 = smov [#allocation13]  }
  0x58   :  { %s81_s15 = sshll.u32 %s6768_s16, 4  ;;  %s103_s23 = sshll.u32 %s6769_s21, 4  ;;  %s82_s15 = int_to_ptr.vmem [resolvable:$true] %s81_s15  ;;  %s104_s23 = int_to_ptr.vmem [resolvable:$true] %s103_s23 }
  0x59   :  { %s6709_s9 = scalar_lea.hbm %s8553_s8, 48 }
  0x5a   :  { %p6710_p12 = scmp.ne.s32.totalorder %s8553_s8, %s6709_s9  ;;  %p6713_p13 = scmp.lt.u32.totalorder %s6709_s9, %s8553_s8 }
  0x5c   :  { %p6715_p0 = pnand %p6713_p13, %p6710_p12 }
  0x5e   :  { %6718 = shalt.err (!%p6715_p0)
}
  0x5f   :  { %s6719_s5 = scalar_lea.vmem %s82_s15, 48  ;;  %s6723_s17 = scalar_lea.vmem %s82_s15, 64 }
  0x60   :  { %p6720_p1 = scmp.ne.s32.totalorder %s82_s15, %s6719_s5  ;;  %p6724_p2 = scmp.lt.s32.totalorder %s82_s15, %s82_s15 }
  0x61   :  { %p6725_p3 = scmp.lt.s32.totalorder %s6723_s17, %s6719_s5 }
  0x63   :  { %p6726_p4 = por %p6725_p3, %p6724_p2 }
  0x65   :  { %p6727_p5 = pnand %p6726_p4, %p6720_p1 }
  0x67   :  { %6730 = shalt.err (!%p6727_p5)
}
  0x68   :  { %84 = dma.hbm_to_vmem [thread:$0]  %s8553_s8, 48, %s82_s15, [#allocation9]  }
  0x69   :  { %s6731_s18 = scalar_lea.hbm %s8556_s11, 16 }
  0x6a   :  { %p6732_p6 = scmp.ne.s32.totalorder %s8556_s11, %s6731_s18  ;;  %p6735_p7 = scmp.lt.u32.totalorder %s6731_s18, %s8556_s11 }
  0x6c   :  { %p6737_p8 = pnand %p6735_p7, %p6732_p6 }
  0x6e   :  { %6740 = shalt.err (!%p6737_p8)
}
  0x6f   :  { %s6741_s16 = scalar_lea.vmem %s104_s23, 16  ;;  %s6745_s21 = scalar_lea.vmem %s104_s23, 32 }
  0x70   :  { %p6742_p9 = scmp.ne.s32.totalorder %s104_s23, %s6741_s16  ;;  %p6746_p10 = scmp.lt.s32.totalorder %s104_s23, %s104_s23 }
  0x71   :  { %p6747_p11 = scmp.lt.s32.totalorder %s6745_s21, %s6741_s16 }
  0x73   :  { %p6748_p12 = por %p6747_p11, %p6746_p10 }
  0x75   :  { %p6749_p13 = pnand %p6748_p12, %p6742_p9 }
  0x77   :  { %6752 = shalt.err (!%p6749_p13)
}
  0x78   :  { %106 = dma.hbm_to_vmem [thread:$0]  %s8556_s11, 16, %s104_s23, [#allocation12]  }
  0x79   :  { %6753 = dma.done.wait [#allocation4], 1536  }
  0x7a   :  { %6754 = vsyncadd [#allocation4], 4294965760 }
  0x7b   :  { %6755 = dma.done.wait [#allocation6], 96  }
  0x7c   :  { %6756 = vsyncadd [#allocation6], 4294967200 }
  0x7d   :  { %6757 = dma.done.wait [#allocation9], 6192  }
  0x7e   :  { %6758 = vsyncadd [#allocation9], 4294961104 }
  0x7f   :  { %6759 = dma.done.wait [#allocation12], 64  }
  0x80   :  { %6760 = vsyncadd [#allocation12], 4294967232  ;;  %v6770_v0 = vmov 0.0   ;;  %vm165_vm0 = vcmask 261120   ;;  %v138_v1 = vld [vmem:[#allocation3 + $0x10] sm:$0xff]  ;;  %v141_v2 = vld [vmem:[#allocation3 + $0x28] sm:$0xff] }
  0x81   :  { %254 = vmatprep.mubr.f32.mxu0 %v6770_v0  ;;  %v144_v3 = vld [vmem:[#allocation3 + $0x40] sm:$0xff]  ;;  %v5331_v4 = vpack.c.bf16 %v141_v2, %v138_v1  ;;  %v147_v5 = vld [vmem:[#allocation3 + $0x58] sm:$0xff]  ;;  %v427_v8 = vld [vmem:[%s8548_s3 + $0x8] sm:$0xff]  ;;  %vm6772_vm1 = vmmov 0   ;;  %vm4251_vm2 = vcmask 523264  }
  0x82   :  { %v6937_v6 = vld [vmem:[%s8545_s0] sm:$0xff]  ;;  %v5335_v7 = vpack.c.bf16 %v147_v5, %v144_v3  ;;  %v429_v12 = vld [vmem:[%s8548_s3 + $0x18] sm:$0xff]  ;;  %v436_v14 = vld [vmem:[%s8548_s3 + $0x50] sm:$0xff] }
  0x83   :  { %4663 = vmatprep.mubr.msk.f32.mxu1 %vm165_vm0, %v6937_v6  ;;  %v430_v9 = vld [vmem:[%s8548_s3 + $0x20] sm:$0xff]  ;;  %5332 = vmatprep.subr.bf16.mxu1 %v5331_v4  ;;  %v433_v13 = vld [vmem:[%s8548_s3 + $0x38] sm:$0xff]  ;;  %v6964_v15 = vld [vmem:[%s8545_s0 + $0x8] sm:$0xff] }
  0x84   :  { %5334 = vmatpush3.bf16.msra.mxu1 %v5331_v4  ;;  %v6947_v10 = vpack.c.bf16 %v430_v9, %v427_v8  ;;  %v426_v11 = vld [vmem:[%s8548_s3] sm:$0xff]  ;;  %v432_v17 = vld [vmem:[%s8548_s3 + $0x30] sm:$0xff]  ;;  %v435_v18 = vld [vmem:[%s8548_s3 + $0x48] sm:$0xff]  ;;  %v6975_v19 = vpack.c.bf16 %v436_v14, %v433_v13 }
  0x85   :  { %5336 = vmatprep.subr.bf16.mxu1 %v5335_v7  ;;  %v6966_v16 = vpack.c.bf16 %v429_v12, %v426_v11  ;;  %v6980_v20 = vld [vmem:[%s8545_s0 + $0x10] sm:$0xff]  ;;  %v137_v21 = vld [vmem:[#allocation3 + $0x8] sm:$0xff]  ;;  %v140_v22 = vld [vmem:[#allocation3 + $0x20] sm:$0xff]  ;;  %v6994_v29 = vpack.c.bf16 %v435_v18, %v432_v17  ;;  %v6771_v18 = vmov 0.0|0.0  }
  0x86   :  { %v439_v23 = vld [vmem:[%s8548_s3 + $0x68] sm:$0xff]  ;;  %v442_v24 = vld [vmem:[%s8548_s3 + $0x80] sm:$0xff]  ;;  %v5323_v25 = vpack.c.bf16 %v140_v22, %v137_v21  ;;  %v139_v28 = vld [vmem:[#allocation3 + $0x18] sm:$0xff] }
  0x87   :  { %v136_v26 = vld [vmem:[#allocation3] sm:$0xff]  ;;  %v7001_v30 = vld [vmem:[%s8545_s0 + $0x18] sm:$0xff]  ;;  %v146_v33 = vld [vmem:[#allocation3 + $0x50] sm:$0xff]  ;;  %v7004_v34 = vpack.c.bf16 %v442_v24, %v439_v23 }
  0x88   :  { %5338 = vmatpush3.bf16.msra.mxu1 %v5335_v7  ;;  %v438_v27 = vld [vmem:[%s8548_s3 + $0x60] sm:$0xff]  ;;  %v5325_v31 = vpack.c.bf16 %v139_v28, %v136_v26  ;;  %v143_v32 = vld [vmem:[#allocation3 + $0x38] sm:$0xff]  ;;  %5324 = vmatprep.subr.bf16.mxu0 %v5323_v25  ;;  %v448_v39 = vld [vmem:[%s8548_s3 + $0xb0] sm:$0xff] }
  0x89   :  { %5340 = vmatprep.subr.bf16.mxu1 %v6947_v10  ;;  %v441_v35 = vld [vmem:[%s8548_s3 + $0x78] sm:$0xff]  ;;  %v7015_v37 = vld [vmem:[%s8545_s0 + $0x20] sm:$0xff]  ;;  %v5327_v38 = vpack.c.bf16 %v146_v33, %v143_v32  ;;  %v142_v40 = vld [vmem:[#allocation3 + $0x30] sm:$0xff] }
  0x8a   :  { %v445_v36 = vld [vmem:[%s8548_s3 + $0x98] sm:$0xff]  ;;  %5326 = vmatpush1.bf16.msra.mxu0 %v5325_v31  ;;  %v145_v41 = vld [vmem:[#allocation3 + $0x48] sm:$0xff]  ;;  %v7023_v43 = vpack.c.bf16 %v441_v35, %v438_v27  ;;  %v444_v46 = vld [vmem:[%s8548_s3 + $0x90] sm:$0xff] }
  0x8b   :  { %4664 = vmatmul.mubr.msk.f32.vlgmr.msra.gmra.mrb[0].mxu1 %vm165_vm0, %v6964_v15  ;;  %5328 = vmatprep.subr.bf16.mxu0 %v5327_v38  ;;  %v5329_v42 = vpack.c.bf16 %v145_v41, %v142_v40  ;;  %v7030_v44 = vld [vmem:[%s8545_s0 + $0x28] sm:$0xff]  ;;  %v7033_v45 = vpack.c.bf16 %v448_v39, %v445_v36  ;;  %v7044_v48 = vld [vmem:[%s8545_s0 + $0x30] sm:$0xff]  ;;  %v454_v50 = vld [vmem:[%s8548_s3 + $0xe0] sm:$0xff] }
  0x8c   :  { %5342 = vmatpush1.bf16.msra.mxu1 %v6966_v16  ;;  %4666 = vmatprep.mubr.msk.f32.mxu1 %vm165_vm0, %v6980_v20  ;;  %v447_v47 = vld [vmem:[%s8548_s3 + $0xa8] sm:$0xff]  ;;  %v7063_v52 = vld [vmem:[%s8545_s0 + $0x38] sm:$0xff]  ;;  %v450_v54 = vld [vmem:[%s8548_s3 + $0xc0] sm:$0xff] }
  0x8d   :  { %5344 = vmatprep.subr.bf16.mxu1 %v6975_v19  ;;  %v451_v49 = vld [vmem:[%s8548_s3 + $0xc8] sm:$0xff]  ;;  %v7056_v51 = vpack.c.bf16 %v447_v47, %v444_v46  ;;  %v453_v55 = vld [vmem:[%s8548_s3 + $0xd8] sm:$0xff]  ;;  %v460_v57 = vld [vmem:[%s8548_s3 + $0x110] sm:$0xff] }
  0x8e   :  { %5330 = vmatpush1.bf16.msra.mxu0 %v5329_v42  ;;  %v7066_v53 = vpack.c.bf16 %v454_v50, %v451_v49  ;;  %v457_v56 = vld [vmem:[%s8548_s3 + $0xf8] sm:$0xff]  ;;  %v7088_v58 = vpack.c.bf16 %v453_v55, %v450_v54  ;;  %v456_v60 = vld [vmem:[%s8548_s3 + $0xf0] sm:$0xff]  ;;  %v459_v61 = vld [vmem:[%s8548_s3 + $0x108] sm:$0xff] }
  0x8f   :  { %4667 = vmatmul.mubr.msk.f32.gmra.mrb[2].mxu1 %vm165_vm0, %v7001_v30  ;;  %5396 = vmatprep.subr.bf16.mxu0 %v6947_v10  ;;  %v7092_v59 = vpack.c.bf16 %v460_v57, %v457_v56  ;;  %v463_v62 = vld [vmem:[%s8548_s3 + $0x128] sm:$0xff]  ;;  %v466_v63 = vld [vmem:[%s8548_s3 + $0x140] sm:$0xff]  ;;  %v7112_v1 = vpack.c.bf16 %v459_v61, %v456_v60  ;;  %v465_v4 = vld [vmem:[%s8548_s3 + $0x138] sm:$0xff] }
  0x90   :  { %5346 = vmatpush1.bf16.msra.mxu1 %v6994_v29  ;;  %4669 = vmatprep.mubr.msk.f32.mxu1 %vm165_vm0, %v7015_v37  ;;  %v7115_v2 = vpack.c.bf16 %v466_v63, %v463_v62  ;;  %v462_v3 = vld [vmem:[%s8548_s3 + $0x120] sm:$0xff]  ;;  %v469_v5 = vld [vmem:[%s8548_s3 + $0x158] sm:$0xff]  ;;  %v468_v9 = vld [vmem:[%s8548_s3 + $0x150] sm:$0xff] }
  0x91   :  { %5348 = vmatprep.subr.bf16.mxu1 %v7004_v34  ;;  %4272 = vmatmul.mubr.msk.f32.vlgmr.msra.gmra.mrb[0].mxu0 %vm165_vm0, %v6937_v6  ;;  %v472_v6 = vld [vmem:[%s8548_s3 + $0x170] sm:$0xff]  ;;  %v7135_v7 = vpack.c.bf16 %v465_v4, %v462_v3  ;;  %v471_v11 = vld [vmem:[%s8548_s3 + $0x168] sm:$0xff]  ;;  %v437_v21 = vld [vmem:[%s8548_s3 + $0x58] sm:$0xff] }
  0x92   :  { %5398 = vmatpush1.bf16.msra.mxu0 %v6966_v16  ;;  %260 = vmatprep.mubr.f32.mxu0 %v6770_v0  ;;  %v7138_v8 = vpack.c.bf16 %v472_v6, %v469_v5  ;;  %v7152_v12 = vpack.c.bf16 %v471_v11, %v468_v9  ;;  %v428_v13 = vld [vmem:[%s8548_s3 + $0x10] sm:$0xff]  ;;  %v431_v14 = vld [vmem:[%s8548_s3 + $0x28] sm:$0xff]  ;;  %v446_v26 = vld [vmem:[%s8548_s3 + $0xa0] sm:$0xff] }
  0x93   :  { %4670 = vmatmul.mubr.msk.f32.gmra.mrb[4].mxu1 %vm165_vm0, %v7030_v44  ;;  %5400 = vmatprep.subr.bf16.mxu0 %v6975_v19  ;;  %v7172_v17 = vpack.c.bf16 %v431_v14, %v428_v13  ;;  %v440_v23 = vld [vmem:[%s8548_s3 + $0x70] sm:$0xff]  ;;  %v443_v24 = vld [vmem:[%s8548_s3 + $0x88] sm:$0xff]  ;;  %v449_v27 = vld [vmem:[%s8548_s3 + $0xb8] sm:$0xff] }
  0x94   :  { %5350 = vmatpush1.bf16.msra.mxu1 %v7023_v43  ;;  %4672 = vmatprep.mubr.msk.f32.mxu1 %vm165_vm0, %v7044_v48  ;;  %v7205_v25 = vpack.c.bf16 %v443_v24, %v440_v23  ;;  %v7220_v28 = vpack.c.bf16 %v449_v27, %v446_v26  ;;  %v455_v31 = vld [vmem:[%s8548_s3 + $0xe8] sm:$0xff]  ;;  %v458_v33 = vld [vmem:[%s8548_s3 + $0x100] sm:$0xff]  ;;  %v461_v35 = vld [vmem:[%s8548_s3 + $0x118] sm:$0xff] }
  0x95   :  { %5352 = vmatprep.subr.bf16.mxu1 %v7033_v45  ;;  %4273 = vmatmul.mubr.msk.f32.gmra.mrb[2].mxu0 %vm165_vm0, %v6964_v15  ;;  %v7170_v15 = vld [vmem:[%s8546_s1] sm:$0xff]  ;;  %v7240_v36 = vpack.c.bf16 %v461_v35, %v458_v33  ;;  %v467_v38 = vld [vmem:[%s8548_s3 + $0x148] sm:$0xff]  ;;  %v473_v41 = vld [vmem:[%s8548_s3 + $0x178] sm:$0xff] }
  0x96   :  { %5402 = vmatpush1.bf16.msra.mxu0 %v6994_v29  ;;  %266 = vmatprep.mubr.f32.mxu0 %v6770_v0  ;;  %v470_v40 = vld [vmem:[%s8548_s3 + $0x160] sm:$0xff] }
  0x97   :  { %4673 = vmatmul.mubr.msk.f32.gmra.mrb[6].mxu1 %vm165_vm0, %v7063_v52  ;;  %5404 = vmatprep.subr.bf16.mxu0 %v7004_v34  ;;  %v7260_v42 = vpack.c.bf16 %v473_v41, %v470_v40  ;;  %v408_v23 = vld [vmem:[#allocation7] sm:$0x7] }
  0x98   :  { %5354 = vmatpush1.bf16.msra.mxu1 %v7056_v51  ;;  %538 = vmatprep.mubr.f32.mxu1 %v6770_v0 }
  0x99   :  { %5356 = vmatprep.subr.bf16.mxu1 %v7066_v53  ;;  %4274 = vmatmul.mubr.msk.f32.gmra.mrb[4].mxu0 %vm165_vm0, %v6980_v20  ;;  %v434_v20 = vld [vmem:[%s8548_s3 + $0x40] sm:$0xff] }
  0x9a   :  { %5406 = vmatpush1.bf16.msra.mxu0 %v7023_v43  ;;  %272 = vmatprep.mubr.f32.mxu0 %v6770_v0  ;;  %v7188_v22 = vpack.c.bf16 %v437_v21, %v434_v20 }
  0x9b   :  { %5408 = vmatprep.subr.bf16.mxu0 %v7033_v45 }
  0x9c   :  { %5358 = vmatpush1.bf16.msra.mxu1 %v7088_v58 }
  0x9d   :  { %5360 = vmatprep.subr.bf16.mxu1 %v7092_v59  ;;  %4275 = vmatmul.mubr.msk.f32.gmra.mrb[6].mxu0 %vm165_vm0, %v7001_v30  ;;  %v452_v30 = vld [vmem:[%s8548_s3 + $0xd0] sm:$0xff] }
  0x9e   :  { %5410 = vmatpush1.bf16.msra.mxu0 %v7056_v51  ;;  %278 = vmatprep.mubr.f32.mxu0 %v6770_v0  ;;  %v7230_v32 = vpack.c.bf16 %v455_v31, %v452_v30 }
  0x9f   :  { %5412 = vmatprep.subr.bf16.mxu0 %v7066_v53 }
  0xa0   :  { %5362 = vmatpush1.bf16.msra.mxu1 %v7112_v1 }
  0xa1   :  { %5364 = vmatprep.subr.bf16.mxu1 %v7115_v2  ;;  %4276 = vmatmul.mubr.msk.f32.gmra.mrb[8].mxu0 %vm165_vm0, %v7015_v37  ;;  %v464_v37 = vld [vmem:[%s8548_s3 + $0x130] sm:$0xff] }
  0xa2   :  { %5414 = vmatpush1.bf16.msra.mxu0 %v7088_v58  ;;  %284 = vmatprep.mubr.f32.mxu0 %v6770_v0  ;;  %v7250_v39 = vpack.c.bf16 %v467_v38, %v464_v37 }
  0xa3   :  { %5416 = vmatprep.subr.bf16.mxu0 %v7092_v59 }
  0xa4   :  { %5366 = vmatpush1.bf16.msra.mxu1 %v7135_v7 }
  0xa5   :  { %5368 = vmatprep.subr.bf16.mxu1 %v7138_v8  ;;  %4277 = vmatmul.mubr.msk.f32.gmra.mrb[10].mxu0 %vm165_vm0, %v7030_v44  ;;  %v150_v44 = vlaneseq }
  0xa6   :  { %5418 = vmatpush1.bf16.msra.mxu0 %v7112_v1  ;;  %290 = vmatprep.mubr.f32.mxu0 %v6770_v0 }
  0xa7   :  { %5420 = vmatprep.subr.bf16.mxu0 %v7115_v2  ;;  %v151_v46 = vshrl.u32 %v150_v44, 7 }
  0xa8   :  { %5370 = vmatpush1.bf16.msra.mxu1 %v7152_v12 }
  0xa9   :  { %5371 = vmatprep.subr.bf16.mxu1 %v6771_v18  ;;  %4278 = vmatmul.mubr.msk.f32.gmra.mrb[12].mxu0 %vm165_vm0, %v7044_v48  ;;  %v7284_v47 = vsub.s32 2, %v151_v46  ;;  %v148_v48 = vld [vmem:[#allocation5] sm:$0x7]  ;;  %v7301_v14 = vsub.s32 0, %v151_v46  ;;  %v7303_v20 = vsub.s32 1, %v151_v46 }
  0xaa   :  { %5422 = vmatpush1.bf16.msra.mxu0 %v7135_v7  ;;  %296 = vmatprep.mubr.f32.mxu0 %v6770_v0 }
  0xab   :  { %539 = vmatmul.mubr.f32.vlgmr.msra.gmra.mrb[8].mxu1 %v7170_v15  ;;  %5424 = vmatprep.subr.bf16.mxu0 %v7138_v8  ;;  %v161_v49 = vrot.slane %v148_v48, %v7284_v47  ;;  %v7306_v21 = vrot.slane %v148_v48, %v7301_v14  ;;  %v7309_v24 = vrot.slane %v148_v48, %v7303_v20 }
  0xac   :  { %5373 = vmatpush3.bf16.msra.mxu1 %v7172_v17  ;;  %4707 = vmatprep.mubr.msk.f32.mxu1 %vm6772_vm1, %v6770_v0  ;;  %v7313_v27 = vrot.slane %v408_v23, %v7301_v14  ;;  %v7317_v31 = vrot.slane %v408_v23, %v7303_v20 }
  0xad   :  { %5374 = vmatprep.subr.bf16.mxu1 %v6771_v18  ;;  %4279 = vmatmul.mubr.msk.f32.gmra.mrb[14].mxu0 %vm165_vm0, %v7063_v52 }
  0xae   :  { %5426 = vmatpush1.bf16.msra.mxu0 %v7152_v12  ;;  %749 = vmatprep.mubr.f32.mxu0 %v6770_v0 }
  0xaf   :  { %5452 = vmatprep.subr.bf16.mxu0 %v6947_v10 }
  0xb0   :  { %5376 = vmatpush3.bf16.msra.mxu1 %v7188_v22 }
  0xb1   :  { %5377 = vmatprep.subr.bf16.mxu1 %v6771_v18 }
  0xb4   :  { %5379 = vmatpush3.bf16.msra.mxu1 %v7205_v25 }
  0xb5   :  { %5380 = vmatprep.subr.bf16.mxu1 %v6771_v18 }
  0xb8   :  { %5382 = vmatpush3.bf16.msra.mxu1 %v7220_v28 }
  0xb9   :  { %5383 = vmatprep.subr.bf16.mxu1 %v6771_v18 }
  0xbc   :  { %5385 = vmatpush3.bf16.msra.mxu1 %v7230_v32 }
  0xbd   :  { %5386 = vmatprep.subr.bf16.mxu1 %v6771_v18 }
  0xc0   :  { %5388 = vmatpush3.bf16.msra.mxu1 %v7240_v36 }
  0xc1   :  { %5389 = vmatprep.subr.bf16.mxu1 %v6771_v18 }
  0xc4   :  { %5391 = vmatpush3.bf16.msra.mxu1 %v7250_v39 }
  0xc5   :  { %5392 = vmatprep.subr.bf16.mxu1 %v6771_v18 }
  0xc8   :  { %5394 = vmatpush3.bf16.msra.mxu1 %v7260_v42 }
  0xc9   :  { %5427 = vmatprep.subr.bf16.mxu1 %v6771_v18 }
  0xcb   :  { %4708 = vmatmul.mubr.f32.vlgmr.msra.gmra.mrb[10].mxu1 %v7170_v15 }
  0xcc   :  { %5429 = vmatpush3.bf16.msra.mxu1 %v7172_v17  ;;  %4742 = vmatprep.mubr.msk.f32.mxu1 %vm6772_vm1, %v6770_v0 }
  0xcd   :  { %5430 = vmatprep.subr.bf16.mxu1 %v6771_v18 }
  0xd0   :  { %5432 = vmatpush3.bf16.msra.mxu1 %v7188_v22 }
  0xd1   :  { %5433 = vmatprep.subr.bf16.mxu1 %v6771_v18 }
  0xd4   :  { %5435 = vmatpush3.bf16.msra.mxu1 %v7205_v25 }
  0xd5   :  { %5436 = vmatprep.subr.bf16.mxu1 %v6771_v18 }
  0xd8   :  { %5438 = vmatpush3.bf16.msra.mxu1 %v7220_v28 }
  0xd9   :  { %5439 = vmatprep.subr.bf16.mxu1 %v6771_v18 }
  0xdc   :  { %5441 = vmatpush3.bf16.msra.mxu1 %v7230_v32 }
  0xdd   :  { %5442 = vmatprep.subr.bf16.mxu1 %v6771_v18 }
  0xe0   :  { %5444 = vmatpush3.bf16.msra.mxu1 %v7240_v36 }
  0xe1   :  { %5445 = vmatprep.subr.bf16.mxu1 %v6771_v18 }
  0xe4   :  { %5447 = vmatpush3.bf16.msra.mxu1 %v7250_v39 }
  0xe5   :  { %5448 = vmatprep.subr.bf16.mxu1 %v6771_v18 }
  0xe8   :  { %5450 = vmatpush3.bf16.msra.mxu1 %v7260_v42 }
  0xe9   :  { %5483 = vmatprep.subr.bf16.mxu1 %v6771_v18 }
 0x15e   :  { %v4665_v50 = vpop.f32.mrb[0].mxu1 }
 0x15f   :  { %v7287_v52 = vadd.f32 %v4665_v50, %v161_v49  ;;  %v369_v54 = vpop.f32.mrb[1].mxu1 }
 0x162   :  { %v4668_v55 = vpop.f32.mrb[2].mxu1 }
 0x163   :  { %v7289_v56 = vadd.f32 %v4668_v55, %v161_v49  ;;  %v379_v57 = vpop.f32.mrb[3].mxu1 }
 0x164   :  { %v7291_v60 = vadd.f32 %v379_v57, %v161_v49  ;;  %v256_v4 = vpop.f32.mrb[0].mxu0  ;;  %v7322_v57 = vrot.slane %v408_v23, %v7284_v47 }
 0x165   :  { %v258_v5 = vpop.f32.mrb[1].mxu0  ;;  %v257_v26 = vadd.f32 %v256_v4, %v7306_v21 }
 0x166   :  { %v4671_v61 = vpop.f32.mrb[4].mxu1  ;;  %v259_v30 = vadd.f32 %v258_v5, %v7309_v24 }
 0x167   :  { %v7293_v62 = vadd.f32 %v4671_v61, %v161_v49  ;;  %v389_v63 = vpop.f32.mrb[5].mxu1  ;;  %v6332_v33 = vadd.f32 %v7313_v27, %v257_v26 }
 0x168   :  { %v7295_v3 = vadd.f32 %v389_v63, %v161_v49  ;;  %v6335_v35 = vadd.f32 %v7317_v31, %v259_v30 }
 0x16a   :  { %v4674_v6 = vpop.f32.mrb[6].mxu1 }
 0x16b   :  { %v7297_v9 = vadd.f32 %v4674_v6, %v161_v49  ;;  %v399_v11 = vpop.f32.mrb[7].mxu1 }
 0x16c   :  { %v7299_v13 = vadd.f32 %v399_v11, %v161_v49  ;;  %v370_v11 = vadd.f32 %v369_v54, %v161_v49  ;;  %v7371_v49 = vadd.f32 %v7317_v31, %v7309_v24 }
 0x17e   :  { %v540_v37 = vpop.f32.mrb[8].mxu1 }
 0x17f   :  { %v6333_v38 = vadd.f32 %v6332_v33, %v540_v37  ;;  %v542_v40 = vpop.f32.mrb[9].mxu1 }
 0x180   :  { %v6336_v41 = vadd.f32 %v6335_v35, %v542_v40 }
 0x181   :  { %v4288_v44 = vmul.f32 -1.442695, %v6333_v38 }
 0x182   :  { %v4289_v46 = vmul.f32 -1.442695, %v6336_v41 }
 0x183   :  { %6439 = vpow2.f32 %v4288_v44 }
 0x184   :  { %6441 = vpow2.f32 %v4289_v46 }
 0x18d   :  { %v6440_v48 = vpop.eup %6439 }
 0x18e   :  { %v619_v50 = vadd.f32 1.0, %v6440_v48  ;;  %v6442_v55 = vpop.eup %6441 }
 0x18f   :  { %v626_v61 = vadd.f32 1.0, %v6442_v55 }
 0x190   :  { %6443 = vrcp.f32 %v619_v50 }
 0x191   :  { %6445 = vrcp.f32 %v626_v61 }
 0x19a   :  { %v6444_v6 = vpop.eup %6443 }
 0x19b   :  { %v6446_v33 = vpop.eup %6445 }
 0x19c   :  { %v632_v35 = vsub.f32 1.0, %v6446_v33  ;;  %v634_v40 = vmul.f32 %v6446_v33, %v7170_v15  ;;  %v7367_v15 = vadd.f32 %v7313_v27, %v7306_v21 }
 0x19e   :  { %v611_v63 = vpop.f32.mrb[10].mxu1 }
 0x19f   :  { %v612_v4 = vadd.f32 %v611_v63, %v7322_v57  ;;  %v4709_v5 = vpop.f32.mrb[11].mxu1 }
 0x1a1   :  { %v629_v26 = vmul.f32 %v6444_v6, %v612_v4 }
 0x1a3   :  { %v630_v30 = vadd.f32 %v629_v26, %v370_v11 }
 0x1a5   :  { %6447 = vtanh.f32 %v630_v30 }
 0x1af   :  { %v6448_v37 = vpop.eup %6447 }
 0x1b0   :  { %v633_v38 = vmul.f32 %v6448_v37, %v632_v35  ;;  %v1270_v37 = vld [vmem:[%s8548_s3] sm:$0xff] }
 0x1b2   :  { %v7326_v41 = vadd.f32 %v634_v40, %v633_v38  ;;  %v1273_v38 = vld [vmem:[%s8548_s3 + $0x18] sm:$0xff]  ;;  %v1272_v40 = vld [vmem:[%s8548_s3 + $0x10] sm:$0xff] }
 0x1b4   :  { %750 = vmatmul.mubr.f32.vlgmr.msra.gmra.mrb[2].mxu0 %v7326_v41  ;;  %4743 = vmatmul.mubr.f32.vlgmr.msra.gmra.mrb[12].mxu1 %v7326_v41 }
 0x1b5   :  { %5454 = vmatpush1.bf16.msra.mxu0 %v6966_v16  ;;  %5485 = vmatpush3.bf16.msra.mxu1 %v7172_v17 }
 0x1b6   :  { %5456 = vmatprep.subr.bf16.mxu0 %v6975_v19  ;;  %5486 = vmatprep.subr.bf16.mxu1 %v6771_v18 }
 0x1b7   :  { %960 = vmatprep.mubr.f32.mxu0 %v6770_v0  ;;  %4777 = vmatprep.mubr.msk.f32.mxu1 %vm6772_vm1, %v6770_v0 }
 0x1b9   :  { %5458 = vmatpush1.bf16.msra.mxu0 %v6994_v29  ;;  %5488 = vmatpush3.bf16.msra.mxu1 %v7188_v22 }
 0x1ba   :  { %5460 = vmatprep.subr.bf16.mxu0 %v7004_v34  ;;  %5489 = vmatprep.subr.bf16.mxu1 %v6771_v18 }
 0x1bd   :  { %5462 = vmatpush1.bf16.msra.mxu0 %v7023_v43  ;;  %5491 = vmatpush3.bf16.msra.mxu1 %v7205_v25 }
 0x1be   :  { %5464 = vmatprep.subr.bf16.mxu0 %v7033_v45  ;;  %5492 = vmatprep.subr.bf16.mxu1 %v6771_v18 }
 0x1c1   :  { %5466 = vmatpush1.bf16.msra.mxu0 %v7056_v51  ;;  %5494 = vmatpush3.bf16.msra.mxu1 %v7220_v28 }
 0x1c2   :  { %5468 = vmatprep.subr.bf16.mxu0 %v7066_v53  ;;  %5495 = vmatprep.subr.bf16.mxu1 %v6771_v18 }
 0x1c5   :  { %5470 = vmatpush1.bf16.msra.mxu0 %v7088_v58  ;;  %5497 = vmatpush3.bf16.msra.mxu1 %v7230_v32 }
 0x1c6   :  { %5472 = vmatprep.subr.bf16.mxu0 %v7092_v59  ;;  %5498 = vmatprep.subr.bf16.mxu1 %v6771_v18 }
 0x1c9   :  { %5474 = vmatpush1.bf16.msra.mxu0 %v7112_v1  ;;  %5500 = vmatpush3.bf16.msra.mxu1 %v7240_v36 }
 0x1ca   :  { %5476 = vmatprep.subr.bf16.mxu0 %v7115_v2  ;;  %5501 = vmatprep.subr.bf16.mxu1 %v6771_v18 }
 0x1cd   :  { %5478 = vmatpush1.bf16.msra.mxu0 %v7135_v7  ;;  %5503 = vmatpush3.bf16.msra.mxu1 %v7250_v39 }
 0x1ce   :  { %5480 = vmatprep.subr.bf16.mxu0 %v7138_v8  ;;  %5504 = vmatprep.subr.bf16.mxu1 %v6771_v18 }
 0x1d1   :  { %5482 = vmatpush1.bf16.msra.mxu0 %v7152_v12  ;;  %5506 = vmatpush3.bf16.msra.mxu1 %v7260_v42 }
 0x1d2   :  { %5508 = vmatprep.subr.bf16.mxu0 %v6947_v10  ;;  %5539 = vmatprep.subr.bf16.mxu1 %v6771_v18 }
 0x287   :  { %v751_v54 = vpop.f32.mrb[2].mxu0  ;;  %v822_v23 = vpop.f32.mrb[12].mxu1 }
 0x288   :  { %v6338_v44 = vadd.f32 %v7367_v15, %v751_v54  ;;  %v753_v46 = vpop.f32.mrb[3].mxu0  ;;  %v4744_v48 = vpop.f32.mrb[13].mxu1  ;;  %v823_v24 = vadd.f32 %v822_v23, %v7322_v57  ;;  %v7445_v54 = vpack.c.bf16 %v1273_v38, %v1270_v37  ;;  %v1275_v23 = vld [vmem:[%s8548_s3 + $0x28] sm:$0xff]  ;;  %v1302_v37 = vld [vmem:[%s8548_s3 + $0x100] sm:$0xff]  ;;  %v1305_v38 = vld [vmem:[%s8548_s3 + $0x118] sm:$0xff] }
 0x289   :  { %v6340_v55 = vadd.f32 %v7371_v49, %v753_v46  ;;  %v1277_v46 = vld [vmem:[%s8548_s3 + $0x38] sm:$0xff]  ;;  %v1280_v48 = vld [vmem:[%s8548_s3 + $0x50] sm:$0xff] }
 0x28a   :  { %v4290_v50 = vmul.f32 -1.442695, %v6338_v44  ;;  %v7451_v44 = vpack.c.bf16 %v1275_v23, %v1272_v40  ;;  %v7590_v23 = vpack.c.bf16 %v1305_v38, %v1302_v37 }
 0x28b   :  { %v4291_v10 = vmul.f32 -1.442695, %v6340_v55  ;;  %v1276_v55 = vld [vmem:[%s8548_s3 + $0x30] sm:$0xff] }
 0x28c   :  { %6449 = vpow2.f32 %v4290_v50  ;;  %v7461_v50 = vpack.c.bf16 %v1280_v48, %v1277_v46  ;;  %v1307_v46 = vld [vmem:[%s8548_s3 + $0x128] sm:$0xff]  ;;  %v1310_v48 = vld [vmem:[%s8548_s3 + $0x140] sm:$0xff] }
 0x28d   :  { %6451 = vpow2.f32 %v4291_v10  ;;  %v1279_v10 = vld [vmem:[%s8548_s3 + $0x48] sm:$0xff] }
 0x296   :  { %v6450_v61 = vpop.eup %6449 }
 0x297   :  { %v830_v63 = vadd.f32 1.0, %v6450_v61  ;;  %v6452_v21 = vpop.eup %6451  ;;  %v1278_v61 = vld [vmem:[%s8548_s3 + $0x40] sm:$0xff] }
 0x298   :  { %v837_v27 = vadd.f32 1.0, %v6452_v21  ;;  %v1281_v21 = vld [vmem:[%s8548_s3 + $0x58] sm:$0xff] }
 0x299   :  { %6453 = vrcp.f32 %v830_v63  ;;  %v7473_v63 = vpack.c.bf16 %v1279_v10, %v1276_v55  ;;  %v1306_v55 = vld [vmem:[%s8548_s3 + $0x120] sm:$0xff]  ;;  %v7602_v10 = vpack.c.bf16 %v1310_v48, %v1307_v46 }
 0x29a   :  { %6455 = vrcp.f32 %v837_v27  ;;  %v7479_v27 = vpack.c.bf16 %v1281_v21, %v1278_v61  ;;  %v1309_v61 = vld [vmem:[%s8548_s3 + $0x138] sm:$0xff]  ;;  %v1308_v21 = vld [vmem:[%s8548_s3 + $0x130] sm:$0xff] }
 0x2a3   :  { %v6454_v31 = vpop.eup %6453 }
 0x2a4   :  { %v840_v4 = vmul.f32 %v6454_v31, %v823_v24  ;;  %v6456_v6 = vpop.eup %6455  ;;  %v1283_v24 = vld [vmem:[%s8548_s3 + $0x68] sm:$0xff]  ;;  %v1286_v31 = vld [vmem:[%s8548_s3 + $0x80] sm:$0xff] }
 0x2a5   :  { %v843_v11 = vsub.f32 1.0, %v6456_v6  ;;  %v845_v33 = vmul.f32 %v6456_v6, %v7326_v41  ;;  %v1285_v6 = vld [vmem:[%s8548_s3 + $0x78] sm:$0xff] }
 0x2a6   :  { %v841_v5 = vadd.f32 %v840_v4, %v7287_v52  ;;  %v1274_v52 = vld [vmem:[%s8548_s3 + $0x20] sm:$0xff]  ;;  %v7489_v4 = vpack.c.bf16 %v1286_v31, %v1283_v24  ;;  %v1311_v24 = vld [vmem:[%s8548_s3 + $0x148] sm:$0xff]  ;;  %v7614_v31 = vpack.c.bf16 %v1309_v61, %v1306_v55 }
 0x2a8   :  { %6457 = vtanh.f32 %v841_v5  ;;  %v1282_v5 = vld [vmem:[%s8548_s3 + $0x60] sm:$0xff] }
 0x2b2   :  { %v6458_v26 = vpop.eup %6457 }
 0x2b3   :  { %v844_v30 = vmul.f32 %v6458_v26, %v843_v11  ;;  %v1284_v11 = vld [vmem:[%s8548_s3 + $0x70] sm:$0xff]  ;;  %v7501_v26 = vpack.c.bf16 %v1285_v6, %v1282_v5  ;;  %v1313_v5 = vld [vmem:[%s8548_s3 + $0x158] sm:$0xff] }
 0x2b4   :  { %v1316_v6 = vld [vmem:[%s8548_s3 + $0x170] sm:$0xff] }
 0x2b5   :  { %v7378_v35 = vadd.f32 %v845_v33, %v844_v30  ;;  %v1287_v30 = vld [vmem:[%s8548_s3 + $0x88] sm:$0xff] }
 0x2b6   :  { %v7507_v33 = vpack.c.bf16 %v1287_v30, %v1284_v11  ;;  %v7624_v11 = vpack.c.bf16 %v1311_v24, %v1308_v21  ;;  %v7626_v30 = vpack.c.bf16 %v1316_v6, %v1313_v5 }
 0x2b7   :  { %961 = vmatmul.mubr.f32.vlgmr.msra.gmra.mrb[4].mxu0 %v7378_v35  ;;  %4778 = vmatmul.mubr.f32.vlgmr.msra.gmra.mrb[14].mxu1 %v7378_v35 }
 0x2b8   :  { %5510 = vmatpush1.bf16.msra.mxu0 %v6966_v16  ;;  %5541 = vmatpush3.bf16.msra.mxu1 %v7172_v17 }
 0x2b9   :  { %5512 = vmatprep.subr.bf16.mxu0 %v6975_v19  ;;  %5542 = vmatprep.subr.bf16.mxu1 %v6771_v18 }
 0x2ba   :  { %1171 = vmatprep.mubr.f32.mxu0 %v6770_v0  ;;  %4812 = vmatprep.mubr.msk.f32.mxu1 %vm6772_vm1, %v6770_v0 }
 0x2bc   :  { %5514 = vmatpush1.bf16.msra.mxu0 %v6994_v29  ;;  %5544 = vmatpush3.bf16.msra.mxu1 %v7188_v22 }
 0x2bd   :  { %5516 = vmatprep.subr.bf16.mxu0 %v7004_v34  ;;  %5545 = vmatprep.subr.bf16.mxu1 %v6771_v18 }
 0x2c0   :  { %5518 = vmatpush1.bf16.msra.mxu0 %v7023_v43  ;;  %5547 = vmatpush3.bf16.msra.mxu1 %v7205_v25 }
 0x2c1   :  { %5520 = vmatprep.subr.bf16.mxu0 %v7033_v45  ;;  %5548 = vmatprep.subr.bf16.mxu1 %v6771_v18 }
 0x2c4   :  { %5522 = vmatpush1.bf16.msra.mxu0 %v7056_v51  ;;  %5550 = vmatpush3.bf16.msra.mxu1 %v7220_v28 }
 0x2c5   :  { %5524 = vmatprep.subr.bf16.mxu0 %v7066_v53  ;;  %5551 = vmatprep.subr.bf16.mxu1 %v6771_v18 }
 0x2c8   :  { %5526 = vmatpush1.bf16.msra.mxu0 %v7088_v58  ;;  %5553 = vmatpush3.bf16.msra.mxu1 %v7230_v32 }
 0x2c9   :  { %5528 = vmatprep.subr.bf16.mxu0 %v7092_v59  ;;  %5554 = vmatprep.subr.bf16.mxu1 %v6771_v18 }
 0x2cc   :  { %5530 = vmatpush1.bf16.msra.mxu0 %v7112_v1  ;;  %5556 = vmatpush3.bf16.msra.mxu1 %v7240_v36 }
 0x2cd   :  { %5532 = vmatprep.subr.bf16.mxu0 %v7115_v2  ;;  %5557 = vmatprep.subr.bf16.mxu1 %v6771_v18 }
 0x2d0   :  { %5534 = vmatpush1.bf16.msra.mxu0 %v7135_v7  ;;  %5559 = vmatpush3.bf16.msra.mxu1 %v7250_v39 }
 0x2d1   :  { %5536 = vmatprep.subr.bf16.mxu0 %v7138_v8  ;;  %5560 = vmatprep.subr.bf16.mxu1 %v6771_v18 }
 0x2d4   :  { %5538 = vmatpush1.bf16.msra.mxu0 %v7152_v12  ;;  %5562 = vmatpush3.bf16.msra.mxu1 %v7260_v42  ;;  %v1271_v42 = vld [vmem:[%s8548_s3 + $0x8] sm:$0xff] }
 0x2d5   :  { %5595 = vmatprep.subr.bf16.mxu1 %v6771_v18 }
 0x38a   :  { %v962_v16 = vpop.f32.mrb[4].mxu0  ;;  %v1033_v19 = vpop.f32.mrb[14].mxu1 }
 0x38b   :  { %v6342_v29 = vadd.f32 %v7367_v15, %v962_v16  ;;  %v964_v34 = vpop.f32.mrb[5].mxu0  ;;  %v4779_v43 = vpop.f32.mrb[15].mxu1  ;;  %v1034_v7 = vadd.f32 %v1033_v19, %v7322_v57  ;;  %v1289_v16 = vld [vmem:[%s8548_s3 + $0x98] sm:$0xff]  ;;  %v1292_v19 = vld [vmem:[%s8548_s3 + $0xb0] sm:$0xff] }
 0x38c   :  { %v6344_v51 = vadd.f32 %v7371_v49, %v964_v34  ;;  %v1288_v34 = vld [vmem:[%s8548_s3 + $0x90] sm:$0xff]  ;;  %v1291_v43 = vld [vmem:[%s8548_s3 + $0xa8] sm:$0xff] }
 0x38d   :  { %v4292_v45 = vmul.f32 -1.442695, %v6342_v29  ;;  %v7517_v29 = vpack.c.bf16 %v1292_v19, %v1289_v16  ;;  %v1312_v16 = vld [vmem:[%s8548_s3 + $0x150] sm:$0xff]  ;;  %v1315_v19 = vld [vmem:[%s8548_s3 + $0x168] sm:$0xff] }
 0x38e   :  { %v4293_v53 = vmul.f32 -1.442695, %v6344_v51  ;;  %v7529_v51 = vpack.c.bf16 %v1291_v43, %v1288_v34  ;;  %v1314_v34 = vld [vmem:[%s8548_s3 + $0x160] sm:$0xff]  ;;  %v1317_v43 = vld [vmem:[%s8548_s3 + $0x178] sm:$0xff] }
 0x38f   :  { %6459 = vpow2.f32 %v4292_v45  ;;  %v1290_v45 = vld [vmem:[%s8548_s3 + $0xa0] sm:$0xff] }
 0x390   :  { %6461 = vpow2.f32 %v4293_v53  ;;  %v1293_v53 = vld [vmem:[%s8548_s3 + $0xb8] sm:$0xff] }
 0x399   :  { %v6460_v58 = vpop.eup %6459 }
 0x39a   :  { %v1041_v59 = vadd.f32 1.0, %v6460_v58  ;;  %v6462_v1 = vpop.eup %6461  ;;  %v7535_v58 = vpack.c.bf16 %v1293_v53, %v1290_v45  ;;  %v7642_v45 = vpack.c.bf16 %v1315_v19, %v1312_v16  ;;  %v7646_v53 = vpack.c.bf16 %v1317_v43, %v1314_v34 }
 0x39b   :  { %v1048_v2 = vadd.f32 1.0, %v6462_v1  ;;  %v1298_v1 = vld [vmem:[%s8548_s3 + $0xe0] sm:$0xff] }
 0x39c   :  { %6463 = vrcp.f32 %v1041_v59  ;;  %v1295_v59 = vld [vmem:[%s8548_s3 + $0xc8] sm:$0xff] }
 0x39d   :  { %6465 = vrcp.f32 %v1048_v2  ;;  %v7545_v2 = vpack.c.bf16 %v1298_v1, %v1295_v59 }
 0x3a6   :  { %v6464_v8 = vpop.eup %6463 }
 0x3a7   :  { %v1051_v12 = vmul.f32 %v6464_v8, %v1034_v7  ;;  %v6466_v22 = vpop.eup %6465  ;;  %v1294_v7 = vld [vmem:[%s8548_s3 + $0xc0] sm:$0xff]  ;;  %v1297_v8 = vld [vmem:[%s8548_s3 + $0xd8] sm:$0xff] }
 0x3a8   :  { %v1054_v25 = vsub.f32 1.0, %v6466_v22  ;;  %v1056_v36 = vmul.f32 %v6466_v22, %v7378_v35  ;;  %v1299_v22 = vld [vmem:[%s8548_s3 + $0xe8] sm:$0xff] }
 0x3a9   :  { %v1052_v17 = vadd.f32 %v1051_v12, %v7291_v60  ;;  %v7434_v60 = vpack.c.bf16 %v1274_v52, %v1271_v42  ;;  %v1296_v12 = vld [vmem:[%s8548_s3 + $0xd0] sm:$0xff]  ;;  %v1303_v52 = vld [vmem:[%s8548_s3 + $0x108] sm:$0xff] }
 0x3ab   :  { %6467 = vtanh.f32 %v1052_v17  ;;  %5564 = vmatprep.subr.bf16.mxu0 %v7434_v60  ;;  %v7557_v17 = vpack.c.bf16 %v1297_v8, %v1294_v7 }
 0x3b5   :  { %v6468_v28 = vpop.eup %6467 }
 0x3b6   :  { %v1055_v32 = vmul.f32 %v6468_v28, %v1054_v25  ;;  %v7563_v25 = vpack.c.bf16 %v1299_v22, %v1296_v12  ;;  %v1301_v28 = vld [vmem:[%s8548_s3 + $0xf8] sm:$0xff] }
 0x3b8   :  { %v7421_v39 = vadd.f32 %v1056_v36, %v1055_v32  ;;  %v1304_v32 = vld [vmem:[%s8548_s3 + $0x110] sm:$0xff] }
 0x3b9   :  { %v1300_v36 = vld [vmem:[%s8548_s3 + $0xf0] sm:$0xff]  ;;  %v7576_v42 = vpack.c.bf16 %v1304_v32, %v1301_v28 }
 0x3ba   :  { %1172 = vmatmul.mubr.f32.vlgmr.msra.gmra.mrb[6].mxu0 %v7421_v39  ;;  %4813 = vmatmul.mubr.f32.vlgmr.msra.gmra.mrb[16].mxu1 %v7421_v39  ;;  %v7588_v40 = vpack.c.bf16 %v1303_v52, %v1300_v36 }
 0x3bb   :  { %1382 = vmatprep.mubr.f32.mxu0 %v6770_v0  ;;  %4847 = vmatprep.mubr.msk.f32.mxu1 %vm6772_vm1, %v6770_v0 }
 0x3bc   :  { %5566 = vmatpush1.bf16.msra.mxu0 %v7445_v54  ;;  %5597 = vmatpush3.bf16.msra.mxu1 %v7451_v44 }
 0x3bd   :  { %5598 = vmatprep.subr.bf16.mxu1 %v6771_v18  ;;  %5568 = vmatprep.subr.bf16.mxu0 %v7461_v50 }
 0x3c0   :  { %5570 = vmatpush1.bf16.msra.mxu0 %v7473_v63  ;;  %5600 = vmatpush3.bf16.msra.mxu1 %v7479_v27 }
 0x3c1   :  { %5601 = vmatprep.subr.bf16.mxu1 %v6771_v18  ;;  %5572 = vmatprep.subr.bf16.mxu0 %v7489_v4 }
 0x3c4   :  { %5574 = vmatpush1.bf16.msra.mxu0 %v7501_v26  ;;  %5603 = vmatpush3.bf16.msra.mxu1 %v7507_v33 }
 0x3c5   :  { %5604 = vmatprep.subr.bf16.mxu1 %v6771_v18  ;;  %5576 = vmatprep.subr.bf16.mxu0 %v7517_v29 }
 0x3c8   :  { %5578 = vmatpush1.bf16.msra.mxu0 %v7529_v51  ;;  %5606 = vmatpush3.bf16.msra.mxu1 %v7535_v58 }
 0x3c9   :  { %5607 = vmatprep.subr.bf16.mxu1 %v6771_v18  ;;  %5580 = vmatprep.subr.bf16.mxu0 %v7545_v2 }
 0x3cc   :  { %5582 = vmatpush1.bf16.msra.mxu0 %v7557_v17  ;;  %5609 = vmatpush3.bf16.msra.mxu1 %v7563_v25 }
 0x3cd   :  { %5610 = vmatprep.subr.bf16.mxu1 %v6771_v18  ;;  %5584 = vmatprep.subr.bf16.mxu0 %v7576_v42 }
 0x3d0   :  { %5586 = vmatpush1.bf16.msra.mxu0 %v7588_v40  ;;  %5612 = vmatpush3.bf16.msra.mxu1 %v7590_v23 }
 0x3d1   :  { %5588 = vmatprep.subr.bf16.mxu0 %v7602_v10  ;;  %5613 = vmatprep.subr.bf16.mxu1 %v6771_v18 }
 0x3d4   :  { %5590 = vmatpush1.bf16.msra.mxu0 %v7614_v31  ;;  %5615 = vmatpush3.bf16.msra.mxu1 %v7624_v11 }
 0x3d5   :  { %5592 = vmatprep.subr.bf16.mxu0 %v7626_v30  ;;  %5616 = vmatprep.subr.bf16.mxu1 %v6771_v18 }
 0x3d8   :  { %5594 = vmatpush1.bf16.msra.mxu0 %v7642_v45  ;;  %5618 = vmatpush3.bf16.msra.mxu1 %v7646_v53 }
 0x3d9   :  { %5620 = vmatprep.subr.bf16.mxu0 %v7434_v60  ;;  %5651 = vmatprep.subr.bf16.mxu1 %v6771_v18 }
 0x48d   :  { %v1173_v59 = vpop.f32.mrb[6].mxu0  ;;  %v1244_v1 = vpop.f32.mrb[16].mxu1 }
 0x48e   :  { %v6346_v7 = vadd.f32 %v7367_v15, %v1173_v59  ;;  %v1175_v8 = vpop.f32.mrb[7].mxu0  ;;  %v4814_v12 = vpop.f32.mrb[17].mxu1  ;;  %v1245_v46 = vadd.f32 %v1244_v1, %v7322_v57 }
 0x48f   :  { %v6348_v28 = vadd.f32 %v7371_v49, %v1175_v8 }
 0x490   :  { %v4294_v22 = vmul.f32 -1.442695, %v6346_v7 }
 0x491   :  { %v4295_v32 = vmul.f32 -1.442695, %v6348_v28 }
 0x492   :  { %6469 = vpow2.f32 %v4294_v22 }
 0x493   :  { %6471 = vpow2.f32 %v4295_v32 }
 0x49c   :  { %v6470_v36 = vpop.eup %6469 }
 0x49d   :  { %v1252_v52 = vadd.f32 1.0, %v6470_v36  ;;  %v6472_v37 = vpop.eup %6471 }
 0x49e   :  { %v1259_v38 = vadd.f32 1.0, %v6472_v37 }
 0x49f   :  { %6473 = vrcp.f32 %v1252_v52 }
 0x4a0   :  { %6475 = vrcp.f32 %v1259_v38 }
 0x4a9   :  { %v6474_v48 = vpop.eup %6473 }
 0x4aa   :  { %v1262_v55 = vmul.f32 %v6474_v48, %v1245_v46  ;;  %v6476_v21 = vpop.eup %6475 }
 0x4ab   :  { %v1265_v24 = vsub.f32 1.0, %v6476_v21  ;;  %v1267_v16 = vmul.f32 %v6476_v21, %v7421_v39 }
 0x4ac   :  { %v1263_v61 = vadd.f32 %v1262_v55, %v7289_v56 }
 0x4ae   :  { %6477 = vtanh.f32 %v1263_v61 }
 0x4b8   :  { %v6478_v5 = vpop.eup %6477 }
 0x4b9   :  { %v1266_v6 = vmul.f32 %v6478_v5, %v1265_v24 }
 0x4bb   :  { %v7658_v19 = vadd.f32 %v1267_v16, %v1266_v6 }
 0x4bd   :  { %1383 = vmatmul.mubr.f32.vlgmr.msra.gmra.mrb[8].mxu0 %v7658_v19  ;;  %4848 = vmatmul.mubr.f32.vlgmr.msra.gmra.mrb[18].mxu1 %v7658_v19 }
 0x4be   :  { %5622 = vmatpush1.bf16.msra.mxu0 %v7445_v54  ;;  %5653 = vmatpush3.bf16.msra.mxu1 %v7451_v44 }
 0x4bf   :  { %5624 = vmatprep.subr.bf16.mxu0 %v7461_v50  ;;  %5654 = vmatprep.subr.bf16.mxu1 %v6771_v18 }
 0x4c0   :  { %1593 = vmatprep.mubr.f32.mxu0 %v6770_v0  ;;  %4882 = vmatprep.mubr.msk.f32.mxu1 %vm6772_vm1, %v6770_v0 }
 0x4c2   :  { %5626 = vmatpush1.bf16.msra.mxu0 %v7473_v63  ;;  %5656 = vmatpush3.bf16.msra.mxu1 %v7479_v27 }
 0x4c3   :  { %5628 = vmatprep.subr.bf16.mxu0 %v7489_v4  ;;  %5657 = vmatprep.subr.bf16.mxu1 %v6771_v18 }
 0x4c6   :  { %5630 = vmatpush1.bf16.msra.mxu0 %v7501_v26  ;;  %5659 = vmatpush3.bf16.msra.mxu1 %v7507_v33 }
 0x4c7   :  { %5632 = vmatprep.subr.bf16.mxu0 %v7517_v29  ;;  %5660 = vmatprep.subr.bf16.mxu1 %v6771_v18 }
 0x4ca   :  { %5634 = vmatpush1.bf16.msra.mxu0 %v7529_v51  ;;  %5662 = vmatpush3.bf16.msra.mxu1 %v7535_v58 }
 0x4cb   :  { %5636 = vmatprep.subr.bf16.mxu0 %v7545_v2  ;;  %5663 = vmatprep.subr.bf16.mxu1 %v6771_v18 }
 0x4ce   :  { %5638 = vmatpush1.bf16.msra.mxu0 %v7557_v17  ;;  %5665 = vmatpush3.bf16.msra.mxu1 %v7563_v25 }
 0x4cf   :  { %5640 = vmatprep.subr.bf16.mxu0 %v7576_v42  ;;  %5666 = vmatprep.subr.bf16.mxu1 %v6771_v18 }
 0x4d2   :  { %5642 = vmatpush1.bf16.msra.mxu0 %v7588_v40  ;;  %5668 = vmatpush3.bf16.msra.mxu1 %v7590_v23 }
 0x4d3   :  { %5644 = vmatprep.subr.bf16.mxu0 %v7602_v10  ;;  %5669 = vmatprep.subr.bf16.mxu1 %v6771_v18 }
 0x4d6   :  { %5646 = vmatpush1.bf16.msra.mxu0 %v7614_v31  ;;  %5671 = vmatpush3.bf16.msra.mxu1 %v7624_v11 }
 0x4d7   :  { %5648 = vmatprep.subr.bf16.mxu0 %v7626_v30  ;;  %5672 = vmatprep.subr.bf16.mxu1 %v6771_v18 }
 0x4da   :  { %5650 = vmatpush1.bf16.msra.mxu0 %v7642_v45  ;;  %5674 = vmatpush3.bf16.msra.mxu1 %v7646_v53 }
 0x4db   :  { %5676 = vmatprep.subr.bf16.mxu0 %v7434_v60  ;;  %5707 = vmatprep.subr.bf16.mxu1 %v6771_v18 }
 0x590   :  { %v1384_v56 = vpop.f32.mrb[8].mxu0  ;;  %v1455_v34 = vpop.f32.mrb[18].mxu1 }
 0x591   :  { %v6350_v43 = vadd.f32 %v7367_v15, %v1384_v56  ;;  %v1386_v59 = vpop.f32.mrb[9].mxu0  ;;  %v4849_v1 = vpop.f32.mrb[19].mxu1  ;;  %v1456_v52 = vadd.f32 %v1455_v34, %v7322_v57 }
 0x592   :  { %v6352_v8 = vadd.f32 %v7371_v49, %v1386_v59 }
 0x593   :  { %v4296_v7 = vmul.f32 -1.442695, %v6350_v43 }
 0x594   :  { %v4297_v12 = vmul.f32 -1.442695, %v6352_v8 }
 0x595   :  { %6479 = vpow2.f32 %v4296_v7 }
 0x596   :  { %6481 = vpow2.f32 %v4297_v12 }
 0x59f   :  { %v6480_v22 = vpop.eup %6479 }
 0x5a0   :  { %v1463_v28 = vadd.f32 1.0, %v6480_v22  ;;  %v6482_v32 = vpop.eup %6481 }
 0x5a1   :  { %v1470_v36 = vadd.f32 1.0, %v6482_v32 }
 0x5a2   :  { %6483 = vrcp.f32 %v1463_v28 }
 0x5a3   :  { %6485 = vrcp.f32 %v1470_v36 }
 0x5ac   :  { %v6484_v37 = vpop.eup %6483 }
 0x5ad   :  { %v1473_v38 = vmul.f32 %v6484_v37, %v1456_v52  ;;  %v6486_v48 = vpop.eup %6485 }
 0x5ae   :  { %v1476_v55 = vsub.f32 1.0, %v6486_v48  ;;  %v1478_v24 = vmul.f32 %v6486_v48, %v7658_v19 }
 0x5af   :  { %v1474_v46 = vadd.f32 %v1473_v38, %v7295_v3 }
 0x5b1   :  { %6487 = vtanh.f32 %v1474_v46 }
 0x5bb   :  { %v6488_v61 = vpop.eup %6487 }
 0x5bc   :  { %v1477_v21 = vmul.f32 %v6488_v61, %v1476_v55  ;;  %v2123_v61 = vld [vmem:[%s8551_s6] sm:$0xff] }
 0x5be   :  { %v7702_v5 = vadd.f32 %v1478_v24, %v1477_v21  ;;  %v2126_v21 = vld [vmem:[%s8551_s6 + $0x18] sm:$0xff] }
 0x5c0   :  { %1594 = vmatmul.mubr.f32.vlgmr.msra.gmra.mrb[10].mxu0 %v7702_v5  ;;  %4883 = vmatmul.mubr.f32.vlgmr.msra.gmra.mrb[20].mxu1 %v7702_v5 }
 0x5c1   :  { %5678 = vmatpush1.bf16.msra.mxu0 %v7445_v54  ;;  %5709 = vmatpush3.bf16.msra.mxu1 %v7451_v44 }
 0x5c2   :  { %5680 = vmatprep.subr.bf16.mxu0 %v7461_v50  ;;  %5710 = vmatprep.subr.bf16.mxu1 %v6771_v18 }
 0x5c3   :  { %1804 = vmatprep.mubr.f32.mxu0 %v6770_v0  ;;  %4917 = vmatprep.mubr.msk.f32.mxu1 %vm6772_vm1, %v6770_v0 }
 0x5c5   :  { %5682 = vmatpush1.bf16.msra.mxu0 %v7473_v63  ;;  %5712 = vmatpush3.bf16.msra.mxu1 %v7479_v27 }
 0x5c6   :  { %5684 = vmatprep.subr.bf16.mxu0 %v7489_v4  ;;  %5713 = vmatprep.subr.bf16.mxu1 %v6771_v18 }
 0x5c9   :  { %5686 = vmatpush1.bf16.msra.mxu0 %v7501_v26  ;;  %5715 = vmatpush3.bf16.msra.mxu1 %v7507_v33 }
 0x5ca   :  { %5688 = vmatprep.subr.bf16.mxu0 %v7517_v29  ;;  %5716 = vmatprep.subr.bf16.mxu1 %v6771_v18 }
 0x5cd   :  { %5690 = vmatpush1.bf16.msra.mxu0 %v7529_v51  ;;  %5718 = vmatpush3.bf16.msra.mxu1 %v7535_v58 }
 0x5ce   :  { %5692 = vmatprep.subr.bf16.mxu0 %v7545_v2  ;;  %5719 = vmatprep.subr.bf16.mxu1 %v6771_v18 }
 0x5d1   :  { %5694 = vmatpush1.bf16.msra.mxu0 %v7557_v17  ;;  %5721 = vmatpush3.bf16.msra.mxu1 %v7563_v25 }
 0x5d2   :  { %5696 = vmatprep.subr.bf16.mxu0 %v7576_v42  ;;  %5722 = vmatprep.subr.bf16.mxu1 %v6771_v18 }
 0x5d5   :  { %5698 = vmatpush1.bf16.msra.mxu0 %v7588_v40  ;;  %5724 = vmatpush3.bf16.msra.mxu1 %v7590_v23 }
 0x5d6   :  { %5700 = vmatprep.subr.bf16.mxu0 %v7602_v10  ;;  %5725 = vmatprep.subr.bf16.mxu1 %v6771_v18 }
 0x5d9   :  { %5702 = vmatpush1.bf16.msra.mxu0 %v7614_v31  ;;  %5727 = vmatpush3.bf16.msra.mxu1 %v7624_v11 }
 0x5da   :  { %5704 = vmatprep.subr.bf16.mxu0 %v7626_v30  ;;  %5728 = vmatprep.subr.bf16.mxu1 %v6771_v18 }
 0x5dd   :  { %5706 = vmatpush1.bf16.msra.mxu0 %v7642_v45  ;;  %5730 = vmatpush3.bf16.msra.mxu1 %v7646_v53 }
 0x5de   :  { %5732 = vmatprep.subr.bf16.mxu0 %v7434_v60  ;;  %5763 = vmatprep.subr.bf16.mxu1 %v6771_v18 }
 0x693   :  { %v1595_v3 = vpop.f32.mrb[10].mxu0  ;;  %v1666_v6 = vpop.f32.mrb[20].mxu1 }
 0x694   :  { %v6354_v16 = vadd.f32 %v7367_v15, %v1595_v3  ;;  %v1597_v56 = vpop.f32.mrb[11].mxu0  ;;  %v4884_v34 = vpop.f32.mrb[21].mxu1  ;;  %v1667_v60 = vadd.f32 %v1666_v6, %v7322_v57  ;;  %v2130_v3 = vld [vmem:[%s8551_s6 + $0x38] sm:$0xff] }
 0x695   :  { %v6356_v59 = vadd.f32 %v7371_v49, %v1597_v56  ;;  %v2131_v56 = vld [vmem:[%s8551_s6 + $0x40] sm:$0xff]  ;;  %v2134_v34 = vld [vmem:[%s8551_s6 + $0x58] sm:$0xff] }
 0x696   :  { %v4298_v43 = vmul.f32 -1.442695, %v6354_v16 }
 0x697   :  { %v4299_v1 = vmul.f32 -1.442695, %v6356_v59 }
 0x698   :  { %6489 = vpow2.f32 %v4298_v43  ;;  %v5789_v43 = vpack.c.bf16 %v2126_v21, %v2123_v61  ;;  %v2153_v61 = vld [vmem:[%s8551_s6 + $0xf0] sm:$0xff]  ;;  %v2156_v21 = vld [vmem:[%s8551_s6 + $0x108] sm:$0xff] }
 0x699   :  { %6491 = vpow2.f32 %v4299_v1 }
 0x6a2   :  { %v6490_v7 = vpop.eup %6489 }
 0x6a3   :  { %v1674_v8 = vadd.f32 1.0, %v6490_v7  ;;  %v6492_v12 = vpop.eup %6491  ;;  %v2129_v7 = vld [vmem:[%s8551_s6 + $0x30] sm:$0xff] }
 0x6a4   :  { %v1681_v22 = vadd.f32 1.0, %v6492_v12  ;;  %v2136_v12 = vld [vmem:[%s8551_s6 + $0x68] sm:$0xff] }
 0x6a5   :  { %6493 = vrcp.f32 %v1674_v8  ;;  %v2132_v8 = vld [vmem:[%s8551_s6 + $0x48] sm:$0xff] }
 0x6a6   :  { %6495 = vrcp.f32 %v1681_v22  ;;  %v5823_v22 = vpack.c.bf16 %v2134_v34, %v2131_v56 }
 0x6af   :  { %v6494_v28 = vpop.eup %6493 }
 0x6b0   :  { %v1684_v32 = vmul.f32 %v6494_v28, %v1667_v60  ;;  %v6496_v52 = vpop.eup %6495  ;;  %v2139_v60 = vld [vmem:[%s8551_s6 + $0x80] sm:$0xff]  ;;  %v2137_v28 = vld [vmem:[%s8551_s6 + $0x70] sm:$0xff] }
 0x6b1   :  { %v1687_v37 = vsub.f32 1.0, %v6496_v52  ;;  %v1689_v48 = vmul.f32 %v6496_v52, %v7702_v5  ;;  %v5795_v52 = vpack.c.bf16 %v2139_v60, %v2136_v12  ;;  %v2167_v12 = vld [vmem:[%s8551_s6 + $0x160] sm:$0xff] }
 0x6b2   :  { %v1685_v36 = vadd.f32 %v1684_v32, %v7293_v62  ;;  %v2124_v62 = vld [vmem:[%s8551_s6 + $0x8] sm:$0xff] }
 0x6b3   :  { %v2140_v32 = vld [vmem:[%s8551_s6 + $0x88] sm:$0xff] }
 0x6b4   :  { %6497 = vtanh.f32 %v1685_v36  ;;  %v5793_v36 = vpack.c.bf16 %v2132_v8, %v2129_v7  ;;  %v2166_v7 = vld [vmem:[%s8551_s6 + $0x158] sm:$0xff]  ;;  %v2169_v8 = vld [vmem:[%s8551_s6 + $0x170] sm:$0xff] }
 0x6be   :  { %v6498_v38 = vpop.eup %6497 }
 0x6bf   :  { %v1688_v46 = vmul.f32 %v6498_v38, %v1687_v37  ;;  %v5827_v37 = vpack.c.bf16 %v2140_v32, %v2137_v28  ;;  %v2135_v38 = vld [vmem:[%s8551_s6 + $0x60] sm:$0xff]  ;;  %v5815_v28 = vpack.c.bf16 %v2169_v8, %v2166_v7 }
 0x6c0   :  { %v2468_v8 = vld [vmem:[#allocation8 + $0x158] sm:$0xff] }
 0x6c1   :  { %v7746_v55 = vadd.f32 %v1689_v48, %v1688_v46  ;;  %v2138_v46 = vld [vmem:[%s8551_s6 + $0x78] sm:$0xff] }
 0x6c2   :  { %v2142_v48 = vld [vmem:[%s8551_s6 + $0x98] sm:$0xff] }
 0x6c3   :  { %1805 = vmatmul.mubr.f32.vlgmr.msra.gmra.mrb[12].mxu0 %v7746_v55  ;;  %4918 = vmatmul.mubr.f32.vlgmr.msra.gmra.mrb[22].mxu1 %v7746_v55 }
 0x6c4   :  { %5734 = vmatpush1.bf16.msra.mxu0 %v7445_v54  ;;  %5765 = vmatpush3.bf16.msra.mxu1 %v7451_v44  ;;  %v2127_v54 = vld [vmem:[%s8551_s6 + $0x20] sm:$0xff]  ;;  %v2125_v44 = vld [vmem:[%s8551_s6 + $0x10] sm:$0xff] }
 0x6c5   :  { %5736 = vmatprep.subr.bf16.mxu0 %v7461_v50  ;;  %5766 = vmatprep.subr.bf16.mxu1 %v6771_v18  ;;  %v5787_v50 = vpack.c.bf16 %v2127_v54, %v2124_v62  ;;  %v2145_v62 = vld [vmem:[%s8551_s6 + $0xb0] sm:$0xff]  ;;  %v2143_v54 = vld [vmem:[%s8551_s6 + $0xa0] sm:$0xff] }
 0x6c6   :  { %2015 = vmatprep.mubr.f32.mxu0 %v6770_v0  ;;  %4952 = vmatprep.mubr.msk.f32.mxu1 %vm6772_vm1, %v6770_v0 }
 0x6c8   :  { %5738 = vmatpush1.bf16.msra.mxu0 %v7473_v63  ;;  %5768 = vmatpush3.bf16.msra.mxu1 %v7479_v27  ;;  %v2128_v63 = vld [vmem:[%s8551_s6 + $0x28] sm:$0xff] }
 0x6c9   :  { %5740 = vmatprep.subr.bf16.mxu0 %v7489_v4  ;;  %5769 = vmatprep.subr.bf16.mxu1 %v6771_v18  ;;  %v5819_v27 = vpack.c.bf16 %v2128_v63, %v2125_v44  ;;  %v2146_v44 = vld [vmem:[%s8551_s6 + $0xb8] sm:$0xff]  ;;  %v5799_v63 = vpack.c.bf16 %v2145_v62, %v2142_v48 }
 0x6ca   :  { %v2431_v62 = vld [vmem:[#allocation8 + $0x30] sm:$0xff] }
 0x6cc   :  { %5742 = vmatpush1.bf16.msra.mxu0 %v7501_v26  ;;  %5771 = vmatpush3.bf16.msra.mxu1 %v7507_v33 }
 0x6cd   :  { %5744 = vmatprep.subr.bf16.mxu0 %v7517_v29  ;;  %5772 = vmatprep.subr.bf16.mxu1 %v6771_v18 }
 0x6d0   :  { %5746 = vmatpush1.bf16.msra.mxu0 %v7529_v51  ;;  %5774 = vmatpush3.bf16.msra.mxu1 %v7535_v58 }
 0x6d1   :  { %5748 = vmatprep.subr.bf16.mxu0 %v7545_v2  ;;  %5775 = vmatprep.subr.bf16.mxu1 %v6771_v18 }
 0x6d4   :  { %5750 = vmatpush1.bf16.msra.mxu0 %v7557_v17  ;;  %5777 = vmatpush3.bf16.msra.mxu1 %v7563_v25 }
 0x6d5   :  { %5752 = vmatprep.subr.bf16.mxu0 %v7576_v42  ;;  %5778 = vmatprep.subr.bf16.mxu1 %v6771_v18 }
 0x6d8   :  { %5754 = vmatpush1.bf16.msra.mxu0 %v7588_v40  ;;  %5780 = vmatpush3.bf16.msra.mxu1 %v7590_v23 }
 0x6d9   :  { %5756 = vmatprep.subr.bf16.mxu0 %v7602_v10  ;;  %5781 = vmatprep.subr.bf16.mxu1 %v6771_v18 }
 0x6dc   :  { %5758 = vmatpush1.bf16.msra.mxu0 %v7614_v31  ;;  %5783 = vmatpush3.bf16.msra.mxu1 %v7624_v11 }
 0x6dd   :  { %5760 = vmatprep.subr.bf16.mxu0 %v7626_v30  ;;  %5784 = vmatprep.subr.bf16.mxu1 %v6771_v18 }
 0x6e0   :  { %5762 = vmatpush1.bf16.msra.mxu0 %v7642_v45  ;;  %5786 = vmatpush3.bf16.msra.mxu1 %v7646_v53 }
 0x6e1   :  { %5788 = vmatprep.subr.bf16.mxu0 %v5787_v50  ;;  %5820 = vmatprep.subr.bf16.mxu1 %v5819_v27  ;;  %v5797_v50 = vpack.c.bf16 %v2138_v46, %v2135_v38  ;;  %v2425_v38 = vld [vmem:[#allocation8] sm:$0xff] }
 0x796   :  { %v1806_v4 = vpop.f32.mrb[12].mxu0  ;;  %v1877_v26 = vpop.f32.mrb[22].mxu1 }
 0x797   :  { %v6358_v33 = vadd.f32 %v7367_v15, %v1806_v4  ;;  %v1808_v29 = vpop.f32.mrb[13].mxu0  ;;  %v4919_v51 = vpop.f32.mrb[23].mxu1  ;;  %v1878_v10 = vadd.f32 %v1877_v26, %v7322_v57  ;;  %v2141_v4 = vld [vmem:[%s8551_s6 + $0x90] sm:$0xff]  ;;  %v2144_v26 = vld [vmem:[%s8551_s6 + $0xa8] sm:$0xff] }
 0x798   :  { %v6360_v2 = vadd.f32 %v7371_v49, %v1808_v29  ;;  %v2151_v29 = vld [vmem:[%s8551_s6 + $0xe0] sm:$0xff]  ;;  %v2149_v51 = vld [vmem:[%s8551_s6 + $0xd0] sm:$0xff] }
 0x799   :  { %v4300_v58 = vmul.f32 -1.442695, %v6358_v33  ;;  %v2148_v33 = vld [vmem:[%s8551_s6 + $0xc8] sm:$0xff] }
 0x79a   :  { %v4301_v17 = vmul.f32 -1.442695, %v6360_v2  ;;  %v5801_v2 = vpack.c.bf16 %v2144_v26, %v2141_v4  ;;  %v2437_v4 = vld [vmem:[#allocation8 + $0x60] sm:$0xff]  ;;  %v2440_v26 = vld [vmem:[#allocation8 + $0x78] sm:$0xff] }
 0x79b   :  { %6499 = vpow2.f32 %v4300_v58  ;;  %v2152_v58 = vld [vmem:[%s8551_s6 + $0xe8] sm:$0xff] }
 0x79c   :  { %6501 = vpow2.f32 %v4301_v17  ;;  %v5803_v17 = vpack.c.bf16 %v2151_v29, %v2148_v33  ;;  %v7973_v33 = vpack.c.bf16 %v2440_v26, %v2437_v4  ;;  %v2444_v29 = vld [vmem:[#allocation8 + $0x98] sm:$0xff] }
 0x79d   :  { %v2460_v4 = vld [vmem:[#allocation8 + $0x118] sm:$0xff] }
 0x7a5   :  { %v6500_v25 = vpop.eup %6499 }
 0x7a6   :  { %v1885_v42 = vadd.f32 1.0, %v6500_v25  ;;  %v6502_v40 = vpop.eup %6501  ;;  %v5835_v25 = vpack.c.bf16 %v2152_v58, %v2149_v51  ;;  %v2447_v51 = vld [vmem:[#allocation8 + $0xb0] sm:$0xff] }
 0x7a7   :  { %v1892_v23 = vadd.f32 1.0, %v6502_v40  ;;  %v2150_v40 = vld [vmem:[%s8551_s6 + $0xd8] sm:$0xff]  ;;  %v7977_v58 = vpack.c.bf16 %v2447_v51, %v2444_v29  ;;  %v2466_v51 = vld [vmem:[#allocation8 + $0x148] sm:$0xff] }
 0x7a8   :  { %6503 = vrcp.f32 %v1885_v42  ;;  %v2147_v42 = vld [vmem:[%s8551_s6 + $0xc0] sm:$0xff]  ;;  %v2463_v29 = vld [vmem:[#allocation8 + $0x130] sm:$0xff] }
 0x7a9   :  { %6505 = vrcp.f32 %v1892_v23  ;;  %v2154_v23 = vld [vmem:[%s8551_s6 + $0xf8] sm:$0xff] }
 0x7b2   :  { %v6504_v31 = vpop.eup %6503 }
 0x7b3   :  { %v1895_v11 = vmul.f32 %v6504_v31, %v1878_v10  ;;  %v6506_v45 = vpop.eup %6505  ;;  %v2157_v10 = vld [vmem:[%s8551_s6 + $0x110] sm:$0xff]  ;;  %v2155_v31 = vld [vmem:[%s8551_s6 + $0x100] sm:$0xff] }
 0x7b4   :  { %v1898_v53 = vsub.f32 1.0, %v6506_v45  ;;  %v1900_v16 = vmul.f32 %v6506_v45, %v7746_v55  ;;  %v5807_v45 = vpack.c.bf16 %v2157_v10, %v2154_v23  ;;  %v2449_v10 = vld [vmem:[#allocation8 + $0xc0] sm:$0xff] }
 0x7b5   :  { %v1896_v30 = vadd.f32 %v1895_v11, %v7299_v13  ;;  %v2133_v13 = vld [vmem:[%s8551_s6 + $0x50] sm:$0xff]  ;;  %v2158_v11 = vld [vmem:[%s8551_s6 + $0x118] sm:$0xff] }
 0x7b6   :  { %v5791_v1 = vpack.c.bf16 %v2133_v13, %v2130_v3  ;;  %v2163_v3 = vld [vmem:[%s8551_s6 + $0x140] sm:$0xff]  ;;  %v2161_v13 = vld [vmem:[%s8551_s6 + $0x130] sm:$0xff] }
 0x7b7   :  { %6507 = vtanh.f32 %v1896_v30  ;;  %v5805_v30 = vpack.c.bf16 %v2150_v40, %v2147_v42  ;;  %v2450_v42 = vld [vmem:[#allocation8 + $0xc8] sm:$0xff]  ;;  %v2453_v40 = vld [vmem:[#allocation8 + $0xe0] sm:$0xff] }
 0x7b8   :  { %v7983_v23 = vpack.c.bf16 %v2453_v40, %v2450_v42  ;;  %v2472_v42 = vld [vmem:[#allocation8 + $0x178] sm:$0xff] }
 0x7c1   :  { %v6508_v24 = vpop.eup %6507 }
 0x7c2   :  { %v1899_v6 = vmul.f32 %v6508_v24, %v1898_v53  ;;  %v5839_v53 = vpack.c.bf16 %v2158_v11, %v2155_v31  ;;  %v2160_v24 = vld [vmem:[%s8551_s6 + $0x128] sm:$0xff]  ;;  %v2452_v31 = vld [vmem:[#allocation8 + $0xd8] sm:$0xff] }
 0x7c3   :  { %v5811_v56 = vpack.c.bf16 %v2163_v3, %v2160_v24  ;;  %v7985_v11 = vpack.c.bf16 %v2452_v31, %v2449_v10  ;;  %v2462_v3 = vld [vmem:[#allocation8 + $0x128] sm:$0xff] }
 0x7c4   :  { %v7818_v59 = vadd.f32 %v1900_v16, %v1899_v6  ;;  %v2164_v6 = vld [vmem:[%s8551_s6 + $0x148] sm:$0xff]  ;;  %v5809_v16 = vpack.c.bf16 %v2156_v21, %v2153_v61  ;;  %v2455_v61 = vld [vmem:[#allocation8 + $0xf0] sm:$0xff]  ;;  %v2458_v21 = vld [vmem:[#allocation8 + $0x108] sm:$0xff] }
 0x7c5   :  { %v5843_v34 = vpack.c.bf16 %v2164_v6, %v2161_v13  ;;  %v7991_v24 = vpack.c.bf16 %v2458_v21, %v2455_v61  ;;  %v2465_v13 = vld [vmem:[#allocation8 + $0x140] sm:$0xff] }
 0x7c6   :  { %2016 = vmatmul.mubr.f32.vlgmr.msra.gmra.mrb[14].mxu0 %v7818_v59  ;;  %4953 = vmatmul.mubr.f32.vlgmr.msra.gmra.mrb[24].mxu1 %v7818_v59  ;;  %v2461_v6 = vld [vmem:[#allocation8 + $0x120] sm:$0xff] }
 0x7c7   :  { %5790 = vmatpush1.bf16.msra.mxu0 %v5789_v43  ;;  %5822 = vmatpush3.bf16.msra.mxu1 %v5819_v27  ;;  %v5831_v27 = vpack.c.bf16 %v2146_v44, %v2143_v54  ;;  %v2159_v43 = vld [vmem:[%s8551_s6 + $0x120] sm:$0xff]  ;;  %v2434_v54 = vld [vmem:[#allocation8 + $0x48] sm:$0xff] }
 0x7c8   :  { %4987 = vmatprep.mubr.f32.mxu1 %v7326_v41  ;;  %5792 = vmatprep.subr.bf16.mxu0 %v5791_v1  ;;  %v2162_v1 = vld [vmem:[%s8551_s6 + $0x138] sm:$0xff]  ;;  %v7967_v44 = vpack.c.bf16 %v2434_v54, %v2431_v62  ;;  %v2454_v54 = vld [vmem:[#allocation8 + $0xe8] sm:$0xff] }
 0x7c9   :  { %5824 = vmatprep.subr.bf16.mxu1 %v5823_v22  ;;  %2252 = vmatprep.mubr.f32.mxu0 %v6770_v0  ;;  %v5813_v60 = vpack.c.bf16 %v2162_v1, %v2159_v43  ;;  %v2430_v43 = vld [vmem:[#allocation8 + $0x28] sm:$0xff]  ;;  %v2451_v62 = vld [vmem:[#allocation8 + $0xd0] sm:$0xff] }
 0x7cb   :  { %5794 = vmatpush1.bf16.msra.mxu0 %v5793_v36  ;;  %5826 = vmatpush3.bf16.msra.mxu1 %v5823_v22  ;;  %v2170_v22 = vld [vmem:[%s8551_s6 + $0x178] sm:$0xff]  ;;  %v2165_v36 = vld [vmem:[%s8551_s6 + $0x150] sm:$0xff] }
 0x7cc   :  { %5796 = vmatprep.subr.bf16.mxu0 %v5795_v52  ;;  %5828 = vmatprep.subr.bf16.mxu1 %v5827_v37  ;;  %v5847_v32 = vpack.c.bf16 %v2170_v22, %v2167_v12  ;;  %v2168_v52 = vld [vmem:[%s8551_s6 + $0x168] sm:$0xff]  ;;  %v2471_v12 = vld [vmem:[#allocation8 + $0x170] sm:$0xff] }
 0x7cd   :  { %v8002_v22 = vpack.c.bf16 %v2471_v12, %v2468_v8 }
 0x7cf   :  { %5798 = vmatpush1.bf16.msra.mxu0 %v5797_v50  ;;  %5830 = vmatpush3.bf16.msra.mxu1 %v5827_v37  ;;  %v5817_v37 = vpack.c.bf16 %v2168_v52, %v2165_v36  ;;  %v2438_v50 = vld [vmem:[#allocation8 + $0x68] sm:$0xff]  ;;  %v2433_v36 = vld [vmem:[#allocation8 + $0x40] sm:$0xff]  ;;  %v2436_v52 = vld [vmem:[#allocation8 + $0x58] sm:$0xff] }
 0x7d0   :  { %5800 = vmatprep.subr.bf16.mxu0 %v5799_v63  ;;  %5832 = vmatprep.subr.bf16.mxu1 %v5831_v27  ;;  %v2441_v63 = vld [vmem:[#allocation8 + $0x80] sm:$0xff] }
 0x7d3   :  { %5802 = vmatpush1.bf16.msra.mxu0 %v5801_v2  ;;  %5834 = vmatpush3.bf16.msra.mxu1 %v5831_v27  ;;  %v7971_v27 = vpack.c.bf16 %v2441_v63, %v2438_v50  ;;  %v2443_v2 = vld [vmem:[#allocation8 + $0x90] sm:$0xff]  ;;  %v8023_v50 = vpack.c.bf16 %v2454_v54, %v2451_v62  ;;  %v2457_v63 = vld [vmem:[#allocation8 + $0x100] sm:$0xff] }
 0x7d4   :  { %5804 = vmatprep.subr.bf16.mxu0 %v5803_v17  ;;  %5836 = vmatprep.subr.bf16.mxu1 %v5835_v25  ;;  %v2446_v17 = vld [vmem:[#allocation8 + $0xa8] sm:$0xff]  ;;  %v8027_v26 = vpack.c.bf16 %v2460_v4, %v2457_v63  ;;  %v8064_v63 = vld [vmem:[%s8546_s1 + $0x8] sm:$0xff] }
 0x7d5   :  { %v2171_v4 = vld [vmem:[#allocation10] sm:$0x7] }
 0x7d7   :  { %5806 = vmatpush1.bf16.msra.mxu0 %v5805_v30  ;;  %5838 = vmatpush3.bf16.msra.mxu1 %v5835_v25  ;;  %v7979_v25 = vpack.c.bf16 %v2446_v17, %v2443_v2  ;;  %v2456_v30 = vld [vmem:[#allocation8 + $0xf8] sm:$0xff]  ;;  %v8031_v2 = vpack.c.bf16 %v2466_v51, %v2463_v29  ;;  %v2469_v17 = vld [vmem:[#allocation8 + $0x160] sm:$0xff]  ;;  %v2176_v29 = vrot.slane %v2171_v4, %v7301_v14 }
 0x7d8   :  { %5808 = vmatprep.subr.bf16.mxu0 %v5807_v45  ;;  %5840 = vmatprep.subr.bf16.mxu1 %v5839_v53  ;;  %v2459_v45 = vld [vmem:[#allocation8 + $0x110] sm:$0xff]  ;;  %v8035_v40 = vpack.c.bf16 %v2472_v42, %v2469_v17  ;;  %v2180_v17 = vrot.slane %v2171_v4, %v7303_v20 }
 0x7db   :  { %5810 = vmatpush1.bf16.msra.mxu0 %v5809_v16  ;;  %5842 = vmatpush3.bf16.msra.mxu1 %v5839_v53  ;;  %v7989_v53 = vpack.c.bf16 %v2459_v45, %v2456_v30  ;;  %v7995_v16 = vpack.c.bf16 %v2465_v13, %v2462_v3 }
 0x7dc   :  { %5812 = vmatprep.subr.bf16.mxu0 %v5811_v56  ;;  %5844 = vmatprep.subr.bf16.mxu1 %v5843_v34  ;;  %v2464_v56 = vld [vmem:[#allocation8 + $0x138] sm:$0xff] }
 0x7dd   :  { %v7997_v1 = vpack.c.bf16 %v2464_v56, %v2461_v6 }
 0x7df   :  { %5814 = vmatpush1.bf16.msra.mxu0 %v5813_v60  ;;  %5846 = vmatpush3.bf16.msra.mxu1 %v5843_v34  ;;  %v2427_v34 = vld [vmem:[#allocation8 + $0x10] sm:$0xff] }
 0x7e0   :  { %5816 = vmatprep.subr.bf16.mxu0 %v5815_v28  ;;  %5848 = vmatprep.subr.bf16.mxu1 %v5847_v32  ;;  %v7999_v7 = vpack.c.bf16 %v2430_v43, %v2427_v34  ;;  %v2467_v60 = vld [vmem:[#allocation8 + $0x150] sm:$0xff]  ;;  %v2470_v28 = vld [vmem:[#allocation8 + $0x168] sm:$0xff] }
 0x7e3   :  { %5818 = vmatpush1.bf16.msra.mxu0 %v5817_v37  ;;  %5850 = vmatpush3.bf16.msra.mxu1 %v5847_v32  ;;  %v8008_v32 = vpack.c.bf16 %v2470_v28, %v2467_v60  ;;  %v8010_v37 = vpack.c.bf16 %v2436_v52, %v2433_v36 }
 0x7e4   :  { %5883 = vmatprep.subr.bf16.mxu1 %v6771_v18 }
 0x7e6   :  { %2253 = vmatmul.mubr.f32.vlgmr.msra.gmra.mrb[16].mxu0 %v7326_v41  ;;  %4988 = vmatmul.mubr.f32.vlgmr.msra.gmra.mrb[26].mxu1 %v7378_v35  ;;  %v2426_v41 = vld [vmem:[#allocation8 + $0x8] sm:$0xff] }
 0x7e7   :  { %4990 = vmatprep.mubr.f32.mxu1 %v7421_v39  ;;  %2258 = vmatprep.mubr.f32.mxu0 %v6770_v0 }
 0x7e8   :  { %5885 = vmatpush3.bf16.msra.mxu1 %v7999_v7 }
 0x7e9   :  { %5886 = vmatprep.subr.bf16.mxu1 %v6771_v18 }
 0x7ea   :  { %2259 = vmatmul.mubr.f32.gmra.mrb[18].mxu0 %v7378_v35  ;;  %4991 = vmatmul.mubr.f32.gmra.mrb[28].mxu1 %v7658_v19  ;;  %v2429_v35 = vld [vmem:[#allocation8 + $0x20] sm:$0xff] }
 0x7eb   :  { %4993 = vmatprep.mubr.f32.mxu1 %v7702_v5  ;;  %2264 = vmatprep.mubr.f32.mxu0 %v6770_v0 }
 0x7ec   :  { %5888 = vmatpush3.bf16.msra.mxu1 %v8010_v37 }
 0x7ed   :  { %5889 = vmatprep.subr.bf16.mxu1 %v6771_v18 }
 0x7ee   :  { %2265 = vmatmul.mubr.f32.gmra.mrb[20].mxu0 %v7421_v39  ;;  %4994 = vmatmul.mubr.f32.gmra.mrb[30].mxu1 %v7746_v55  ;;  %v7959_v39 = vpack.c.bf16 %v2429_v35, %v2426_v41  ;;  %v2439_v41 = vld [vmem:[#allocation8 + $0x70] sm:$0xff]  ;;  %v2442_v35 = vld [vmem:[#allocation8 + $0x88] sm:$0xff] }
 0x7ef   :  { %4996 = vmatprep.mubr.f32.mxu1 %v7818_v59  ;;  %2270 = vmatprep.mubr.f32.mxu0 %v6770_v0 }
 0x7f0   :  { %5852 = vmatprep.subr.bf16.mxu0 %v7959_v39 }
 0x7f2   :  { %2271 = vmatmul.mubr.f32.gmra.mrb[22].mxu0 %v7658_v19  ;;  %v2428_v19 = vld [vmem:[#allocation8 + $0x18] sm:$0xff] }
 0x7f3   :  { %2276 = vmatprep.mubr.f32.mxu0 %v6770_v0  ;;  %v7961_v46 = vpack.c.bf16 %v2428_v19, %v2425_v38  ;;  %v2445_v38 = vld [vmem:[#allocation8 + $0xa0] sm:$0xff]  ;;  %v8016_v19 = vpack.c.bf16 %v2442_v35, %v2439_v41 }
 0x7f5   :  { %5854 = vmatpush1.bf16.msra.mxu0 %v7961_v46  ;;  %5891 = vmatpush3.bf16.msra.mxu1 %v8016_v19 }
 0x7f6   :  { %2277 = vmatmul.mubr.f32.gmra.mrb[24].mxu0 %v7702_v5  ;;  %v2432_v5 = vld [vmem:[#allocation8 + $0x38] sm:$0xff]  ;;  %5892 = vmatprep.subr.bf16.mxu1 %v6771_v18 }
 0x7f7   :  { %2282 = vmatprep.mubr.f32.mxu0 %v6770_v0 }
 0x7fa   :  { %2283 = vmatmul.mubr.f32.gmra.mrb[26].mxu0 %v7746_v55  ;;  %v2435_v55 = vld [vmem:[#allocation8 + $0x50] sm:$0xff] }
 0x7fb   :  { %2288 = vmatprep.mubr.f32.mxu0 %v6770_v0  ;;  %v7965_v48 = vpack.c.bf16 %v2435_v55, %v2432_v5  ;;  %v2448_v5 = vld [vmem:[#allocation8 + $0xb8] sm:$0xff] }
 0x7fc   :  { %v8019_v55 = vpack.c.bf16 %v2448_v5, %v2445_v38 }
 0x7fd   :  { %5856 = vmatprep.subr.bf16.mxu0 %v7965_v48 }
 0x7fe   :  { %2289 = vmatmul.mubr.f32.gmra.mrb[28].mxu0 %v7818_v59  ;;  %5894 = vmatpush3.bf16.msra.mxu1 %v8019_v55 }
 0x7ff   :  { %2294 = vmatprep.mubr.f32.mxu0 %v6770_v0  ;;  %5858 = vmatpush1.bf16.msra.mxu0 %v7967_v44 }
 0x800   :  { %5860 = vmatprep.subr.bf16.mxu0 %v7971_v27  ;;  %5895 = vmatprep.subr.bf16.mxu1 %v6771_v18 }
 0x802   :  { %5897 = vmatpush3.bf16.msra.mxu1 %v8023_v50 }
 0x803   :  { %5862 = vmatpush1.bf16.msra.mxu0 %v7973_v33  ;;  %5898 = vmatprep.subr.bf16.mxu1 %v6771_v18 }
 0x804   :  { %5864 = vmatprep.subr.bf16.mxu0 %v7977_v58 }
 0x806   :  { %5900 = vmatpush3.bf16.msra.mxu1 %v8027_v26 }
 0x807   :  { %5866 = vmatpush1.bf16.msra.mxu0 %v7979_v25  ;;  %5901 = vmatprep.subr.bf16.mxu1 %v6771_v18 }
 0x808   :  { %5868 = vmatprep.subr.bf16.mxu0 %v7983_v23 }
 0x80a   :  { %5903 = vmatpush3.bf16.msra.mxu1 %v8031_v2 }
 0x80b   :  { %5870 = vmatpush1.bf16.msra.mxu0 %v7985_v11  ;;  %5904 = vmatprep.subr.bf16.mxu1 %v6771_v18 }
 0x80c   :  { %5872 = vmatprep.subr.bf16.mxu0 %v7989_v53 }
 0x80e   :  { %5906 = vmatpush3.bf16.msra.mxu1 %v8035_v40 }
 0x80f   :  { %5874 = vmatpush1.bf16.msra.mxu0 %v7991_v24  ;;  %5939 = vmatprep.subr.bf16.mxu1 %v6771_v18 }
 0x810   :  { %5876 = vmatprep.subr.bf16.mxu0 %v7995_v16 }
 0x813   :  { %5878 = vmatpush1.bf16.msra.mxu0 %v7997_v1 }
 0x814   :  { %5880 = vmatprep.subr.bf16.mxu0 %v8002_v22 }
 0x817   :  { %5882 = vmatpush1.bf16.msra.mxu0 %v8008_v32 }
 0x818   :  { %5908 = vmatprep.subr.bf16.mxu0 %v7959_v39 }
 0x899   :  { %v2017_v10 = vpop.f32.mrb[14].mxu0  ;;  %v2088_v31 = vpop.f32.mrb[24].mxu1 }
 0x89a   :  { %v6362_v30 = vadd.f32 %v7367_v15, %v2017_v10  ;;  %v2019_v45 = vpop.f32.mrb[15].mxu0  ;;  %v4954_v61 = vpop.f32.mrb[25].mxu1  ;;  %v2089_v8 = vadd.f32 %v2088_v31, %v7322_v57 }
 0x89b   :  { %v6364_v3 = vadd.f32 %v7371_v49, %v2019_v45 }
 0x89c   :  { %v4302_v21 = vmul.f32 -1.442695, %v6362_v30 }
 0x89d   :  { %v4303_v13 = vmul.f32 -1.442695, %v6364_v3 }
 0x89e   :  { %6509 = vpow2.f32 %v4302_v21 }
 0x89f   :  { %6511 = vpow2.f32 %v4303_v13 }
 0x8a8   :  { %v6510_v6 = vpop.eup %6509 }
 0x8a9   :  { %v2096_v56 = vadd.f32 1.0, %v6510_v6  ;;  %v6512_v34 = vpop.eup %6511 }
 0x8aa   :  { %v2103_v43 = vadd.f32 1.0, %v6512_v34 }
 0x8ab   :  { %6513 = vrcp.f32 %v2096_v56 }
 0x8ac   :  { %6515 = vrcp.f32 %v2103_v43 }
 0x8b5   :  { %v6514_v12 = vpop.eup %6513 }
 0x8b6   :  { %v2106_v60 = vmul.f32 %v6514_v12, %v2089_v8  ;;  %v6516_v41 = vpop.eup %6515 }
 0x8b7   :  { %v2109_v57 = vsub.f32 1.0, %v6516_v41  ;;  %v2111_v54 = vmul.f32 %v6516_v41, %v7818_v59  ;;  %v2406_v59 = vld [vmem:[#allocation11] sm:$0x7] }
 0x8b8   :  { %v2107_v15 = vadd.f32 %v2106_v60, %v7297_v9  ;;  %v2411_v51 = vrot.slane %v2406_v59, %v7301_v14  ;;  %v2415_v42 = vrot.slane %v2406_v59, %v7303_v20  ;;  %v8120_v8 = vrot.slane %v2406_v59, %v7284_v47 }
 0x8b9   :  { %v8044_v28 = vpop.f32.mrb[26].mxu1  ;;  %v8123_v60 = vrot.slane %v2171_v4, %v7284_v47 }
 0x8ba   :  { %6517 = vtanh.f32 %v2107_v15  ;;  %v8046_v36 = vpop.f32.mrb[27].mxu1  ;;  %v8111_v31 = vadd.f32 %v2411_v51, %v2176_v29  ;;  %v8115_v45 = vadd.f32 %v2415_v42, %v2180_v17 }
 0x8bd   :  { %v8048_v49 = vpop.f32.mrb[28].mxu1 }
 0x8be   :  { %v8050_v52 = vpop.f32.mrb[29].mxu1 }
 0x8c1   :  { %v8052_v35 = vpop.f32.mrb[30].mxu1 }
 0x8c2   :  { %v8054_v38 = vpop.f32.mrb[31].mxu1 }
 0x8c4   :  { %v6518_v5 = vpop.eup %6517 }
 0x8c5   :  { %v2110_v62 = vmul.f32 %v6518_v5, %v2109_v57  ;;  %v2368_v5 = vadd.f32 %v8046_v36, %v8123_v60 }
 0x8c7   :  { %v2112_v9 = vadd.f32 %v2111_v54, %v2110_v62 }
 0x8c9   :  { %2114 = vst [vmem:[%s8558_s13] sm:$0xff] %v2112_v9  ;;  %2295 = vmatmul.mubr.f32.gmra.mrb[30].mxu0 %v2112_v9  ;;  %4997 = vmatmul.mubr.f32.gmra.mrb[32].mxu1 %v2112_v9 }
 0x8ca   :  { %2537 = vmatprep.mubr.f32.mxu0 %v6770_v0  ;;  %5031 = vmatprep.mubr.msk.f32.mxu1 %vm6772_vm1, %v6770_v0 }
 0x8cd   :  { %2538 = vmatmul.mubr.f32.vlgmr.msra.gmra.mrb[16].mxu0 %v8064_v63  ;;  %5032 = vmatmul.mubr.f32.vlgmr.msra.gmra.mrb[34].mxu1 %v8064_v63 }
 0x8ce   :  { %5910 = vmatpush1.bf16.msra.mxu0 %v7961_v46  ;;  %5941 = vmatpush3.bf16.msra.mxu1 %v7999_v7 }
 0x8cf   :  { %5912 = vmatprep.subr.bf16.mxu0 %v7965_v48  ;;  %5942 = vmatprep.subr.bf16.mxu1 %v6771_v18 }
 0x8d0   :  { %2748 = vmatprep.mubr.f32.mxu0 %v6770_v0  ;;  %5066 = vmatprep.mubr.msk.f32.mxu1 %vm6772_vm1, %v6770_v0 }
 0x8d2   :  { %5914 = vmatpush1.bf16.msra.mxu0 %v7967_v44  ;;  %5944 = vmatpush3.bf16.msra.mxu1 %v8010_v37 }
 0x8d3   :  { %5916 = vmatprep.subr.bf16.mxu0 %v7971_v27  ;;  %5945 = vmatprep.subr.bf16.mxu1 %v6771_v18 }
 0x8d6   :  { %5918 = vmatpush1.bf16.msra.mxu0 %v7973_v33  ;;  %5947 = vmatpush3.bf16.msra.mxu1 %v8016_v19 }
 0x8d7   :  { %5920 = vmatprep.subr.bf16.mxu0 %v7977_v58  ;;  %5948 = vmatprep.subr.bf16.mxu1 %v6771_v18 }
 0x8da   :  { %5922 = vmatpush1.bf16.msra.mxu0 %v7979_v25  ;;  %5950 = vmatpush3.bf16.msra.mxu1 %v8019_v55 }
 0x8db   :  { %5924 = vmatprep.subr.bf16.mxu0 %v7983_v23  ;;  %5951 = vmatprep.subr.bf16.mxu1 %v6771_v18 }
 0x8de   :  { %5926 = vmatpush1.bf16.msra.mxu0 %v7985_v11  ;;  %5953 = vmatpush3.bf16.msra.mxu1 %v8023_v50 }
 0x8df   :  { %5928 = vmatprep.subr.bf16.mxu0 %v7989_v53  ;;  %5954 = vmatprep.subr.bf16.mxu1 %v6771_v18 }
 0x8e2   :  { %5930 = vmatpush1.bf16.msra.mxu0 %v7991_v24  ;;  %5956 = vmatpush3.bf16.msra.mxu1 %v8027_v26 }
 0x8e3   :  { %5932 = vmatprep.subr.bf16.mxu0 %v7995_v16  ;;  %5957 = vmatprep.subr.bf16.mxu1 %v6771_v18 }
 0x8e6   :  { %5934 = vmatpush1.bf16.msra.mxu0 %v7997_v1  ;;  %5959 = vmatpush3.bf16.msra.mxu1 %v8031_v2 }
 0x8e7   :  { %5936 = vmatprep.subr.bf16.mxu0 %v8002_v22  ;;  %5960 = vmatprep.subr.bf16.mxu1 %v6771_v18 }
 0x8ea   :  { %5938 = vmatpush1.bf16.msra.mxu0 %v8008_v32  ;;  %5962 = vmatpush3.bf16.msra.mxu1 %v8035_v40 }
 0x8eb   :  { %5964 = vmatprep.subr.bf16.mxu0 %v7959_v39  ;;  %5995 = vmatprep.subr.bf16.mxu1 %v6771_v18 }
 0x99c   :  { %v8109_v10 = vpop.f32.mrb[32].mxu1 }
 0x99d   :  { %v8113_v30 = vpop.f32.mrb[33].mxu1 }
 0x9a0   :  { %v2539_v61 = vpop.f32.mrb[16].mxu0  ;;  %v2610_v21 = vpop.f32.mrb[34].mxu1 }
 0x9a1   :  { %v6366_v3 = vadd.f32 %v8111_v31, %v2539_v61  ;;  %v2541_v13 = vpop.f32.mrb[17].mxu0  ;;  %v5033_v6 = vpop.f32.mrb[35].mxu1  ;;  %v2611_v41 = vadd.f32 %v2610_v21, %v8120_v8 }
 0x9a2   :  { %v6368_v14 = vadd.f32 %v8115_v45, %v2541_v13 }
 0x9a3   :  { %v4305_v56 = vmul.f32 -1.442695, %v6366_v3 }
 0x9a4   :  { %v4306_v34 = vmul.f32 -1.442695, %v6368_v14 }
 0x9a5   :  { %6519 = vpow2.f32 %v4305_v56 }
 0x9a6   :  { %6521 = vpow2.f32 %v4306_v34 }
 0x9af   :  { %v6520_v20 = vpop.eup %6519 }
 0x9b0   :  { %v2618_v43 = vadd.f32 1.0, %v6520_v20  ;;  %v6522_v12 = vpop.eup %6521 }
 0x9b1   :  { %v2625_v15 = vadd.f32 1.0, %v6522_v12 }
 0x9b2   :  { %6523 = vrcp.f32 %v2618_v43  ;;  %v2373_v43 = vadd.f32 %v8044_v28, %v8123_v60 }
 0x9b3   :  { %6525 = vrcp.f32 %v2625_v15 }
 0x9bc   :  { %v6524_v57 = vpop.eup %6523 }
 0x9bd   :  { %v2628_v62 = vmul.f32 %v6524_v57, %v2611_v41  ;;  %v6526_v9 = vpop.eup %6525 }
 0x9be   :  { %v2631_v29 = vsub.f32 1.0, %v6526_v9  ;;  %v2633_v17 = vmul.f32 %v6526_v9, %v8064_v63 }
 0x9bf   :  { %v2629_v54 = vadd.f32 %v2628_v62, %v2368_v5 }
 0x9c1   :  { %6527 = vtanh.f32 %v2629_v54 }
 0x9cb   :  { %v6528_v51 = vpop.eup %6527 }
 0x9cc   :  { %v2632_v59 = vmul.f32 %v6528_v51, %v2631_v29 }
 0x9ce   :  { %v8129_v42 = vadd.f32 %v2633_v17, %v2632_v59 }
 0x9d0   :  { %2749 = vmatmul.mubr.f32.vlgmr.msra.gmra.mrb[18].mxu0 %v8129_v42  ;;  %5067 = vmatmul.mubr.f32.vlgmr.msra.gmra.mrb[36].mxu1 %v8129_v42 }
 0x9d1   :  { %5966 = vmatpush1.bf16.msra.mxu0 %v7961_v46  ;;  %5997 = vmatpush3.bf16.msra.mxu1 %v7999_v7 }
 0x9d2   :  { %5968 = vmatprep.subr.bf16.mxu0 %v7965_v48  ;;  %5998 = vmatprep.subr.bf16.mxu1 %v6771_v18 }
 0x9d3   :  { %2959 = vmatprep.mubr.f32.mxu0 %v6770_v0  ;;  %5101 = vmatprep.mubr.msk.f32.mxu1 %vm6772_vm1, %v6770_v0 }
 0x9d5   :  { %5970 = vmatpush1.bf16.msra.mxu0 %v7967_v44  ;;  %6000 = vmatpush3.bf16.msra.mxu1 %v8010_v37 }
 0x9d6   :  { %5972 = vmatprep.subr.bf16.mxu0 %v7971_v27  ;;  %6001 = vmatprep.subr.bf16.mxu1 %v6771_v18 }
 0x9d9   :  { %5974 = vmatpush1.bf16.msra.mxu0 %v7973_v33  ;;  %6003 = vmatpush3.bf16.msra.mxu1 %v8016_v19 }
 0x9da   :  { %5976 = vmatprep.subr.bf16.mxu0 %v7977_v58  ;;  %6004 = vmatprep.subr.bf16.mxu1 %v6771_v18 }
 0x9dd   :  { %5978 = vmatpush1.bf16.msra.mxu0 %v7979_v25  ;;  %6006 = vmatpush3.bf16.msra.mxu1 %v8019_v55 }
 0x9de   :  { %5980 = vmatprep.subr.bf16.mxu0 %v7983_v23  ;;  %6007 = vmatprep.subr.bf16.mxu1 %v6771_v18 }
 0x9e1   :  { %5982 = vmatpush1.bf16.msra.mxu0 %v7985_v11  ;;  %6009 = vmatpush3.bf16.msra.mxu1 %v8023_v50 }
 0x9e2   :  { %5984 = vmatprep.subr.bf16.mxu0 %v7989_v53  ;;  %6010 = vmatprep.subr.bf16.mxu1 %v6771_v18 }
 0x9e5   :  { %5986 = vmatpush1.bf16.msra.mxu0 %v7991_v24  ;;  %6012 = vmatpush3.bf16.msra.mxu1 %v8027_v26 }
 0x9e6   :  { %5988 = vmatprep.subr.bf16.mxu0 %v7995_v16  ;;  %6013 = vmatprep.subr.bf16.mxu1 %v6771_v18 }
 0x9e9   :  { %5990 = vmatpush1.bf16.msra.mxu0 %v7997_v1  ;;  %6015 = vmatpush3.bf16.msra.mxu1 %v8031_v2 }
 0x9ea   :  { %5992 = vmatprep.subr.bf16.mxu0 %v8002_v22  ;;  %6016 = vmatprep.subr.bf16.mxu1 %v6771_v18 }
 0x9ed   :  { %5994 = vmatpush1.bf16.msra.mxu0 %v8008_v32  ;;  %6018 = vmatpush3.bf16.msra.mxu1 %v8035_v40 }
 0x9ee   :  { %6020 = vmatprep.subr.bf16.mxu0 %v7959_v39  ;;  %6051 = vmatprep.subr.bf16.mxu1 %v6771_v18 }
 0xaa3   :  { %v2750_v47 = vpop.f32.mrb[18].mxu0  ;;  %v2821_v36 = vpop.f32.mrb[36].mxu1 }
 0xaa4   :  { %v6370_v63 = vadd.f32 %v8111_v31, %v2750_v47  ;;  %v2752_v4 = vpop.f32.mrb[19].mxu0  ;;  %v5068_v61 = vpop.f32.mrb[37].mxu1  ;;  %v2822_v39 = vadd.f32 %v2821_v36, %v8120_v8 }
 0xaa5   :  { %v6372_v3 = vadd.f32 %v8115_v45, %v2752_v4  ;;  %v3275_v61 = vld [vmem:[#allocation8 + $0x30] sm:$0xff] }
 0xaa6   :  { %v4307_v21 = vmul.f32 -1.442695, %v6370_v63 }
 0xaa7   :  { %v4308_v13 = vmul.f32 -1.442695, %v6372_v3  ;;  %v3282_v3 = vld [vmem:[#allocation8 + $0x68] sm:$0xff] }
 0xaa8   :  { %6529 = vpow2.f32 %v4307_v21 }
 0xaa9   :  { %6531 = vpow2.f32 %v4308_v13  ;;  %v3285_v13 = vld [vmem:[#allocation8 + $0x80] sm:$0xff] }
 0xab2   :  { %v6530_v6 = vpop.eup %6529 }
 0xab3   :  { %v2829_v56 = vadd.f32 1.0, %v6530_v6  ;;  %v6532_v14 = vpop.eup %6531  ;;  %v8251_v6 = vpack.c.bf16 %v3285_v13, %v3282_v3 }
 0xab4   :  { %v2836_v34 = vadd.f32 1.0, %v6532_v14  ;;  %v3284_v14 = vld [vmem:[#allocation8 + $0x78] sm:$0xff] }
 0xab5   :  { %6533 = vrcp.f32 %v2829_v56  ;;  %v3281_v56 = vld [vmem:[#allocation8 + $0x60] sm:$0xff] }
 0xab6   :  { %6535 = vrcp.f32 %v2836_v34  ;;  %v8253_v34 = vpack.c.bf16 %v3284_v14, %v3281_v56 }
 0xabf   :  { %v6534_v20 = vpop.eup %6533 }
 0xac0   :  { %v2839_v12 = vmul.f32 %v6534_v20, %v2822_v39  ;;  %v6536_v41 = vpop.eup %6535  ;;  %v3288_v39 = vld [vmem:[#allocation8 + $0x98] sm:$0xff]  ;;  %v3291_v20 = vld [vmem:[#allocation8 + $0xb0] sm:$0xff] }
 0xac1   :  { %v2842_v57 = vsub.f32 1.0, %v6536_v41  ;;  %v2844_v54 = vmul.f32 %v6536_v41, %v8129_v42 }
 0xac2   :  { %v2840_v15 = vadd.f32 %v2839_v12, %v2373_v43  ;;  %v8257_v43 = vpack.c.bf16 %v3291_v20, %v3288_v39  ;;  %v3287_v12 = vld [vmem:[#allocation8 + $0x90] sm:$0xff] }
 0xac4   :  { %6537 = vtanh.f32 %v2840_v15  ;;  %v3290_v15 = vld [vmem:[#allocation8 + $0xa8] sm:$0xff] }
 0xac5   :  { %v8259_v41 = vpack.c.bf16 %v3290_v15, %v3287_v12  ;;  %v2383_v15 = vadd.f32 %v8048_v49, %v8123_v60  ;;  %v3482_v49 = vld [vmem:[#allocation8 + $0x10] sm:$0xff] }
 0xace   :  { %v6538_v5 = vpop.eup %6537 }
 0xacf   :  { %v2843_v62 = vmul.f32 %v6538_v5, %v2842_v57  ;;  %v3294_v57 = vld [vmem:[#allocation8 + $0xc8] sm:$0xff]  ;;  %v3297_v5 = vld [vmem:[#allocation8 + $0xe0] sm:$0xff] }
 0xad1   :  { %v8174_v9 = vadd.f32 %v2844_v54, %v2843_v62  ;;  %v8263_v62 = vpack.c.bf16 %v3297_v5, %v3294_v57  ;;  %v3293_v54 = vld [vmem:[#allocation8 + $0xc0] sm:$0xff] }
 0xad3   :  { %2960 = vmatmul.mubr.f32.vlgmr.msra.gmra.mrb[20].mxu0 %v8174_v9  ;;  %5102 = vmatmul.mubr.f32.vlgmr.msra.gmra.mrb[38].mxu1 %v8174_v9 }
 0xad4   :  { %6022 = vmatpush1.bf16.msra.mxu0 %v7961_v46  ;;  %6053 = vmatpush3.bf16.msra.mxu1 %v7999_v7 }
 0xad5   :  { %6024 = vmatprep.subr.bf16.mxu0 %v7965_v48  ;;  %6054 = vmatprep.subr.bf16.mxu1 %v6771_v18 }
 0xad6   :  { %3170 = vmatprep.mubr.f32.mxu0 %v6770_v0  ;;  %5136 = vmatprep.mubr.msk.f32.mxu1 %vm6772_vm1, %v6770_v0 }
 0xad8   :  { %6026 = vmatpush1.bf16.msra.mxu0 %v7967_v44  ;;  %6056 = vmatpush3.bf16.msra.mxu1 %v8010_v37 }
 0xad9   :  { %6028 = vmatprep.subr.bf16.mxu0 %v7971_v27  ;;  %6057 = vmatprep.subr.bf16.mxu1 %v6771_v18 }
 0xadc   :  { %6030 = vmatpush1.bf16.msra.mxu0 %v7973_v33  ;;  %6059 = vmatpush3.bf16.msra.mxu1 %v8016_v19 }
 0xadd   :  { %6032 = vmatprep.subr.bf16.mxu0 %v7977_v58  ;;  %6060 = vmatprep.subr.bf16.mxu1 %v6771_v18 }
 0xae0   :  { %6034 = vmatpush1.bf16.msra.mxu0 %v7979_v25  ;;  %6062 = vmatpush3.bf16.msra.mxu1 %v8019_v55 }
 0xae1   :  { %6036 = vmatprep.subr.bf16.mxu0 %v7983_v23  ;;  %6063 = vmatprep.subr.bf16.mxu1 %v6771_v18 }
 0xae4   :  { %6038 = vmatpush1.bf16.msra.mxu0 %v7985_v11  ;;  %6065 = vmatpush3.bf16.msra.mxu1 %v8023_v50 }
 0xae5   :  { %6040 = vmatprep.subr.bf16.mxu0 %v7989_v53  ;;  %6066 = vmatprep.subr.bf16.mxu1 %v6771_v18 }
 0xae8   :  { %6042 = vmatpush1.bf16.msra.mxu0 %v7991_v24  ;;  %6068 = vmatpush3.bf16.msra.mxu1 %v8027_v26 }
 0xae9   :  { %6044 = vmatprep.subr.bf16.mxu0 %v7995_v16  ;;  %6069 = vmatprep.subr.bf16.mxu1 %v6771_v18 }
 0xaec   :  { %6046 = vmatpush1.bf16.msra.mxu0 %v7997_v1  ;;  %6071 = vmatpush3.bf16.msra.mxu1 %v8031_v2 }
 0xaed   :  { %6048 = vmatprep.subr.bf16.mxu0 %v8002_v22  ;;  %6072 = vmatprep.subr.bf16.mxu1 %v6771_v18 }
 0xaf0   :  { %6050 = vmatpush1.bf16.msra.mxu0 %v8008_v32  ;;  %6074 = vmatpush3.bf16.msra.mxu1 %v8035_v40  ;;  %v2378_v32 = vadd.f32 %v8050_v52, %v8123_v60  ;;  %v3269_v52 = vld [vmem:[#allocation8] sm:$0xff] }
 0xaf1   :  { %6107 = vmatprep.subr.bf16.mxu1 %v6771_v18 }
 0xba6   :  { %v2961_v46 = vpop.f32.mrb[20].mxu0  ;;  %v3032_v48 = vpop.f32.mrb[38].mxu1 }
 0xba7   :  { %v6374_v44 = vadd.f32 %v8111_v31, %v2961_v46  ;;  %v2963_v27 = vpop.f32.mrb[21].mxu0  ;;  %v5103_v33 = vpop.f32.mrb[39].mxu1  ;;  %v3033_v1 = vadd.f32 %v3032_v48, %v8120_v8  ;;  %v3296_v46 = vld [vmem:[#allocation8 + $0xd8] sm:$0xff] }
 0xba8   :  { %v6376_v25 = vadd.f32 %v8115_v45, %v2963_v27  ;;  %v8265_v48 = vpack.c.bf16 %v3296_v46, %v3293_v54  ;;  %v3303_v27 = vld [vmem:[#allocation8 + $0x110] sm:$0xff] }
 0xba9   :  { %v4309_v58 = vmul.f32 -1.442695, %v6374_v44  ;;  %v3300_v44 = vld [vmem:[#allocation8 + $0xf8] sm:$0xff]  ;;  %v3299_v33 = vld [vmem:[#allocation8 + $0xf0] sm:$0xff] }
 0xbaa   :  { %v4310_v23 = vmul.f32 -1.442695, %v6376_v25  ;;  %v3302_v25 = vld [vmem:[#allocation8 + $0x108] sm:$0xff] }
 0xbab   :  { %6539 = vpow2.f32 %v4309_v58  ;;  %v8269_v58 = vpack.c.bf16 %v3303_v27, %v3300_v44 }
 0xbac   :  { %6541 = vpow2.f32 %v4310_v23  ;;  %v3306_v23 = vld [vmem:[#allocation8 + $0x128] sm:$0xff] }
 0xbb5   :  { %v6540_v11 = vpop.eup %6539 }
 0xbb6   :  { %v3040_v53 = vadd.f32 1.0, %v6540_v11  ;;  %v6542_v24 = vpop.eup %6541  ;;  %v3309_v11 = vld [vmem:[#allocation8 + $0x140] sm:$0xff] }
 0xbb7   :  { %v3047_v16 = vadd.f32 1.0, %v6542_v24  ;;  %v8273_v24 = vpack.c.bf16 %v3309_v11, %v3306_v23  ;;  %v3485_v23 = vld [vmem:[#allocation8 + $0x28] sm:$0xff] }
 0xbb8   :  { %6543 = vrcp.f32 %v3040_v53  ;;  %v8271_v53 = vpack.c.bf16 %v3302_v25, %v3299_v33  ;;  %v8321_v11 = vpack.c.bf16 %v3485_v23, %v3482_v49 }
 0xbb9   :  { %6545 = vrcp.f32 %v3047_v16  ;;  %v3305_v16 = vld [vmem:[#allocation8 + $0x120] sm:$0xff] }
 0xbc2   :  { %v6544_v22 = vpop.eup %6543 }
 0xbc3   :  { %v3050_v40 = vmul.f32 %v6544_v22, %v3033_v1  ;;  %v6546_v29 = vpop.eup %6545  ;;  %v3308_v1 = vld [vmem:[#allocation8 + $0x138] sm:$0xff] }
 0xbc4   :  { %v3053_v51 = vsub.f32 1.0, %v6546_v29  ;;  %v3055_v47 = vmul.f32 %v6546_v29, %v8174_v9  ;;  %v3312_v22 = vld [vmem:[#allocation8 + $0x158] sm:$0xff]  ;;  %v8277_v29 = vpack.c.bf16 %v3308_v1, %v3305_v16  ;;  %v3488_v16 = vld [vmem:[#allocation8 + $0x40] sm:$0xff] }
 0xbc5   :  { %v3051_v28 = vadd.f32 %v3050_v40, %v2378_v32  ;;  %v3315_v32 = vld [vmem:[#allocation8 + $0x170] sm:$0xff]  ;;  %v3313_v40 = vld [vmem:[#allocation8 + $0x160] sm:$0xff]  ;;  %v3491_v1 = vld [vmem:[#allocation8 + $0x58] sm:$0xff] }
 0xbc7   :  { %6547 = vtanh.f32 %v3051_v28  ;;  %v3316_v28 = vld [vmem:[#allocation8 + $0x178] sm:$0xff] }
 0xbd1   :  { %v6548_v59 = vpop.eup %6547 }
 0xbd2   :  { %v3054_v17 = vmul.f32 %v6548_v59, %v3053_v51  ;;  %v8279_v51 = vpack.c.bf16 %v3316_v28, %v3313_v40  ;;  %v8282_v59 = vpack.c.bf16 %v3315_v32, %v3312_v22  ;;  %v8325_v22 = vpack.c.bf16 %v3491_v1, %v3488_v16  ;;  %v3494_v32 = vld [vmem:[#allocation8 + $0x70] sm:$0xff]  ;;  %v3497_v40 = vld [vmem:[#allocation8 + $0x88] sm:$0xff] }
 0xbd3   :  { %v8329_v28 = vpack.c.bf16 %v3497_v40, %v3494_v32  ;;  %v2388_v16 = vadd.f32 %v8054_v38, %v8123_v60 }
 0xbd4   :  { %v8218_v36 = vadd.f32 %v3055_v47, %v3054_v17  ;;  %v3311_v17 = vld [vmem:[#allocation8 + $0x150] sm:$0xff]  ;;  %v3314_v47 = vld [vmem:[#allocation8 + $0x168] sm:$0xff] }
 0xbd6   :  { %3171 = vmatmul.mubr.f32.vlgmr.msra.gmra.mrb[22].mxu0 %v8218_v36  ;;  %5137 = vmatmul.mubr.f32.vlgmr.msra.gmra.mrb[40].mxu1 %v8218_v36 }
 0xbd7   :  { %6109 = vmatpush3.bf16.msra.mxu1 %v7999_v7  ;;  %3381 = vmatprep.mubr.f32.mxu0 %v6770_v0  ;;  %v3270_v7 = vld [vmem:[#allocation8 + $0x8] sm:$0xff] }
 0xbd8   :  { %6110 = vmatprep.subr.bf16.mxu1 %v6771_v18  ;;  %5171 = vmatprep.mubr.msk.f32.mxu1 %vm6772_vm1, %v6770_v0 }
 0xbdb   :  { %6112 = vmatpush3.bf16.msra.mxu1 %v8010_v37  ;;  %v3273_v37 = vld [vmem:[#allocation8 + $0x20] sm:$0xff] }
 0xbdc   :  { %6113 = vmatprep.subr.bf16.mxu1 %v6771_v18 }
 0xbdf   :  { %6115 = vmatpush3.bf16.msra.mxu1 %v8016_v19  ;;  %v8239_v19 = vpack.c.bf16 %v3273_v37, %v3270_v7  ;;  %v8287_v7 = vpack.c.bf16 %v3314_v47, %v3311_v17  ;;  %v3500_v17 = vld [vmem:[#allocation8 + $0xa0] sm:$0xff]  ;;  %v3503_v47 = vld [vmem:[#allocation8 + $0xb8] sm:$0xff] }
 0xbe0   :  { %6116 = vmatprep.subr.bf16.mxu1 %v6771_v18 }
 0xbe1   :  { %6076 = vmatprep.subr.bf16.mxu0 %v8239_v19 }
 0xbe3   :  { %6118 = vmatpush3.bf16.msra.mxu1 %v8019_v55  ;;  %v3272_v55 = vld [vmem:[#allocation8 + $0x18] sm:$0xff] }
 0xbe4   :  { %6119 = vmatprep.subr.bf16.mxu1 %v6771_v18  ;;  %v8241_v63 = vpack.c.bf16 %v3272_v55, %v3269_v52 }
 0xbe6   :  { %6078 = vmatpush1.bf16.msra.mxu0 %v8241_v63 }
 0xbe7   :  { %6121 = vmatpush3.bf16.msra.mxu1 %v8023_v50  ;;  %v3276_v50 = vld [vmem:[#allocation8 + $0x38] sm:$0xff] }
 0xbe8   :  { %6122 = vmatprep.subr.bf16.mxu1 %v6771_v18 }
 0xbeb   :  { %6124 = vmatpush3.bf16.msra.mxu1 %v8027_v26  ;;  %v3279_v26 = vld [vmem:[#allocation8 + $0x50] sm:$0xff] }
 0xbec   :  { %6125 = vmatprep.subr.bf16.mxu1 %v6771_v18  ;;  %v8245_v4 = vpack.c.bf16 %v3279_v26, %v3276_v50 }
 0xbee   :  { %6080 = vmatprep.subr.bf16.mxu0 %v8245_v4 }
 0xbef   :  { %6127 = vmatpush3.bf16.msra.mxu1 %v8031_v2  ;;  %v3278_v2 = vld [vmem:[#allocation8 + $0x48] sm:$0xff] }
 0xbf0   :  { %6128 = vmatprep.subr.bf16.mxu1 %v6771_v18  ;;  %v8247_v21 = vpack.c.bf16 %v3278_v2, %v3275_v61 }
 0xbf2   :  { %6082 = vmatpush1.bf16.msra.mxu0 %v8247_v21 }
 0xbf3   :  { %6084 = vmatprep.subr.bf16.mxu0 %v8251_v6  ;;  %6130 = vmatpush3.bf16.msra.mxu1 %v8279_v51 }
 0xbf4   :  { %6163 = vmatprep.subr.bf16.mxu1 %v6771_v18 }
 0xbf6   :  { %6086 = vmatpush1.bf16.msra.mxu0 %v8253_v34 }
 0xbf7   :  { %6088 = vmatprep.subr.bf16.mxu0 %v8257_v43 }
 0xbfa   :  { %6090 = vmatpush1.bf16.msra.mxu0 %v8259_v41 }
 0xbfb   :  { %6092 = vmatprep.subr.bf16.mxu0 %v8263_v62 }
 0xbfe   :  { %6094 = vmatpush1.bf16.msra.mxu0 %v8265_v48 }
 0xbff   :  { %6096 = vmatprep.subr.bf16.mxu0 %v8269_v58 }
 0xc02   :  { %6098 = vmatpush1.bf16.msra.mxu0 %v8271_v53 }
 0xc03   :  { %6100 = vmatprep.subr.bf16.mxu0 %v8273_v24 }
 0xc06   :  { %6102 = vmatpush1.bf16.msra.mxu0 %v8277_v29 }
 0xc07   :  { %6104 = vmatprep.subr.bf16.mxu0 %v8282_v59 }
 0xc0a   :  { %6106 = vmatpush1.bf16.msra.mxu0 %v8287_v7 }
 0xc0b   :  { %6132 = vmatprep.subr.bf16.mxu0 %v8239_v19 }
 0xca9   :  { %v3172_v37 = vpop.f32.mrb[22].mxu0  ;;  %v3243_v52 = vpop.f32.mrb[40].mxu1 }
 0xcaa   :  { %v6378_v55 = vadd.f32 %v8111_v31, %v3172_v37  ;;  %v3174_v50 = vpop.f32.mrb[23].mxu0  ;;  %v5138_v26 = vpop.f32.mrb[41].mxu1  ;;  %v3244_v20 = vadd.f32 %v3243_v52, %v8120_v8  ;;  %v8333_v37 = vpack.c.bf16 %v3503_v47, %v3500_v17  ;;  %v3506_v52 = vld [vmem:[#allocation8 + $0xd0] sm:$0xff] }
 0xcab   :  { %v6380_v2 = vadd.f32 %v8115_v45, %v3174_v50  ;;  %v3512_v26 = vld [vmem:[#allocation8 + $0x100] sm:$0xff] }
 0xcac   :  { %v4311_v61 = vmul.f32 -1.442695, %v6378_v55  ;;  %v3509_v55 = vld [vmem:[#allocation8 + $0xe8] sm:$0xff] }
 0xcad   :  { %v4312_v3 = vmul.f32 -1.442695, %v6380_v2  ;;  %v8337_v50 = vpack.c.bf16 %v3509_v55, %v3506_v52 }
 0xcae   :  { %6549 = vpow2.f32 %v4311_v61  ;;  %v3515_v61 = vld [vmem:[#allocation8 + $0x118] sm:$0xff] }
 0xcaf   :  { %6551 = vpow2.f32 %v4312_v3  ;;  %v8340_v2 = vpack.c.bf16 %v3515_v61, %v3512_v26  ;;  %v3518_v3 = vld [vmem:[#allocation8 + $0x130] sm:$0xff] }
 0xcb8   :  { %v6550_v13 = vpop.eup %6549 }
 0xcb9   :  { %v3251_v56 = vadd.f32 1.0, %v6550_v13  ;;  %v6552_v14 = vpop.eup %6551  ;;  %v3521_v13 = vld [vmem:[#allocation8 + $0x148] sm:$0xff] }
 0xcba   :  { %v3258_v39 = vadd.f32 1.0, %v6552_v14 }
 0xcbb   :  { %6553 = vrcp.f32 %v3251_v56  ;;  %v8344_v56 = vpack.c.bf16 %v3521_v13, %v3518_v3 }
 0xcbc   :  { %6555 = vrcp.f32 %v3258_v39 }
 0xcc5   :  { %v6554_v12 = vpop.eup %6553 }
 0xcc6   :  { %v3261_v57 = vmul.f32 %v6554_v12, %v3244_v20  ;;  %v6556_v54 = vpop.eup %6555 }
 0xcc7   :  { %v3264_v46 = vsub.f32 1.0, %v6556_v54  ;;  %v3266_v33 = vmul.f32 %v6556_v54, %v8218_v36 }
 0xcc8   :  { %v3262_v5 = vadd.f32 %v3261_v57, %v2383_v15 }
 0xcca   :  { %6557 = vtanh.f32 %v3262_v5 }
 0xcd4   :  { %v6558_v44 = vpop.eup %6557 }
 0xcd5   :  { %v3265_v27 = vmul.f32 %v6558_v44, %v3264_v46 }
 0xcd7   :  { %v8298_v25 = vadd.f32 %v3266_v33, %v3265_v27 }
 0xcd9   :  { %3382 = vmatmul.mubr.f32.vlgmr.msra.gmra.mrb[24].mxu0 %v8298_v25  ;;  %5172 = vmatmul.mubr.f32.vlgmr.msra.gmra.mrb[42].mxu1 %v8298_v25 }
 0xcda   :  { %6134 = vmatpush1.bf16.msra.mxu0 %v8241_v63  ;;  %3592 = vmatprep.mubr.f32.mxu0 %v6770_v0 }
 0xcdb   :  { %6136 = vmatprep.subr.bf16.mxu0 %v8245_v4  ;;  %5206 = vmatprep.mubr.msk.f32.mxu1 %vm6772_vm1, %v6770_v0 }
 0xcdc   :  { %6165 = vmatpush3.bf16.msra.mxu1 %v8321_v11 }
 0xcdd   :  { %6166 = vmatprep.subr.bf16.mxu1 %v6771_v18 }
 0xcde   :  { %6138 = vmatpush1.bf16.msra.mxu0 %v8247_v21 }
 0xcdf   :  { %6140 = vmatprep.subr.bf16.mxu0 %v8251_v6 }
 0xce0   :  { %6168 = vmatpush3.bf16.msra.mxu1 %v8325_v22 }
 0xce1   :  { %6169 = vmatprep.subr.bf16.mxu1 %v6771_v18 }
 0xce2   :  { %6142 = vmatpush1.bf16.msra.mxu0 %v8253_v34 }
 0xce3   :  { %6144 = vmatprep.subr.bf16.mxu0 %v8257_v43 }
 0xce4   :  { %6171 = vmatpush3.bf16.msra.mxu1 %v8329_v28 }
 0xce5   :  { %6172 = vmatprep.subr.bf16.mxu1 %v6771_v18 }
 0xce6   :  { %6146 = vmatpush1.bf16.msra.mxu0 %v8259_v41 }
 0xce7   :  { %6148 = vmatprep.subr.bf16.mxu0 %v8263_v62 }
 0xce8   :  { %6174 = vmatpush3.bf16.msra.mxu1 %v8333_v37 }
 0xce9   :  { %6175 = vmatprep.subr.bf16.mxu1 %v6771_v18 }
 0xcea   :  { %6150 = vmatpush1.bf16.msra.mxu0 %v8265_v48 }
 0xceb   :  { %6152 = vmatprep.subr.bf16.mxu0 %v8269_v58 }
 0xcec   :  { %6177 = vmatpush3.bf16.msra.mxu1 %v8337_v50 }
 0xced   :  { %6178 = vmatprep.subr.bf16.mxu1 %v6771_v18 }
 0xcee   :  { %6154 = vmatpush1.bf16.msra.mxu0 %v8271_v53 }
 0xcef   :  { %6156 = vmatprep.subr.bf16.mxu0 %v8273_v24 }
 0xcf0   :  { %6180 = vmatpush3.bf16.msra.mxu1 %v8340_v2 }
 0xcf1   :  { %6181 = vmatprep.subr.bf16.mxu1 %v6771_v18 }
 0xcf2   :  { %6158 = vmatpush1.bf16.msra.mxu0 %v8277_v29 }
 0xcf3   :  { %6160 = vmatprep.subr.bf16.mxu0 %v8282_v59 }
 0xcf4   :  { %6183 = vmatpush3.bf16.msra.mxu1 %v8344_v56 }
 0xcf5   :  { %6184 = vmatprep.subr.bf16.mxu1 %v6771_v18 }
 0xcf6   :  { %6162 = vmatpush1.bf16.msra.mxu0 %v8287_v7 }
 0xcf7   :  { %6188 = vmatprep.subr.bf16.mxu0 %v8239_v19 }
 0xcf8   :  { %6186 = vmatpush3.bf16.msra.mxu1 %v8279_v51 }
 0xcf9   :  { %6219 = vmatprep.subr.bf16.mxu1 %v6771_v18 }
 0xdac   :  { %v3383_v14 = vpop.f32.mrb[24].mxu0  ;;  %v3454_v39 = vpop.f32.mrb[42].mxu1 }
 0xdad   :  { %v6382_v20 = vadd.f32 %v8111_v31, %v3383_v14  ;;  %v3385_v12 = vpop.f32.mrb[25].mxu0  ;;  %v5173_v15 = vpop.f32.mrb[43].mxu1  ;;  %v3455_v49 = vadd.f32 %v3454_v39, %v8120_v8 }
 0xdae   :  { %v6384_v5 = vadd.f32 %v8115_v45, %v3385_v12 }
 0xdaf   :  { %v4313_v57 = vmul.f32 -1.442695, %v6382_v20 }
 0xdb0   :  { %v4314_v54 = vmul.f32 -1.442695, %v6384_v5 }
 0xdb1   :  { %6559 = vpow2.f32 %v4313_v57 }
 0xdb2   :  { %6561 = vpow2.f32 %v4314_v54 }
 0xdbb   :  { %v6560_v46 = vpop.eup %6559 }
 0xdbc   :  { %v3462_v44 = vadd.f32 1.0, %v6560_v46  ;;  %v6562_v27 = vpop.eup %6561 }
 0xdbd   :  { %v3469_v33 = vadd.f32 1.0, %v6562_v27 }
 0xdbe   :  { %6563 = vrcp.f32 %v3462_v44  ;;  %v2393_v44 = vadd.f32 %v8052_v35, %v8123_v60  ;;  %v4124_v35 = vld [vmem:[%s8555_s10 + $0x8] sm:$0xff] }
 0xdbf   :  { %6565 = vrcp.f32 %v3469_v33 }
 0xdc8   :  { %v6564_v23 = vpop.eup %6563 }
 0xdc9   :  { %v3472_v1 = vmul.f32 %v6564_v23, %v3455_v49  ;;  %v6566_v40 = vpop.eup %6565 }
 0xdca   :  { %v3475_v17 = vsub.f32 1.0, %v6566_v40  ;;  %v3477_v55 = vmul.f32 %v6566_v40, %v8298_v25 }
 0xdcb   :  { %v3473_v32 = vadd.f32 %v3472_v1, %v2388_v16 }
 0xdcd   :  { %6567 = vtanh.f32 %v3473_v32 }
 0xdd7   :  { %v6568_v47 = vpop.eup %6567 }
 0xdd8   :  { %v3476_v52 = vmul.f32 %v6568_v47, %v3475_v17 }
 0xdda   :  { %v8357_v26 = vadd.f32 %v3477_v55, %v3476_v52  ;;  %v4127_v52 = vld [vmem:[%s8555_s10 + $0x20] sm:$0xff]  ;;  %v4128_v55 = vld [vmem:[%s8555_s10 + $0x28] sm:$0xff] }
 0xddc   :  { %3593 = vmatmul.mubr.f32.vlgmr.msra.gmra.mrb[26].mxu0 %v8357_v26  ;;  %5207 = vmatmul.mubr.f32.vlgmr.msra.gmra.mrb[44].mxu1 %v8357_v26 }
 0xddd   :  { %6190 = vmatpush1.bf16.msra.mxu0 %v8241_v63  ;;  %6221 = vmatpush3.bf16.msra.mxu1 %v8321_v11 }
 0xdde   :  { %6192 = vmatprep.subr.bf16.mxu0 %v8245_v4  ;;  %6222 = vmatprep.subr.bf16.mxu1 %v6771_v18 }
 0xddf   :  { %3803 = vmatprep.mubr.f32.mxu0 %v6770_v0  ;;  %5241 = vmatprep.mubr.msk.f32.mxu1 %vm6772_vm1, %v6770_v0 }
 0xde1   :  { %6194 = vmatpush1.bf16.msra.mxu0 %v8247_v21  ;;  %6224 = vmatpush3.bf16.msra.mxu1 %v8325_v22 }
 0xde2   :  { %6196 = vmatprep.subr.bf16.mxu0 %v8251_v6  ;;  %6225 = vmatprep.subr.bf16.mxu1 %v6771_v18 }
 0xde5   :  { %6198 = vmatpush1.bf16.msra.mxu0 %v8253_v34  ;;  %6227 = vmatpush3.bf16.msra.mxu1 %v8329_v28 }
 0xde6   :  { %6200 = vmatprep.subr.bf16.mxu0 %v8257_v43  ;;  %6228 = vmatprep.subr.bf16.mxu1 %v6771_v18 }
 0xde9   :  { %6202 = vmatpush1.bf16.msra.mxu0 %v8259_v41  ;;  %6230 = vmatpush3.bf16.msra.mxu1 %v8333_v37 }
 0xdea   :  { %6204 = vmatprep.subr.bf16.mxu0 %v8263_v62  ;;  %6231 = vmatprep.subr.bf16.mxu1 %v6771_v18 }
 0xded   :  { %6206 = vmatpush1.bf16.msra.mxu0 %v8265_v48  ;;  %6233 = vmatpush3.bf16.msra.mxu1 %v8337_v50 }
 0xdee   :  { %6208 = vmatprep.subr.bf16.mxu0 %v8269_v58  ;;  %6234 = vmatprep.subr.bf16.mxu1 %v6771_v18 }
 0xdf1   :  { %6210 = vmatpush1.bf16.msra.mxu0 %v8271_v53  ;;  %6236 = vmatpush3.bf16.msra.mxu1 %v8340_v2 }
 0xdf2   :  { %6212 = vmatprep.subr.bf16.mxu0 %v8273_v24  ;;  %6237 = vmatprep.subr.bf16.mxu1 %v6771_v18 }
 0xdf5   :  { %6214 = vmatpush1.bf16.msra.mxu0 %v8277_v29  ;;  %6239 = vmatpush3.bf16.msra.mxu1 %v8344_v56 }
 0xdf6   :  { %6216 = vmatprep.subr.bf16.mxu0 %v8282_v59  ;;  %6240 = vmatprep.subr.bf16.mxu1 %v6771_v18 }
 0xdf9   :  { %6218 = vmatpush1.bf16.msra.mxu0 %v8287_v7  ;;  %6242 = vmatpush3.bf16.msra.mxu1 %v8279_v51 }
 0xdfa   :  { %6244 = vmatprep.subr.bf16.mxu0 %v8239_v19  ;;  %6275 = vmatprep.subr.bf16.mxu1 %v6771_v18 }
 0xeaf   :  { %v3594_v38 = vpop.f32.mrb[26].mxu0  ;;  %v3665_v61 = vpop.f32.mrb[44].mxu1 }
 0xeb0   :  { %v6386_v3 = vadd.f32 %v8111_v31, %v3594_v38  ;;  %v3596_v13 = vpop.f32.mrb[27].mxu0  ;;  %v5208_v14 = vpop.f32.mrb[45].mxu1  ;;  %v3666_v19 = vadd.f32 %v3665_v61, %v8120_v8  ;;  %v6307_v38 = vpack.c.bf16 %v4128_v55, %v4127_v52  ;;  %v4129_v61 = vld [vmem:[%s8555_s10 + $0x30] sm:$0xff] }
 0xeb1   :  { %v6388_v20 = vadd.f32 %v8115_v45, %v3596_v13  ;;  %v4131_v14 = vld [vmem:[%s8555_s10 + $0x40] sm:$0xff] }
 0xeb2   :  { %v4315_v39 = vmul.f32 -1.442695, %v6386_v3  ;;  %v4130_v3 = vld [vmem:[%s8555_s10 + $0x38] sm:$0xff] }
 0xeb3   :  { %v4316_v12 = vmul.f32 -1.442695, %v6388_v20  ;;  %v6311_v13 = vpack.c.bf16 %v4130_v3, %v4129_v61  ;;  %v4133_v20 = vld [vmem:[%s8555_s10 + $0x50] sm:$0xff] }
 0xeb4   :  { %6569 = vpow2.f32 %v4315_v39 }
 0xeb5   :  { %6571 = vpow2.f32 %v4316_v12  ;;  %v4134_v12 = vld [vmem:[%s8555_s10 + $0x58] sm:$0xff] }
 0xebe   :  { %v6570_v15 = vpop.eup %6569 }
 0xebf   :  { %v3673_v57 = vadd.f32 1.0, %v6570_v15  ;;  %v6572_v5 = vpop.eup %6571  ;;  %v6319_v15 = vpack.c.bf16 %v4134_v12, %v4133_v20 }
 0xec0   :  { %v3680_v54 = vadd.f32 1.0, %v6572_v5  ;;  %v4136_v5 = vld [vmem:[%s8555_s10 + $0x68] sm:$0xff] }
 0xec1   :  { %6573 = vrcp.f32 %v3673_v57  ;;  %v4135_v57 = vld [vmem:[%s8555_s10 + $0x60] sm:$0xff] }
 0xec2   :  { %6575 = vrcp.f32 %v3680_v54  ;;  %v6323_v54 = vpack.c.bf16 %v4136_v5, %v4135_v57 }
 0xecb   :  { %v6574_v46 = vpop.eup %6573 }
 0xecc   :  { %v3683_v27 = vmul.f32 %v6574_v46, %v3666_v19  ;;  %v6576_v49 = vpop.eup %6575  ;;  %v4137_v19 = vld [vmem:[%s8555_s10 + $0x70] sm:$0xff]  ;;  %v4138_v46 = vld [vmem:[%s8555_s10 + $0x78] sm:$0xff] }
 0xecd   :  { %v3686_v23 = vsub.f32 1.0, %v6576_v49  ;;  %v3688_v32 = vmul.f32 %v6576_v49, %v8357_v26 }
 0xece   :  { %v3684_v33 = vadd.f32 %v3683_v27, %v2393_v44  ;;  %v6327_v44 = vpack.c.bf16 %v4138_v46, %v4137_v19 }
 0xed0   :  { %6577 = vtanh.f32 %v3684_v33 }
 0xeda   :  { %v6578_v16 = vpop.eup %6577 }
 0xedb   :  { %v3687_v1 = vmul.f32 %v6578_v16, %v3686_v23 }
 0xedd   :  { %v8402_v40 = vadd.f32 %v3688_v32, %v3687_v1 }
 0xedf   :  { %3804 = vmatmul.mubr.f32.vlgmr.msra.gmra.mrb[28].mxu0 %v8402_v40  ;;  %5242 = vmatmul.mubr.f32.vlgmr.msra.gmra.mrb[46].mxu1 %v8402_v40 }
 0xee0   :  { %6246 = vmatpush1.bf16.msra.mxu0 %v8241_v63  ;;  %6277 = vmatpush3.bf16.msra.mxu1 %v8321_v11 }
 0xee1   :  { %6248 = vmatprep.subr.bf16.mxu0 %v8245_v4  ;;  %6278 = vmatprep.subr.bf16.mxu1 %v6771_v18 }
 0xee2   :  { %4014 = vmatprep.mubr.f32.mxu0 %v6770_v0  ;;  %5276 = vmatprep.mubr.msk.f32.mxu1 %vm6772_vm1, %v6770_v0  ;;  %v4123_v0 = vld [vmem:[%s8555_s10] sm:$0xff] }
 0xee3   :  { %v6299_v63 = vpack.c.bf16 %v4124_v35, %v4123_v0 }
 0xee4   :  { %6250 = vmatpush1.bf16.msra.mxu0 %v8247_v21  ;;  %6280 = vmatpush3.bf16.msra.mxu1 %v8325_v22 }
 0xee5   :  { %6252 = vmatprep.subr.bf16.mxu0 %v8251_v6  ;;  %6281 = vmatprep.subr.bf16.mxu1 %v6771_v18 }
 0xee8   :  { %6254 = vmatpush1.bf16.msra.mxu0 %v8253_v34  ;;  %6283 = vmatpush3.bf16.msra.mxu1 %v8329_v28 }
 0xee9   :  { %6256 = vmatprep.subr.bf16.mxu0 %v8257_v43  ;;  %6284 = vmatprep.subr.bf16.mxu1 %v6771_v18 }
 0xeec   :  { %6258 = vmatpush1.bf16.msra.mxu0 %v8259_v41  ;;  %6286 = vmatpush3.bf16.msra.mxu1 %v8333_v37 }
 0xeed   :  { %6260 = vmatprep.subr.bf16.mxu0 %v8263_v62  ;;  %6287 = vmatprep.subr.bf16.mxu1 %v6771_v18 }
 0xef0   :  { %6262 = vmatpush1.bf16.msra.mxu0 %v8265_v48  ;;  %6289 = vmatpush3.bf16.msra.mxu1 %v8337_v50  ;;  %v4125_v50 = vld [vmem:[%s8555_s10 + $0x10] sm:$0xff] }
 0xef1   :  { %6264 = vmatprep.subr.bf16.mxu0 %v8269_v58  ;;  %6290 = vmatprep.subr.bf16.mxu1 %v6771_v18 }
 0xef4   :  { %6266 = vmatpush1.bf16.msra.mxu0 %v8271_v53  ;;  %6292 = vmatpush3.bf16.msra.mxu1 %v8340_v2  ;;  %v4126_v2 = vld [vmem:[%s8555_s10 + $0x18] sm:$0xff] }
 0xef5   :  { %6268 = vmatprep.subr.bf16.mxu0 %v8273_v24  ;;  %6293 = vmatprep.subr.bf16.mxu1 %v6771_v18 }
 0xef8   :  { %6270 = vmatpush1.bf16.msra.mxu0 %v8277_v29  ;;  %6295 = vmatpush3.bf16.msra.mxu1 %v8344_v56 }
 0xef9   :  { %6272 = vmatprep.subr.bf16.mxu0 %v8282_v59  ;;  %6296 = vmatprep.subr.bf16.mxu1 %v6771_v18  ;;  %v2398_v59 = vadd.f32 %v8113_v30, %v8123_v60  ;;  %v6303_v30 = vpack.c.bf16 %v4126_v2, %v4125_v50 }
 0xefc   :  { %6274 = vmatpush1.bf16.msra.mxu0 %v8287_v7  ;;  %6298 = vmatpush3.bf16.msra.mxu1 %v8279_v51 }
 0xefd   :  { %6300 = vmatprep.subr.bf16.mxu0 %v6299_v63 }
 0xfb2   :  { %v3805_v4 = vpop.f32.mrb[28].mxu0  ;;  %v3876_v21 = vpop.f32.mrb[46].mxu1 }
 0xfb3   :  { %v6390_v6 = vadd.f32 %v8111_v31, %v3805_v4  ;;  %v3807_v34 = vpop.f32.mrb[29].mxu0  ;;  %v5243_v18 = vpop.f32.mrb[47].mxu1  ;;  %v3877_v29 = vadd.f32 %v3876_v21, %v8120_v8  ;;  %v4322_v4 = vld [vmem:[#allocation13] ss:$0 sm:$0xff] }
 0xfb4   :  { %v6392_v41 = vadd.f32 %v8115_v45, %v3807_v34 }
 0xfb5   :  { %v4317_v43 = vmul.f32 -1.442695, %v6390_v6 }
 0xfb6   :  { %v4318_v62 = vmul.f32 -1.442695, %v6392_v41 }
 0xfb7   :  { %6579 = vpow2.f32 %v4317_v43 }
 0xfb8   :  { %6581 = vpow2.f32 %v4318_v62 }
 0xfc1   :  { %v6580_v48 = vpop.eup %6579 }
 0xfc2   :  { %v3884_v58 = vadd.f32 1.0, %v6580_v48  ;;  %v6582_v53 = vpop.eup %6581 }
 0xfc3   :  { %v3891_v24 = vadd.f32 1.0, %v6582_v53 }
 0xfc4   :  { %6583 = vrcp.f32 %v3884_v58 }
 0xfc5   :  { %6585 = vrcp.f32 %v3891_v24 }
 0xfce   :  { %v6584_v51 = vpop.eup %6583 }
 0xfcf   :  { %v3894_v7 = vmul.f32 %v6584_v51, %v3877_v29  ;;  %v6586_v22 = vpop.eup %6585 }
 0xfd0   :  { %v3897_v28 = vsub.f32 1.0, %v6586_v22  ;;  %v3899_v17 = vmul.f32 %v6586_v22, %v8402_v40 }
 0xfd1   :  { %v3895_v11 = vadd.f32 %v3894_v7, %v2398_v59 }
 0xfd3   :  { %6587 = vtanh.f32 %v3895_v11 }
 0xfdd   :  { %v6588_v37 = vpop.eup %6587 }
 0xfde   :  { %v3898_v56 = vmul.f32 %v6588_v37, %v3897_v28 }
 0xfe0   :  { %v8457_v47 = vadd.f32 %v3899_v17, %v3898_v56 }
 0xfe2   :  { %4015 = vmatmul.mubr.f32.vlgmr.msra.gmra.mrb[30].mxu0 %v8457_v47  ;;  %5277 = vmatmul.mubr.f32.vlgmr.msra.gmra.mrb[48].mxu1 %v8457_v47 }
 0xfe3   :  { %6302 = vmatpush3.bf16.msra.mxu0 %v6299_v63  ;;  %5311 = vmatprep.mubr.f32.mxu0 %v8129_v42  ;;  %v4132_v42 = vld [vmem:[%s8555_s10 + $0x48] sm:$0xff]  ;;  %v2403_v63 = vadd.f32 %v8109_v10, %v8123_v60 }
 0xfe4   :  { %6304 = vmatprep.subr.bf16.mxu0 %v6303_v30  ;;  %v6315_v39 = vpack.c.bf16 %v4132_v42, %v4131_v14 }
 0xfe7   :  { %6306 = vmatpush3.bf16.msra.mxu0 %v6303_v30 }
 0xfe8   :  { %6308 = vmatprep.subr.bf16.mxu0 %v6307_v38 }
 0xfeb   :  { %6310 = vmatpush3.bf16.msra.mxu0 %v6307_v38 }
 0xfec   :  { %6312 = vmatprep.subr.bf16.mxu0 %v6311_v13 }
 0xfef   :  { %6314 = vmatpush3.bf16.msra.mxu0 %v6311_v13 }
 0xff0   :  { %6316 = vmatprep.subr.bf16.mxu0 %v6315_v39 }
 0xff3   :  { %6318 = vmatpush3.bf16.msra.mxu0 %v6315_v39 }
 0xff4   :  { %6320 = vmatprep.subr.bf16.mxu0 %v6319_v15 }
 0xff7   :  { %6322 = vmatpush3.bf16.msra.mxu0 %v6319_v15 }
 0xff8   :  { %6324 = vmatprep.subr.bf16.mxu0 %v6323_v54 }
 0xffb   :  { %6326 = vmatpush3.bf16.msra.mxu0 %v6323_v54 }
 0xffc   :  { %6328 = vmatprep.subr.bf16.mxu0 %v6327_v44 }
 0xfff   :  { %6330 = vmatpush3.bf16.msra.mxu0 %v6327_v44 }
0x1002   :  { %5312 = vmatmul.mubr.f32.vlgmr.msra.gmra.mrb[32].mxu0 %v8174_v9 }
0x1003   :  { %5314 = vmatprep.mubr.f32.mxu0 %v8218_v36 }
0x1006   :  { %5315 = vmatmul.mubr.f32.gmra.mrb[34].mxu0 %v8298_v25 }
0x1007   :  { %5317 = vmatprep.mubr.f32.mxu0 %v8357_v26 }
0x100a   :  { %5318 = vmatmul.mubr.f32.gmra.mrb[36].mxu0 %v8402_v40 }
0x100b   :  { %5320 = vmatprep.mubr.f32.mxu0 %v8457_v47 }
0x10b5   :  { %v4016_v27 = vpop.f32.mrb[30].mxu0  ;;  %v4087_v33 = vpop.f32.mrb[48].mxu1 }
0x10b6   :  { %v6394_v49 = vadd.f32 %v8111_v31, %v4016_v27  ;;  %v4018_v23 = vpop.f32.mrb[31].mxu0  ;;  %v5278_v16 = vpop.f32.mrb[49].mxu1  ;;  %v4088_v40 = vadd.f32 %v4087_v33, %v8120_v8 }
0x10b7   :  { %v6396_v32 = vadd.f32 %v8115_v45, %v4018_v23 }
0x10b8   :  { %v4319_v1 = vmul.f32 -1.442695, %v6394_v49 }
0x10b9   :  { %v4320_v9 = vmul.f32 -1.442695, %v6396_v32 }
0x10ba   :  { %6589 = vpow2.f32 %v4319_v1 }
0x10bb   :  { %6591 = vpow2.f32 %v4320_v9 }
0x10c4   :  { %v6590_v36 = vpop.eup %6589 }
0x10c5   :  { %v4095_v25 = vadd.f32 1.0, %v6590_v36  ;;  %v6592_v26 = vpop.eup %6591 }
0x10c6   :  { %v4102_v0 = vadd.f32 1.0, %v6592_v26 }
0x10c7   :  { %6593 = vrcp.f32 %v4095_v25 }
0x10c8   :  { %6595 = vrcp.f32 %v4102_v0 }
0x10d1   :  { %v6594_v35 = vpop.eup %6593 }
0x10d2   :  { %v4105_v31 = vmul.f32 %v6594_v35, %v4088_v40  ;;  %v6596_v41 = vpop.eup %6595 }
0x10d3   :  { %v4108_v24 = vsub.f32 1.0, %v6596_v41  ;;  %v4110_v59 = vmul.f32 %v6596_v41, %v8457_v47 }
0x10d4   :  { %v4106_v21 = vadd.f32 %v4105_v31, %v2403_v63 }
0x10d5   :  { %v5313_v6 = vpop.f32.mrb[32].mxu0 }
0x10d6   :  { %6597 = vtanh.f32 %v4106_v21  ;;  %v4218_v45 = vadd.f32 %v5313_v6, %v4322_v4  ;;  %v4212_v34 = vpop.f32.mrb[33].mxu0 }
0x10d7   :  { %v4213_v18 = vadd.f32 %v4322_v4, %v4212_v34 }
0x10d8   :  { %4253 = vst.msk [vmem:[%s8557_s12 + $0x8] sm:$0xff] %vm4251_vm2, %v4218_v45 }
0x10d9   :  { %4252 = vst.msk [vmem:[%s8557_s12] sm:$0xff] %vm4251_vm2, %v4213_v18  ;;  %v5316_v10 = vpop.f32.mrb[34].mxu0 }
0x10da   :  { %v4228_v8 = vadd.f32 %v5316_v10, %v4322_v4  ;;  %v4222_v60 = vpop.f32.mrb[35].mxu0 }
0x10db   :  { %v4223_v43 = vadd.f32 %v4322_v4, %v4222_v60 }
0x10dc   :  { %4255 = vst.msk [vmem:[%s8557_s12 + $0x18] sm:$0xff] %vm4251_vm2, %v4228_v8 }
0x10dd   :  { %4254 = vst.msk [vmem:[%s8557_s12 + $0x10] sm:$0xff] %vm4251_vm2, %v4223_v43  ;;  %v5319_v62 = vpop.f32.mrb[36].mxu0 }
0x10de   :  { %v4238_v48 = vadd.f32 %v5319_v62, %v4322_v4  ;;  %v4232_v58 = vpop.f32.mrb[37].mxu0 }
0x10df   :  { %v4233_v53 = vadd.f32 %v4322_v4, %v4232_v58 }
0x10e0   :  { %v6598_v29 = vpop.eup %6597  ;;  %4257 = vst.msk [vmem:[%s8557_s12 + $0x28] sm:$0xff] %vm4251_vm2, %v4238_v48 }
0x10e1   :  { %4256 = vst.msk [vmem:[%s8557_s12 + $0x20] sm:$0xff] %vm4251_vm2, %v4233_v53  ;;  %v4109_v51 = vmul.f32 %v6598_v29, %v4108_v24 }
0x10e3   :  { %v4111_v7 = vadd.f32 %v4110_v59, %v4109_v51 }
0x10e5   :  { %4321 = vst [vmem:[%s8558_s13 + $0x8] sm:$0xff] %v4111_v7  ;;  %5321 = vmatmul.mubr.f32.gmra.mrb[38].mxu0 %v4111_v7 }
0x11b8   :  { %v5322_v11 = vpop.f32.mrb[38].mxu0 }
0x11b9   :  { %v4248_v22 = vadd.f32 %v5322_v11, %v4322_v4  ;;  %v4242_v28 = vpop.f32.mrb[39].mxu0 }
0x11ba   :  { %v4243_v37 = vadd.f32 %v4322_v4, %v4242_v28 }
0x11bb   :  { %4259 = vst.msk [vmem:[%s8557_s12 + $0x38] sm:$0xff] %vm4251_vm2, %v4248_v22 }
0x11bc   :  { %4258 = vst.msk [vmem:[%s8557_s12 + $0x30] sm:$0xff] %vm4251_vm2, %v4243_v37 }
0x11bd   :  { %4268 = vsyncpa [#allocation4], 1 }
0x11be   :  { %4269 = vsyncpa [#allocation6], 1 }
0x11bf   :  { %4270 = vsyncpa [#allocation9], 1 }
0x11c0   :  { %4271 = vsyncpa [#allocation12], 1 }

</bundles_post_ra>
